<compile_context>
chip_gen: v7x
topology: tpu7x:2x2x1
jax: 0.10.0
libtpu: 0.0.40
codegen_flags: <defaults>
</compile_context>

<pallas_src>
import functools

import jax
import jax.numpy as jnp
from jax import lax
from jax.experimental import pallas as pl
from jax.experimental.pallas import tpu as pltpu


_WEIGHT_ORDER = ("wu", "wl", "wa", "ba", "wu1", "wu2", "wl1", "wo")


def _weight_layout(cin):
    """Flat offsets of every weight tensor inside the single SMEM vector."""
    cmid = cin // 2
    sizes = {
        "wu": cmid * cin, "wl": cmid * cin,
        "wa": cmid * cmid, "ba": cmid,
        "wu1": cmid * cmid * 9, "wu2": cmid * cmid * 9, "wl1": cmid * cmid * 9,
        "wo": cin * cin,
    }
    offs, off = [], 0
    for k in _WEIGHT_ORDER:
        offs.append(off)
        off += sizes[k]
    return tuple(offs), off


def _pack_weights(params):
    return jnp.concatenate(
        [params[k].astype(jnp.float32).reshape(-1) for k in _WEIGHT_ORDER])


# ----------------------------------------------------------------------------
# Fused SCBlock kernel (nb batch samples per grid step)
# ----------------------------------------------------------------------------
def _scblock_kernel(x_ref, w_ref, o_ref, halo_ref, *, eps, W, offs):
    # x_ref / o_ref : (NB, C, R, 128) VMEM blocks (lane-dense flattened spatial)
    # w_ref         : (n_weights,) f32 SMEM — all weights flattened (see offs)
    # halo_ref      : (cmid, R, 128 + 2*(W+1)) f32 VMEM scratch for conv3x3
    NB, C, R, L = x_ref.shape
    cmid = C // 2
    P = W + 1
    (off_wu, off_wl, off_wa, off_ba,
     off_wu1, off_wu2, off_wl1, off_wo) = offs

    # Zero the two halo "corner" strips (flat indices < 0 and >= H*W).  They
    # are never overwritten by the staging stores below, so this is the only
    # init conv3x3 needs.  Done every grid step (NOT under program_id==0):
    # with a "parallel" grid axis a TensorCore may never run step 0.  Cost is
    # 2*cmid*(W+1) floats, i.e. nothing.
    zero_strip = jnp.zeros((1, P), jnp.float32)
    for i in range(cmid):
        halo_ref[i, 0:1, 0:P] = zero_strip
        halo_ref[i, R - 1:R, P + L:P + L + P] = zero_strip

    # Image-column masks shared by every 3x3 tap.  128 % W == 0, so the image
    # column of a flat element depends only on its lane.  Hoisted once.
    lane = lax.broadcasted_iota(jnp.int32, (R, L), 1)
    col = lane % W
    not_first_col = col > 0           # tap dx = -1 must not read column -1
    not_last_col = col < (W - 1)      # tap dx = +1 must not read column W

    def lrelu(v):
        return jnp.where(v >= 0, v, 0.2 * v)

    def full_sum(v):                  # (R, L) -> (1, 1): lane then sublane reduce
        return jnp.sum(jnp.sum(v, axis=1, keepdims=True), axis=0, keepdims=True)

    def conv1x1(planes, off, cout):
        # planes: list of (R, L) f32; weight w[o, i] at w_ref[off + o*cin + i].
        # Tiny channel counts => VPU broadcast-FMA with SMEM scalars, no MXU.
        cin = len(planes)
        outs = []
        for o in range(cout):
            acc = w_ref[off + o * cin] * planes[0]
            for i in range(1, cin):
                acc = acc + w_ref[off + o * cin + i] * planes[i]
            outs.append(acc)
        return outs

    def conv3x3(planes, off):
        # 3x3, stride 1, SAME zero padding, no bias, on flattened-spatial planes.
        cin = len(planes)
        # Stage every input plane once: middle band = the plane; side bands =
        # the W+1 pixels a +-1-row shifted window needs from the neighbouring
        # vreg row (read back from the just-stored middle band).  Corners stay
        # zero, giving exact zero padding at the image top/bottom.
        for i in range(cin):
            halo_ref[i, :, P:P + L] = planes[i]
            if R > 1:
                halo_ref[i, 1:R, 0:P] = halo_ref[i, 0:R - 1, L:L + P]
                halo_ref[i, 0:R - 1, P + L:P + L + P] = halo_ref[i, 1:R, P:2 * P]
        outs = [None] * cmid
        for i in range(cin):
            for ddy in (-1, 0, 1):
                for ddx in (-1, 0, 1):
                    k = ddy * W + ddx
                    # One shifted window per (input channel, tap), reused for
                    # every output channel (halves the tap-load traffic).
                    if k == 0:
                        tap = planes[i]
                    else:
                        tap = halo_ref[i, :, P + k:P + k + L]
                    if ddx == -1:
                        tap = jnp.where(not_first_col, tap, 0.0)
                    elif ddx == 1:
                        tap = jnp.where(not_last_col, tap, 0.0)
                    for o in range(cmid):
                        wv = w_ref[off + ((o * cin + i) * 3 + (ddy + 1)) * 3
                                   + (ddx + 1)]
                        t = wv * tap
                        outs[o] = t if outs[o] is None else outs[o] + t
        return outs

    inv_n = 1.0 / float(C * R * L)
    for s in range(NB):
        xs = [x_ref[s, c].astype(jnp.float32) for c in range(C)]

        # ---- LayerNorm over (C, H, W): biased variance, no affine ----------
        tot = xs[0]
        for c in range(1, C):
            tot = tot + xs[c]
        mean = full_sum(tot) * inv_n
        sq = None
        for c in range(C):
            d = xs[c] - mean
            sq = d * d if sq is None else sq + d * d
        var = full_sum(sq) * inv_n
        inv = lax.rsqrt(var + eps)                 # EUP rsqrt, not divide+sqrt
        ys = [(xs[c] - mean) * inv for c in range(C)]
        res = [ys[c] + xs[c] for c in range(C)]    # fold residual early; xs dead

        # ---- upper / lower 1x1 projections + leaky relu ---------------------
        y_upper = [lrelu(v) for v in conv1x1(ys, off_wu, cmid)]
        y_lower = [lrelu(v) for v in conv1x1(ys, off_wl, cmid)]

        # ---- attention gate: sigmoid(1x1(y_upper) + bias) --------------------
        att = conv1x1(y_upper, off_wa, cmid)
        y_att = [jax.nn.sigmoid(att[o] + w_ref[off_ba + o]) for o in range(cmid)]

        # ---- upper branch: 3x3 -> gate -> 3x3 + lrelu ------------------------
        y_up = conv3x3(y_upper, off_wu1)
        y_up = [y_up[o] * y_att[o] for o in range(cmid)]
        y_up = [lrelu(v) for v in conv3x3(y_up, off_wu2)]

        # ---- lower branch: 3x3 + lrelu ---------------------------------------
        y_low = [lrelu(v) for v in conv3x3(y_lower, off_wl1)]

        # ---- concat (lower, upper) -> conv_out (1x1) -> + (y + x) ------------
        y_out = conv1x1(y_low + y_up, off_wo, C)
        for c in range(C):
            o_ref[s, c] = (y_out[c] + res[c]).astype(o_ref.dtype)


# ----------------------------------------------------------------------------
# Wrapper
# ----------------------------------------------------------------------------
def scblock_forward(x, params, *, samples_per_step=None):
    N, C, H, W = x.shape
    if C % 2 != 0:
        raise ValueError("cin must be even")
    S = H * W
    if S % 128 != 0 or 128 % W != 0 or W + 1 >= 128:
        raise NotImplementedError(
            "lane-dense layout requires H*W % 128 == 0 and 128 % W == 0")
    R = S // 128
    cmid = C // 2

    offs, n_w = _weight_layout(C)
    w_flat = _pack_weights(params)
    assert w_flat.shape == (n_w,)

    # Samples per grid step: big enough to amortise the ~0.35us per-step
    # pipeline overhead, but keep >= 2 grid steps so both v7x TensorCores get
    # work on the "parallel" batch axis.
    if samples_per_step is None:
        per_sample_bytes = C * S * x.dtype.itemsize
        nb = max(1, min(N, (256 * 1024) // max(per_sample_bytes, 1)))
        if N >= 2:
            nb = min(nb, max(1, N // 2))
        while N % nb:
            nb -= 1
    else:
        nb = samples_per_step
    assert N % nb == 0

    kernel = functools.partial(_scblock_kernel, eps=1e-5, W=W, offs=offs)
    out = pl.pallas_call(
        kernel,
        out_shape=jax.ShapeDtypeStruct((N, C, R, 128), x.dtype),
        grid=(N // nb,),
        in_specs=[
            pl.BlockSpec((nb, C, R, 128), lambda n: (n, 0, 0, 0)),
            pl.BlockSpec(memory_space=pltpu.MemorySpace.SMEM),
        ],
        out_specs=pl.BlockSpec((nb, C, R, 128), lambda n: (n, 0, 0, 0)),
        scratch_shapes=[pltpu.VMEM((cmid, R, 128 + 2 * (W + 1)), jnp.float32)],
        compiler_params=pltpu.CompilerParams(
            dimension_semantics=("parallel",),
            # Default scoped VMEM (16/32 MiB) is far below physical on
            # v5e/v6e; raise it so production-size sample blocks still
            # auto-pipeline.  64 MiB also fits v7x.
            vmem_limit_bytes=64 * 1024 * 1024,
        ),
    )(x.reshape(N, C, R, 128), w_flat)
    return out.reshape(N, C, H, W)


# ----------------------------------------------------------------------------
# Parameter init (PyTorch-like uniform(-1/sqrt(fan_in), 1/sqrt(fan_in)))
# ----------------------------------------------------------------------------
def init_params(key, cin):
    cmid = cin // 2
    ks = jax.random.split(key, 8)

    def u(k, shape, fan_in):
        b = 1.0 / float(fan_in) ** 0.5
        return jax.random.uniform(k, shape, jnp.float32, -b, b)

    return {
        "wu":  u(ks[0], (cmid, cin), cin),            # conv_upper  (1x1, no bias)
        "wl":  u(ks[1], (cmid, cin), cin),            # conv_lower  (1x1, no bias)
        "wa":  u(ks[2], (cmid, cmid), cmid),          # att_conv weight
        "ba":  u(ks[3], (cmid,), cmid),               # att_conv bias
        "wu1": u(ks[4], (cmid, cmid, 3, 3), cmid * 9),
        "wu2": u(ks[5], (cmid, cmid, 3, 3), cmid * 9),
        "wl1": u(ks[6], (cmid, cmid, 3, 3), cmid * 9),
        "wo":  u(ks[7], (cin, cin), cin),             # conv_out (1x1, no bias)
    }


# ----------------------------------------------------------------------------
# Pure-JAX reference written directly from the PyTorch module (for the check)
# ----------------------------------------------------------------------------
def scblock_ref(x, p, eps=1e-5):
    C = x.shape[1]
    cmid = C // 2
    mean = jnp.mean(x, axis=(1, 2, 3), keepdims=True)
    var = jnp.mean((x - mean) ** 2, axis=(1, 2, 3), keepdims=True)
    y = (x - mean) / jnp.sqrt(var + eps)

    def conv1x1(t, w):
        return jnp.einsum("oc,nchw->nohw", w, t, precision=lax.Precision.HIGHEST)

    def conv3x3(t, w):
        return lax.conv_general_dilated(
            t, w, window_strides=(1, 1), padding="SAME",
            dimension_numbers=("NCHW", "OIHW", "NCHW"),
            precision=lax.Precision.HIGHEST)

    def lrelu(t):
        return jnp.where(t >= 0, t, 0.2 * t)

    y_upper = lrelu(conv1x1(y, p["wu"]))
    y_lower = lrelu(conv1x1(y, p["wl"]))
    y_att = jax.nn.sigmoid(conv1x1(y_upper, p["wa"]) + p["ba"].reshape(1, cmid, 1, 1))
    y_upper = conv3x3(y_upper, p["wu1"]) * y_att
    y_upper = lrelu(conv3x3(y_upper, p["wu2"]))
    y_lower = lrelu(conv3x3(y_lower, p["wl1"]))
    y_full = jnp.concatenate([y_lower, y_upper], axis=1)
    return conv1x1(y_full, p["wo"]) + y + x


if __name__ == "__main__":
    N, C, H, W = 2, 4, 16, 16   # batch=2, cin=4 (cmid=2), spatial=16

    key = jax.random.PRNGKey(0)
    kx, kp = jax.random.split(key)
    x = jax.random.normal(kx, (N, C, H, W), jnp.float32)
    params = init_params(kp, C)

    out = jax.block_until_ready(jax.jit(scblock_forward)(x, params))
    assert out.shape == (N, C, H, W), out.shape

    ref = jax.block_until_ready(scblock_ref(x, params))
    err = float(jnp.max(jnp.abs(out - ref)))
    assert jnp.allclose(out, ref, rtol=1e-3, atol=1e-3), err

    print("KERNEL_OK")
</pallas_src>

<mosaic_0001>
module attributes {stable_mosaic.version = 11 : i64} {
  func.func @_scblock_kernel(%arg0: i32, %arg1: memref<1x4x2x128xf32, #tpu.memory_space<vmem>>, %arg2: memref<146xf32, #tpu.memory_space<smem>>, %arg3: memref<1x4x2x128xf32, #tpu.memory_space<vmem>>, %arg4: memref<2x2x162xf32, #tpu.memory_space<vmem>>) attributes {dimension_semantics = [#tpu.dimension_semantics<parallel>], iteration_bounds = array<i64: 2>, scalar_prefetch = 0 : i64, scratch_operands = 1 : i64, tpu.core_type = #tpu.core_type<tc>, window_params = [{transform_indices = @transform_0, window_bounds = array<i64: 1, 4, 2, 128>}, {transform_indices = @transform_1, window_bounds = array<i64: 146>}, {transform_indices = @transform_2, window_bounds = array<i64: 1, 4, 2, 128>}]} {
    %cst = arith.constant 0.000000e+00 : f32
    %0 = vector.broadcast %cst : f32 to vector<1x17xf32>
    %c0 = arith.constant 0 : index
    %c0_0 = arith.constant 0 : index
    %c0_1 = arith.constant 0 : index
    %1 = vector.load %arg4[%c0, %c0_0, %c0_1] : memref<2x2x162xf32, #tpu.memory_space<vmem>>, vector<1x1x17xf32>
    %2 = vector.shape_cast %1 : vector<1x1x17xf32> to vector<1x17xf32>
    %3 = vector.shape_cast %0 : vector<1x17xf32> to vector<1x1x17xf32>
    tpu.vector_store %arg4[%c0, %c0_0, %c0_1], %3 {strides = array<i32>} : memref<2x2x162xf32, #tpu.memory_space<vmem>>, vector<1x1x17xf32>,
    %c0_2 = arith.constant 0 : index
    %c1 = arith.constant 1 : index
    %c145 = arith.constant 145 : index
    %4 = vector.load %arg4[%c0_2, %c1, %c145] : memref<2x2x162xf32, #tpu.memory_space<vmem>>, vector<1x1x17xf32>
    %5 = vector.shape_cast %4 : vector<1x1x17xf32> to vector<1x17xf32>
    %6 = vector.shape_cast %0 : vector<1x17xf32> to vector<1x1x17xf32>
    tpu.vector_store %arg4[%c0_2, %c1, %c145], %6 {strides = array<i32>} : memref<2x2x162xf32, #tpu.memory_space<vmem>>, vector<1x1x17xf32>,
    %c1_3 = arith.constant 1 : index
    %c0_4 = arith.constant 0 : index
    %c0_5 = arith.constant 0 : index
    %7 = vector.load %arg4[%c1_3, %c0_4, %c0_5] : memref<2x2x162xf32, #tpu.memory_space<vmem>>, vector<1x1x17xf32>
    %8 = vector.shape_cast %7 : vector<1x1x17xf32> to vector<1x17xf32>
    %9 = vector.shape_cast %0 : vector<1x17xf32> to vector<1x1x17xf32>
    tpu.vector_store %arg4[%c1_3, %c0_4, %c0_5], %9 {strides = array<i32>} : memref<2x2x162xf32, #tpu.memory_space<vmem>>, vector<1x1x17xf32>,
    %c1_6 = arith.constant 1 : index
    %c1_7 = arith.constant 1 : index
    %c145_8 = arith.constant 145 : index
    %10 = vector.load %arg4[%c1_6, %c1_7, %c145_8] : memref<2x2x162xf32, #tpu.memory_space<vmem>>, vector<1x1x17xf32>
    %11 = vector.shape_cast %10 : vector<1x1x17xf32> to vector<1x17xf32>
    %12 = vector.shape_cast %0 : vector<1x17xf32> to vector<1x1x17xf32>
    tpu.vector_store %arg4[%c1_6, %c1_7, %c145_8], %12 {strides = array<i32>} : memref<2x2x162xf32, #tpu.memory_space<vmem>>, vector<1x1x17xf32>,
    %13 = tpu.iota {dimensions = array<i32: 1>} : vector<2x128xi32>
    %c16_i32 = arith.constant 16 : i32
    %c0_i32 = arith.constant 0 : i32
    %14 = arith.cmpi eq, %c16_i32, %c0_i32 : i32
    %c1_i32 = arith.constant 1 : i32
    %15 = arith.select %14, %c1_i32, %c16_i32 : i32
    %16 = vector.broadcast %15 : i32 to vector<2x128xi32>
    %17 = arith.remsi %13, %16 : vector<2x128xi32>
    %c0_i32_9 = arith.constant 0 : i32
    %18 = vector.broadcast %c0_i32_9 : i32 to vector<2x128xi32>
    %19 = arith.cmpi ne, %17, %18 : vector<2x128xi32>
    %c0_i32_10 = arith.constant 0 : i32
    %20 = vector.broadcast %c0_i32_10 : i32 to vector<2x128xi32>
    %21 = arith.cmpi slt, %17, %20 : vector<2x128xi32>
    %c0_i32_11 = arith.constant 0 : i32
    %22 = arith.cmpi slt, %15, %c0_i32_11 : i32
    %23 = vector.broadcast %22 : i1 to vector<2x128xi1>
    %24 = vector.broadcast %23 : vector<2x128xi1> to vector<2x128xi1>
    %25 = arith.xori %21, %24 : vector<2x128xi1>
    %26 = arith.andi %25, %19 : vector<2x128xi1>
    %27 = vector.broadcast %15 : i32 to vector<2x128xi32>
    %28 = arith.addi %17, %27 : vector<2x128xi32>
    %29 = arith.select %26, %28, %17 : vector<2x128xi1>, vector<2x128xi32>
    %c0_i32_12 = arith.constant 0 : i32
    %30 = vector.broadcast %c0_i32_12 : i32 to vector<2x128xi32>
    %31 = arith.cmpi sgt, %29, %30 : vector<2x128xi32>
    %c15_i32 = arith.constant 15 : i32
    %32 = vector.broadcast %c15_i32 : i32 to vector<2x128xi32>
    %33 = arith.cmpi slt, %29, %32 : vector<2x128xi32>
    %c0_13 = arith.constant 0 : index
    %c0_14 = arith.constant 0 : index
    %c0_15 = arith.constant 0 : index
    %c0_16 = arith.constant 0 : index
    %34 = vector.load %arg1[%c0_13, %c0_14, %c0_15, %c0_16] : memref<1x4x2x128xf32, #tpu.memory_space<vmem>>, vector<1x1x2x128xf32>
    %35 = vector.shape_cast %34 : vector<1x1x2x128xf32> to vector<2x128xf32>
    %c0_17 = arith.constant 0 : index
    %c1_18 = arith.constant 1 : index
    %c0_19 = arith.constant 0 : index
    %c0_20 = arith.constant 0 : index
    %36 = vector.load %arg1[%c0_17, %c1_18, %c0_19, %c0_20] : memref<1x4x2x128xf32, #tpu.memory_space<vmem>>, vector<1x1x2x128xf32>
    %37 = vector.shape_cast %36 : vector<1x1x2x128xf32> to vector<2x128xf32>
    %c0_21 = arith.constant 0 : index
    %c2 = arith.constant 2 : index
    %c0_22 = arith.constant 0 : index
    %c0_23 = arith.constant 0 : index
    %38 = vector.load %arg1[%c0_21, %c2, %c0_22, %c0_23] : memref<1x4x2x128xf32, #tpu.memory_space<vmem>>, vector<1x1x2x128xf32>
    %39 = vector.shape_cast %38 : vector<1x1x2x128xf32> to vector<2x128xf32>
    %c0_24 = arith.constant 0 : index
    %c3 = arith.constant 3 : index
    %c0_25 = arith.constant 0 : index
    %c0_26 = arith.constant 0 : index
    %40 = vector.load %arg1[%c0_24, %c3, %c0_25, %c0_26] : memref<1x4x2x128xf32, #tpu.memory_space<vmem>>, vector<1x1x2x128xf32>
    %41 = vector.shape_cast %40 : vector<1x1x2x128xf32> to vector<2x128xf32>
    %42 = arith.addf %35, %37 : vector<2x128xf32>
    %43 = arith.addf %42, %39 : vector<2x128xf32>
    %44 = arith.addf %43, %41 : vector<2x128xf32>
    %cst_27 = arith.constant dense<0.000000e+00> : vector<2xf32>
    %45 = vector.multi_reduction <add>, %44, %cst_27 [1] : vector<2x128xf32> to vector<2xf32>
    %46 = vector.shape_cast %45 : vector<2xf32> to vector<2x1xf32>
    %cst_28 = arith.constant dense<0.000000e+00> : vector<1xf32>
    %47 = vector.multi_reduction <add>, %46, %cst_28 [0] : vector<2x1xf32> to vector<1xf32>
    %48 = vector.shape_cast %47 : vector<1xf32> to vector<1x1xf32>
    %cst_29 = arith.constant 9.765625E-4 : f32
    %49 = vector.broadcast %cst_29 : f32 to vector<1x1xf32>
    %50 = arith.mulf %48, %49 : vector<1x1xf32>
    %51 = vector.broadcast %50 : vector<1x1xf32> to vector<2x128xf32>
    %52 = arith.subf %35, %51 : vector<2x128xf32>
    %53 = arith.mulf %52, %52 : vector<2x128xf32>
    %54 = vector.broadcast %50 : vector<1x1xf32> to vector<2x128xf32>
    %55 = arith.subf %37, %54 : vector<2x128xf32>
    %56 = arith.mulf %55, %55 : vector<2x128xf32>
    %57 = arith.addf %53, %56 : vector<2x128xf32>
    %58 = vector.broadcast %50 : vector<1x1xf32> to vector<2x128xf32>
    %59 = arith.subf %39, %58 : vector<2x128xf32>
    %60 = arith.mulf %59, %59 : vector<2x128xf32>
    %61 = arith.addf %57, %60 : vector<2x128xf32>
    %62 = vector.broadcast %50 : vector<1x1xf32> to vector<2x128xf32>
    %63 = arith.subf %41, %62 : vector<2x128xf32>
    %64 = arith.mulf %63, %63 : vector<2x128xf32>
    %65 = arith.addf %61, %64 : vector<2x128xf32>
    %cst_30 = arith.constant dense<0.000000e+00> : vector<2xf32>
    %66 = vector.multi_reduction <add>, %65, %cst_30 [1] : vector<2x128xf32> to vector<2xf32>
    %67 = vector.shape_cast %66 : vector<2xf32> to vector<2x1xf32>
    %cst_31 = arith.constant dense<0.000000e+00> : vector<1xf32>
    %68 = vector.multi_reduction <add>, %67, %cst_31 [0] : vector<2x1xf32> to vector<1xf32>
    %69 = vector.shape_cast %68 : vector<1xf32> to vector<1x1xf32>
    %cst_32 = arith.constant 9.765625E-4 : f32
    %70 = vector.broadcast %cst_32 : f32 to vector<1x1xf32>
    %71 = arith.mulf %69, %70 : vector<1x1xf32>
    %cst_33 = arith.constant 9.99999974E-6 : f32
    %72 = vector.broadcast %cst_33 : f32 to vector<1x1xf32>
    %73 = arith.addf %71, %72 : vector<1x1xf32>
    %74 = math.rsqrt %73 : vector<1x1xf32>
    %75 = vector.broadcast %50 : vector<1x1xf32> to vector<2x128xf32>
    %76 = arith.subf %35, %75 : vector<2x128xf32>
    %77 = vector.broadcast %74 : vector<1x1xf32> to vector<2x128xf32>
    %78 = arith.mulf %76, %77 : vector<2x128xf32>
    %79 = vector.broadcast %50 : vector<1x1xf32> to vector<2x128xf32>
    %80 = arith.subf %37, %79 : vector<2x128xf32>
    %81 = vector.broadcast %74 : vector<1x1xf32> to vector<2x128xf32>
    %82 = arith.mulf %80, %81 : vector<2x128xf32>
    %83 = vector.broadcast %50 : vector<1x1xf32> to vector<2x128xf32>
    %84 = arith.subf %39, %83 : vector<2x128xf32>
    %85 = vector.broadcast %74 : vector<1x1xf32> to vector<2x128xf32>
    %86 = arith.mulf %84, %85 : vector<2x128xf32>
    %87 = vector.broadcast %50 : vector<1x1xf32> to vector<2x128xf32>
    %88 = arith.subf %41, %87 : vector<2x128xf32>
    %89 = vector.broadcast %74 : vector<1x1xf32> to vector<2x128xf32>
    %90 = arith.mulf %88, %89 : vector<2x128xf32>
    %91 = arith.addf %78, %35 : vector<2x128xf32>
    %92 = arith.addf %82, %37 : vector<2x128xf32>
    %93 = arith.addf %86, %39 : vector<2x128xf32>
    %94 = arith.addf %90, %41 : vector<2x128xf32>
    %c0_34 = arith.constant 0 : index
    %95 = memref.load %arg2[%c0_34] : memref<146xf32, #tpu.memory_space<smem>>
    %96 = vector.broadcast %95 : f32 to vector<2x128xf32>
    %97 = arith.mulf %96, %78 : vector<2x128xf32>
    %c1_35 = arith.constant 1 : index
    %98 = memref.load %arg2[%c1_35] : memref<146xf32, #tpu.memory_space<smem>>
    %99 = vector.broadcast %98 : f32 to vector<2x128xf32>
    %100 = arith.mulf %99, %82 : vector<2x128xf32>
    %101 = arith.addf %97, %100 : vector<2x128xf32>
    %c2_36 = arith.constant 2 : index
    %102 = memref.load %arg2[%c2_36] : memref<146xf32, #tpu.memory_space<smem>>
    %103 = vector.broadcast %102 : f32 to vector<2x128xf32>
    %104 = arith.mulf %103, %86 : vector<2x128xf32>
    %105 = arith.addf %101, %104 : vector<2x128xf32>
    %c3_37 = arith.constant 3 : index
    %106 = memref.load %arg2[%c3_37] : memref<146xf32, #tpu.memory_space<smem>>
    %107 = vector.broadcast %106 : f32 to vector<2x128xf32>
    %108 = arith.mulf %107, %90 : vector<2x128xf32>
    %109 = arith.addf %105, %108 : vector<2x128xf32>
    %c4 = arith.constant 4 : index
    %110 = memref.load %arg2[%c4] : memref<146xf32, #tpu.memory_space<smem>>
    %111 = vector.broadcast %110 : f32 to vector<2x128xf32>
    %112 = arith.mulf %111, %78 : vector<2x128xf32>
    %c5 = arith.constant 5 : index
    %113 = memref.load %arg2[%c5] : memref<146xf32, #tpu.memory_space<smem>>
    %114 = vector.broadcast %113 : f32 to vector<2x128xf32>
    %115 = arith.mulf %114, %82 : vector<2x128xf32>
    %116 = arith.addf %112, %115 : vector<2x128xf32>
    %c6 = arith.constant 6 : index
    %117 = memref.load %arg2[%c6] : memref<146xf32, #tpu.memory_space<smem>>
    %118 = vector.broadcast %117 : f32 to vector<2x128xf32>
    %119 = arith.mulf %118, %86 : vector<2x128xf32>
    %120 = arith.addf %116, %119 : vector<2x128xf32>
    %c7 = arith.constant 7 : index
    %121 = memref.load %arg2[%c7] : memref<146xf32, #tpu.memory_space<smem>>
    %122 = vector.broadcast %121 : f32 to vector<2x128xf32>
    %123 = arith.mulf %122, %90 : vector<2x128xf32>
    %124 = arith.addf %120, %123 : vector<2x128xf32>
    %cst_38 = arith.constant 0.000000e+00 : f32
    %125 = vector.broadcast %cst_38 : f32 to vector<2x128xf32>
    %126 = arith.cmpf oge, %109, %125 : vector<2x128xf32>
    %cst_39 = arith.constant 2.000000e-01 : f32
    %127 = vector.broadcast %cst_39 : f32 to vector<2x128xf32>
    %128 = arith.mulf %127, %109 : vector<2x128xf32>
    %129 = arith.select %126, %109, %128 : vector<2x128xi1>, vector<2x128xf32>
    %cst_40 = arith.constant 0.000000e+00 : f32
    %130 = vector.broadcast %cst_40 : f32 to vector<2x128xf32>
    %131 = arith.cmpf oge, %124, %130 : vector<2x128xf32>
    %cst_41 = arith.constant 2.000000e-01 : f32
    %132 = vector.broadcast %cst_41 : f32 to vector<2x128xf32>
    %133 = arith.mulf %132, %124 : vector<2x128xf32>
    %134 = arith.select %131, %124, %133 : vector<2x128xi1>, vector<2x128xf32>
    %c8 = arith.constant 8 : index
    %135 = memref.load %arg2[%c8] : memref<146xf32, #tpu.memory_space<smem>>
    %136 = vector.broadcast %135 : f32 to vector<2x128xf32>
    %137 = arith.mulf %136, %78 : vector<2x128xf32>
    %c9 = arith.constant 9 : index
    %138 = memref.load %arg2[%c9] : memref<146xf32, #tpu.memory_space<smem>>
    %139 = vector.broadcast %138 : f32 to vector<2x128xf32>
    %140 = arith.mulf %139, %82 : vector<2x128xf32>
    %141 = arith.addf %137, %140 : vector<2x128xf32>
    %c10 = arith.constant 10 : index
    %142 = memref.load %arg2[%c10] : memref<146xf32, #tpu.memory_space<smem>>
    %143 = vector.broadcast %142 : f32 to vector<2x128xf32>
    %144 = arith.mulf %143, %86 : vector<2x128xf32>
    %145 = arith.addf %141, %144 : vector<2x128xf32>
    %c11 = arith.constant 11 : index
    %146 = memref.load %arg2[%c11] : memref<146xf32, #tpu.memory_space<smem>>
    %147 = vector.broadcast %146 : f32 to vector<2x128xf32>
    %148 = arith.mulf %147, %90 : vector<2x128xf32>
    %149 = arith.addf %145, %148 : vector<2x128xf32>
    %c12 = arith.constant 12 : index
    %150 = memref.load %arg2[%c12] : memref<146xf32, #tpu.memory_space<smem>>
    %151 = vector.broadcast %150 : f32 to vector<2x128xf32>
    %152 = arith.mulf %151, %78 : vector<2x128xf32>
    %c13 = arith.constant 13 : index
    %153 = memref.load %arg2[%c13] : memref<146xf32, #tpu.memory_space<smem>>
    %154 = vector.broadcast %153 : f32 to vector<2x128xf32>
    %155 = arith.mulf %154, %82 : vector<2x128xf32>
    %156 = arith.addf %152, %155 : vector<2x128xf32>
    %c14 = arith.constant 14 : index
    %157 = memref.load %arg2[%c14] : memref<146xf32, #tpu.memory_space<smem>>
    %158 = vector.broadcast %157 : f32 to vector<2x128xf32>
    %159 = arith.mulf %158, %86 : vector<2x128xf32>
    %160 = arith.addf %156, %159 : vector<2x128xf32>
    %c15 = arith.constant 15 : index
    %161 = memref.load %arg2[%c15] : memref<146xf32, #tpu.memory_space<smem>>
    %162 = vector.broadcast %161 : f32 to vector<2x128xf32>
    %163 = arith.mulf %162, %90 : vector<2x128xf32>
    %164 = arith.addf %160, %163 : vector<2x128xf32>
    %cst_42 = arith.constant 0.000000e+00 : f32
    %165 = vector.broadcast %cst_42 : f32 to vector<2x128xf32>
    %166 = arith.cmpf oge, %149, %165 : vector<2x128xf32>
    %cst_43 = arith.constant 2.000000e-01 : f32
    %167 = vector.broadcast %cst_43 : f32 to vector<2x128xf32>
    %168 = arith.mulf %167, %149 : vector<2x128xf32>
    %169 = arith.select %166, %149, %168 : vector<2x128xi1>, vector<2x128xf32>
    %cst_44 = arith.constant 0.000000e+00 : f32
    %170 = vector.broadcast %cst_44 : f32 to vector<2x128xf32>
    %171 = arith.cmpf oge, %164, %170 : vector<2x128xf32>
    %cst_45 = arith.constant 2.000000e-01 : f32
    %172 = vector.broadcast %cst_45 : f32 to vector<2x128xf32>
    %173 = arith.mulf %172, %164 : vector<2x128xf32>
    %174 = arith.select %171, %164, %173 : vector<2x128xi1>, vector<2x128xf32>
    %c16 = arith.constant 16 : index
    %175 = memref.load %arg2[%c16] : memref<146xf32, #tpu.memory_space<smem>>
    %176 = vector.broadcast %175 : f32 to vector<2x128xf32>
    %177 = arith.mulf %176, %129 : vector<2x128xf32>
    %c17 = arith.constant 17 : index
    %178 = memref.load %arg2[%c17] : memref<146xf32, #tpu.memory_space<smem>>
    %179 = vector.broadcast %178 : f32 to vector<2x128xf32>
    %180 = arith.mulf %179, %134 : vector<2x128xf32>
    %181 = arith.addf %177, %180 : vector<2x128xf32>
    %c18 = arith.constant 18 : index
    %182 = memref.load %arg2[%c18] : memref<146xf32, #tpu.memory_space<smem>>
    %183 = vector.broadcast %182 : f32 to vector<2x128xf32>
    %184 = arith.mulf %183, %129 : vector<2x128xf32>
    %c19 = arith.constant 19 : index
    %185 = memref.load %arg2[%c19] : memref<146xf32, #tpu.memory_space<smem>>
    %186 = vector.broadcast %185 : f32 to vector<2x128xf32>
    %187 = arith.mulf %186, %134 : vector<2x128xf32>
    %188 = arith.addf %184, %187 : vector<2x128xf32>
    %c20 = arith.constant 20 : index
    %189 = memref.load %arg2[%c20] : memref<146xf32, #tpu.memory_space<smem>>
    %190 = vector.broadcast %189 : f32 to vector<2x128xf32>
    %191 = arith.addf %181, %190 : vector<2x128xf32>
    %192 = arith.negf %191 : vector<2x128xf32>
    %193 = math.exp %192 : vector<2x128xf32>
    %cst_46 = arith.constant 1.000000e+00 : f32
    %194 = vector.broadcast %cst_46 : f32 to vector<2x128xf32>
    %195 = arith.addf %194, %193 : vector<2x128xf32>
    %196 = arith.divf %194, %195 : vector<2x128xf32>
    %c21 = arith.constant 21 : index
    %197 = memref.load %arg2[%c21] : memref<146xf32, #tpu.memory_space<smem>>
    %198 = vector.broadcast %197 : f32 to vector<2x128xf32>
    %199 = arith.addf %188, %198 : vector<2x128xf32>
    %200 = arith.negf %199 : vector<2x128xf32>
    %201 = math.exp %200 : vector<2x128xf32>
    %cst_47 = arith.constant 1.000000e+00 : f32
    %202 = vector.broadcast %cst_47 : f32 to vector<2x128xf32>
    %203 = arith.addf %202, %201 : vector<2x128xf32>
    %204 = arith.divf %202, %203 : vector<2x128xf32>
    %c0_48 = arith.constant 0 : index
    %c0_49 = arith.constant 0 : index
    %c17_50 = arith.constant 17 : index
    %205 = vector.load %arg4[%c0_48, %c0_49, %c17_50] : memref<2x2x162xf32, #tpu.memory_space<vmem>>, vector<1x2x128xf32>
    %206 = vector.shape_cast %205 : vector<1x2x128xf32> to vector<2x128xf32>
    %207 = vector.shape_cast %129 : vector<2x128xf32> to vector<1x2x128xf32>
    tpu.vector_store %arg4[%c0_48, %c0_49, %c17_50], %207 {strides = array<i32>} : memref<2x2x162xf32, #tpu.memory_space<vmem>>, vector<1x2x128xf32>,
    %c0_51 = arith.constant 0 : index
    %c0_52 = arith.constant 0 : index
    %c128 = arith.constant 128 : index
    %208 = vector.load %arg4[%c0_51, %c0_52, %c128] : memref<2x2x162xf32, #tpu.memory_space<vmem>>, vector<1x1x17xf32>
    %209 = vector.shape_cast %208 : vector<1x1x17xf32> to vector<1x17xf32>
    %c0_53 = arith.constant 0 : index
    %c1_54 = arith.constant 1 : index
    %c0_55 = arith.constant 0 : index
    %210 = vector.load %arg4[%c0_53, %c1_54, %c0_55] : memref<2x2x162xf32, #tpu.memory_space<vmem>>, vector<1x1x17xf32>
    %211 = vector.shape_cast %210 : vector<1x1x17xf32> to vector<1x17xf32>
    %212 = vector.shape_cast %209 : vector<1x17xf32> to vector<1x1x17xf32>
    tpu.vector_store %arg4[%c0_53, %c1_54, %c0_55], %212 {strides = array<i32>} : memref<2x2x162xf32, #tpu.memory_space<vmem>>, vector<1x1x17xf32>,
    %c0_56 = arith.constant 0 : index
    %c1_57 = arith.constant 1 : index
    %c17_58 = arith.constant 17 : index
    %213 = vector.load %arg4[%c0_56, %c1_57, %c17_58] : memref<2x2x162xf32, #tpu.memory_space<vmem>>, vector<1x1x17xf32>
    %214 = vector.shape_cast %213 : vector<1x1x17xf32> to vector<1x17xf32>
    %c0_59 = arith.constant 0 : index
    %c0_60 = arith.constant 0 : index
    %c145_61 = arith.constant 145 : index
    %215 = vector.load %arg4[%c0_59, %c0_60, %c145_61] : memref<2x2x162xf32, #tpu.memory_space<vmem>>, vector<1x1x17xf32>
    %216 = vector.shape_cast %215 : vector<1x1x17xf32> to vector<1x17xf32>
    %217 = vector.shape_cast %214 : vector<1x17xf32> to vector<1x1x17xf32>
    tpu.vector_store %arg4[%c0_59, %c0_60, %c145_61], %217 {strides = array<i32>} : memref<2x2x162xf32, #tpu.memory_space<vmem>>, vector<1x1x17xf32>,
    %c1_62 = arith.constant 1 : index
    %c0_63 = arith.constant 0 : index
    %c17_64 = arith.constant 17 : index
    %218 = vector.load %arg4[%c1_62, %c0_63, %c17_64] : memref<2x2x162xf32, #tpu.memory_space<vmem>>, vector<1x2x128xf32>
    %219 = vector.shape_cast %218 : vector<1x2x128xf32> to vector<2x128xf32>
    %220 = vector.shape_cast %134 : vector<2x128xf32> to vector<1x2x128xf32>
    tpu.vector_store %arg4[%c1_62, %c0_63, %c17_64], %220 {strides = array<i32>} : memref<2x2x162xf32, #tpu.memory_space<vmem>>, vector<1x2x128xf32>,
    %c1_65 = arith.constant 1 : index
    %c0_66 = arith.constant 0 : index
    %c128_67 = arith.constant 128 : index
    %221 = vector.load %arg4[%c1_65, %c0_66, %c128_67] : memref<2x2x162xf32, #tpu.memory_space<vmem>>, vector<1x1x17xf32>
    %222 = vector.shape_cast %221 : vector<1x1x17xf32> to vector<1x17xf32>
    %c1_68 = arith.constant 1 : index
    %c1_69 = arith.constant 1 : index
    %c0_70 = arith.constant 0 : index
    %223 = vector.load %arg4[%c1_68, %c1_69, %c0_70] : memref<2x2x162xf32, #tpu.memory_space<vmem>>, vector<1x1x17xf32>
    %224 = vector.shape_cast %223 : vector<1x1x17xf32> to vector<1x17xf32>
    %225 = vector.shape_cast %222 : vector<1x17xf32> to vector<1x1x17xf32>
    tpu.vector_store %arg4[%c1_68, %c1_69, %c0_70], %225 {strides = array<i32>} : memref<2x2x162xf32, #tpu.memory_space<vmem>>, vector<1x1x17xf32>,
    %c1_71 = arith.constant 1 : index
    %c1_72 = arith.constant 1 : index
    %c17_73 = arith.constant 17 : index
    %226 = vector.load %arg4[%c1_71, %c1_72, %c17_73] : memref<2x2x162xf32, #tpu.memory_space<vmem>>, vector<1x1x17xf32>
    %227 = vector.shape_cast %226 : vector<1x1x17xf32> to vector<1x17xf32>
    %c1_74 = arith.constant 1 : index
    %c0_75 = arith.constant 0 : index
    %c145_76 = arith.constant 145 : index
    %228 = vector.load %arg4[%c1_74, %c0_75, %c145_76] : memref<2x2x162xf32, #tpu.memory_space<vmem>>, vector<1x1x17xf32>
    %229 = vector.shape_cast %228 : vector<1x1x17xf32> to vector<1x17xf32>
    %230 = vector.shape_cast %227 : vector<1x17xf32> to vector<1x1x17xf32>
    tpu.vector_store %arg4[%c1_74, %c0_75, %c145_76], %230 {strides = array<i32>} : memref<2x2x162xf32, #tpu.memory_space<vmem>>, vector<1x1x17xf32>,
    %c0_77 = arith.constant 0 : index
    %c0_78 = arith.constant 0 : index
    %c0_79 = arith.constant 0 : index
    %231 = vector.load %arg4[%c0_77, %c0_78, %c0_79] : memref<2x2x162xf32, #tpu.memory_space<vmem>>, vector<1x2x128xf32>
    %232 = vector.shape_cast %231 : vector<1x2x128xf32> to vector<2x128xf32>
    %cst_80 = arith.constant 0.000000e+00 : f32
    %233 = vector.broadcast %cst_80 : f32 to vector<2x128xf32>
    %234 = arith.select %31, %232, %233 : vector<2x128xi1>, vector<2x128xf32>
    %c22 = arith.constant 22 : index
    %235 = memref.load %arg2[%c22] : memref<146xf32, #tpu.memory_space<smem>>
    %236 = vector.broadcast %235 : f32 to vector<2x128xf32>
    %237 = arith.mulf %236, %234 : vector<2x128xf32>
    %c40 = arith.constant 40 : index
    %238 = memref.load %arg2[%c40] : memref<146xf32, #tpu.memory_space<smem>>
    %239 = vector.broadcast %238 : f32 to vector<2x128xf32>
    %240 = arith.mulf %239, %234 : vector<2x128xf32>
    %c0_81 = arith.constant 0 : index
    %c0_82 = arith.constant 0 : index
    %c1_83 = arith.constant 1 : index
    %241 = vector.load %arg4[%c0_81, %c0_82, %c1_83] : memref<2x2x162xf32, #tpu.memory_space<vmem>>, vector<1x2x128xf32>
    %242 = vector.shape_cast %241 : vector<1x2x128xf32> to vector<2x128xf32>
    %c23 = arith.constant 23 : index
    %243 = memref.load %arg2[%c23] : memref<146xf32, #tpu.memory_space<smem>>
    %244 = vector.broadcast %243 : f32 to vector<2x128xf32>
    %245 = arith.mulf %244, %242 : vector<2x128xf32>
    %246 = arith.addf %237, %245 : vector<2x128xf32>
    %c41 = arith.constant 41 : index
    %247 = memref.load %arg2[%c41] : memref<146xf32, #tpu.memory_space<smem>>
    %248 = vector.broadcast %247 : f32 to vector<2x128xf32>
    %249 = arith.mulf %248, %242 : vector<2x128xf32>
    %250 = arith.addf %240, %249 : vector<2x128xf32>
    %c0_84 = arith.constant 0 : index
    %c0_85 = arith.constant 0 : index
    %c2_86 = arith.constant 2 : index
    %251 = vector.load %arg4[%c0_84, %c0_85, %c2_86] : memref<2x2x162xf32, #tpu.memory_space<vmem>>, vector<1x2x128xf32>
    %252 = vector.shape_cast %251 : vector<1x2x128xf32> to vector<2x128xf32>
    %cst_87 = arith.constant 0.000000e+00 : f32
    %253 = vector.broadcast %cst_87 : f32 to vector<2x128xf32>
    %254 = arith.select %33, %252, %253 : vector<2x128xi1>, vector<2x128xf32>
    %c24 = arith.constant 24 : index
    %255 = memref.load %arg2[%c24] : memref<146xf32, #tpu.memory_space<smem>>
    %256 = vector.broadcast %255 : f32 to vector<2x128xf32>
    %257 = arith.mulf %256, %254 : vector<2x128xf32>
    %258 = arith.addf %246, %257 : vector<2x128xf32>
    %c42 = arith.constant 42 : index
    %259 = memref.load %arg2[%c42] : memref<146xf32, #tpu.memory_space<smem>>
    %260 = vector.broadcast %259 : f32 to vector<2x128xf32>
    %261 = arith.mulf %260, %254 : vector<2x128xf32>
    %262 = arith.addf %250, %261 : vector<2x128xf32>
    %c0_88 = arith.constant 0 : index
    %c0_89 = arith.constant 0 : index
    %c16_90 = arith.constant 16 : index
    %263 = vector.load %arg4[%c0_88, %c0_89, %c16_90] : memref<2x2x162xf32, #tpu.memory_space<vmem>>, vector<1x2x128xf32>
    %264 = vector.shape_cast %263 : vector<1x2x128xf32> to vector<2x128xf32>
    %cst_91 = arith.constant 0.000000e+00 : f32
    %265 = vector.broadcast %cst_91 : f32 to vector<2x128xf32>
    %266 = arith.select %31, %264, %265 : vector<2x128xi1>, vector<2x128xf32>
    %c25 = arith.constant 25 : index
    %267 = memref.load %arg2[%c25] : memref<146xf32, #tpu.memory_space<smem>>
    %268 = vector.broadcast %267 : f32 to vector<2x128xf32>
    %269 = arith.mulf %268, %266 : vector<2x128xf32>
    %270 = arith.addf %258, %269 : vector<2x128xf32>
    %c43 = arith.constant 43 : index
    %271 = memref.load %arg2[%c43] : memref<146xf32, #tpu.memory_space<smem>>
    %272 = vector.broadcast %271 : f32 to vector<2x128xf32>
    %273 = arith.mulf %272, %266 : vector<2x128xf32>
    %274 = arith.addf %262, %273 : vector<2x128xf32>
    %c26 = arith.constant 26 : index
    %275 = memref.load %arg2[%c26] : memref<146xf32, #tpu.memory_space<smem>>
    %276 = vector.broadcast %275 : f32 to vector<2x128xf32>
    %277 = arith.mulf %276, %129 : vector<2x128xf32>
    %278 = arith.addf %270, %277 : vector<2x128xf32>
    %c44 = arith.constant 44 : index
    %279 = memref.load %arg2[%c44] : memref<146xf32, #tpu.memory_space<smem>>
    %280 = vector.broadcast %279 : f32 to vector<2x128xf32>
    %281 = arith.mulf %280, %129 : vector<2x128xf32>
    %282 = arith.addf %274, %281 : vector<2x128xf32>
    %c0_92 = arith.constant 0 : index
    %c0_93 = arith.constant 0 : index
    %c18_94 = arith.constant 18 : index
    %283 = vector.load %arg4[%c0_92, %c0_93, %c18_94] : memref<2x2x162xf32, #tpu.memory_space<vmem>>, vector<1x2x128xf32>
    %284 = vector.shape_cast %283 : vector<1x2x128xf32> to vector<2x128xf32>
    %cst_95 = arith.constant 0.000000e+00 : f32
    %285 = vector.broadcast %cst_95 : f32 to vector<2x128xf32>
    %286 = arith.select %33, %284, %285 : vector<2x128xi1>, vector<2x128xf32>
    %c27 = arith.constant 27 : index
    %287 = memref.load %arg2[%c27] : memref<146xf32, #tpu.memory_space<smem>>
    %288 = vector.broadcast %287 : f32 to vector<2x128xf32>
    %289 = arith.mulf %288, %286 : vector<2x128xf32>
    %290 = arith.addf %278, %289 : vector<2x128xf32>
    %c45 = arith.constant 45 : index
    %291 = memref.load %arg2[%c45] : memref<146xf32, #tpu.memory_space<smem>>
    %292 = vector.broadcast %291 : f32 to vector<2x128xf32>
    %293 = arith.mulf %292, %286 : vector<2x128xf32>
    %294 = arith.addf %282, %293 : vector<2x128xf32>
    %c0_96 = arith.constant 0 : index
    %c0_97 = arith.constant 0 : index
    %c32 = arith.constant 32 : index
    %295 = vector.load %arg4[%c0_96, %c0_97, %c32] : memref<2x2x162xf32, #tpu.memory_space<vmem>>, vector<1x2x128xf32>
    %296 = vector.shape_cast %295 : vector<1x2x128xf32> to vector<2x128xf32>
    %cst_98 = arith.constant 0.000000e+00 : f32
    %297 = vector.broadcast %cst_98 : f32 to vector<2x128xf32>
    %298 = arith.select %31, %296, %297 : vector<2x128xi1>, vector<2x128xf32>
    %c28 = arith.constant 28 : index
    %299 = memref.load %arg2[%c28] : memref<146xf32, #tpu.memory_space<smem>>
    %300 = vector.broadcast %299 : f32 to vector<2x128xf32>
    %301 = arith.mulf %300, %298 : vector<2x128xf32>
    %302 = arith.addf %290, %301 : vector<2x128xf32>
    %c46 = arith.constant 46 : index
    %303 = memref.load %arg2[%c46] : memref<146xf32, #tpu.memory_space<smem>>
    %304 = vector.broadcast %303 : f32 to vector<2x128xf32>
    %305 = arith.mulf %304, %298 : vector<2x128xf32>
    %306 = arith.addf %294, %305 : vector<2x128xf32>
    %c0_99 = arith.constant 0 : index
    %c0_100 = arith.constant 0 : index
    %c33 = arith.constant 33 : index
    %307 = vector.load %arg4[%c0_99, %c0_100, %c33] : memref<2x2x162xf32, #tpu.memory_space<vmem>>, vector<1x2x128xf32>
    %308 = vector.shape_cast %307 : vector<1x2x128xf32> to vector<2x128xf32>
    %c29 = arith.constant 29 : index
    %309 = memref.load %arg2[%c29] : memref<146xf32, #tpu.memory_space<smem>>
    %310 = vector.broadcast %309 : f32 to vector<2x128xf32>
    %311 = arith.mulf %310, %308 : vector<2x128xf32>
    %312 = arith.addf %302, %311 : vector<2x128xf32>
    %c47 = arith.constant 47 : index
    %313 = memref.load %arg2[%c47] : memref<146xf32, #tpu.memory_space<smem>>
    %314 = vector.broadcast %313 : f32 to vector<2x128xf32>
    %315 = arith.mulf %314, %308 : vector<2x128xf32>
    %316 = arith.addf %306, %315 : vector<2x128xf32>
    %c0_101 = arith.constant 0 : index
    %c0_102 = arith.constant 0 : index
    %c34 = arith.constant 34 : index
    %317 = vector.load %arg4[%c0_101, %c0_102, %c34] : memref<2x2x162xf32, #tpu.memory_space<vmem>>, vector<1x2x128xf32>
    %318 = vector.shape_cast %317 : vector<1x2x128xf32> to vector<2x128xf32>
    %cst_103 = arith.constant 0.000000e+00 : f32
    %319 = vector.broadcast %cst_103 : f32 to vector<2x128xf32>
    %320 = arith.select %33, %318, %319 : vector<2x128xi1>, vector<2x128xf32>
    %c30 = arith.constant 30 : index
    %321 = memref.load %arg2[%c30] : memref<146xf32, #tpu.memory_space<smem>>
    %322 = vector.broadcast %321 : f32 to vector<2x128xf32>
    %323 = arith.mulf %322, %320 : vector<2x128xf32>
    %324 = arith.addf %312, %323 : vector<2x128xf32>
    %c48 = arith.constant 48 : index
    %325 = memref.load %arg2[%c48] : memref<146xf32, #tpu.memory_space<smem>>
    %326 = vector.broadcast %325 : f32 to vector<2x128xf32>
    %327 = arith.mulf %326, %320 : vector<2x128xf32>
    %328 = arith.addf %316, %327 : vector<2x128xf32>
    %c1_104 = arith.constant 1 : index
    %c0_105 = arith.constant 0 : index
    %c0_106 = arith.constant 0 : index
    %329 = vector.load %arg4[%c1_104, %c0_105, %c0_106] : memref<2x2x162xf32, #tpu.memory_space<vmem>>, vector<1x2x128xf32>
    %330 = vector.shape_cast %329 : vector<1x2x128xf32> to vector<2x128xf32>
    %cst_107 = arith.constant 0.000000e+00 : f32
    %331 = vector.broadcast %cst_107 : f32 to vector<2x128xf32>
    %332 = arith.select %31, %330, %331 : vector<2x128xi1>, vector<2x128xf32>
    %c31 = arith.constant 31 : index
    %333 = memref.load %arg2[%c31] : memref<146xf32, #tpu.memory_space<smem>>
    %334 = vector.broadcast %333 : f32 to vector<2x128xf32>
    %335 = arith.mulf %334, %332 : vector<2x128xf32>
    %336 = arith.addf %324, %335 : vector<2x128xf32>
    %c49 = arith.constant 49 : index
    %337 = memref.load %arg2[%c49] : memref<146xf32, #tpu.memory_space<smem>>
    %338 = vector.broadcast %337 : f32 to vector<2x128xf32>
    %339 = arith.mulf %338, %332 : vector<2x128xf32>
    %340 = arith.addf %328, %339 : vector<2x128xf32>
    %c1_108 = arith.constant 1 : index
    %c0_109 = arith.constant 0 : index
    %c1_110 = arith.constant 1 : index
    %341 = vector.load %arg4[%c1_108, %c0_109, %c1_110] : memref<2x2x162xf32, #tpu.memory_space<vmem>>, vector<1x2x128xf32>
    %342 = vector.shape_cast %341 : vector<1x2x128xf32> to vector<2x128xf32>
    %c32_111 = arith.constant 32 : index
    %343 = memref.load %arg2[%c32_111] : memref<146xf32, #tpu.memory_space<smem>>
    %344 = vector.broadcast %343 : f32 to vector<2x128xf32>
    %345 = arith.mulf %344, %342 : vector<2x128xf32>
    %346 = arith.addf %336, %345 : vector<2x128xf32>
    %c50 = arith.constant 50 : index
    %347 = memref.load %arg2[%c50] : memref<146xf32, #tpu.memory_space<smem>>
    %348 = vector.broadcast %347 : f32 to vector<2x128xf32>
    %349 = arith.mulf %348, %342 : vector<2x128xf32>
    %350 = arith.addf %340, %349 : vector<2x128xf32>
    %c1_112 = arith.constant 1 : index
    %c0_113 = arith.constant 0 : index
    %c2_114 = arith.constant 2 : index
    %351 = vector.load %arg4[%c1_112, %c0_113, %c2_114] : memref<2x2x162xf32, #tpu.memory_space<vmem>>, vector<1x2x128xf32>
    %352 = vector.shape_cast %351 : vector<1x2x128xf32> to vector<2x128xf32>
    %cst_115 = arith.constant 0.000000e+00 : f32
    %353 = vector.broadcast %cst_115 : f32 to vector<2x128xf32>
    %354 = arith.select %33, %352, %353 : vector<2x128xi1>, vector<2x128xf32>
    %c33_116 = arith.constant 33 : index
    %355 = memref.load %arg2[%c33_116] : memref<146xf32, #tpu.memory_space<smem>>
    %356 = vector.broadcast %355 : f32 to vector<2x128xf32>
    %357 = arith.mulf %356, %354 : vector<2x128xf32>
    %358 = arith.addf %346, %357 : vector<2x128xf32>
    %c51 = arith.constant 51 : index
    %359 = memref.load %arg2[%c51] : memref<146xf32, #tpu.memory_space<smem>>
    %360 = vector.broadcast %359 : f32 to vector<2x128xf32>
    %361 = arith.mulf %360, %354 : vector<2x128xf32>
    %362 = arith.addf %350, %361 : vector<2x128xf32>
    %c1_117 = arith.constant 1 : index
    %c0_118 = arith.constant 0 : index
    %c16_119 = arith.constant 16 : index
    %363 = vector.load %arg4[%c1_117, %c0_118, %c16_119] : memref<2x2x162xf32, #tpu.memory_space<vmem>>, vector<1x2x128xf32>
    %364 = vector.shape_cast %363 : vector<1x2x128xf32> to vector<2x128xf32>
    %cst_120 = arith.constant 0.000000e+00 : f32
    %365 = vector.broadcast %cst_120 : f32 to vector<2x128xf32>
    %366 = arith.select %31, %364, %365 : vector<2x128xi1>, vector<2x128xf32>
    %c34_121 = arith.constant 34 : index
    %367 = memref.load %arg2[%c34_121] : memref<146xf32, #tpu.memory_space<smem>>
    %368 = vector.broadcast %367 : f32 to vector<2x128xf32>
    %369 = arith.mulf %368, %366 : vector<2x128xf32>
    %370 = arith.addf %358, %369 : vector<2x128xf32>
    %c52 = arith.constant 52 : index
    %371 = memref.load %arg2[%c52] : memref<146xf32, #tpu.memory_space<smem>>
    %372 = vector.broadcast %371 : f32 to vector<2x128xf32>
    %373 = arith.mulf %372, %366 : vector<2x128xf32>
    %374 = arith.addf %362, %373 : vector<2x128xf32>
    %c35 = arith.constant 35 : index
    %375 = memref.load %arg2[%c35] : memref<146xf32, #tpu.memory_space<smem>>
    %376 = vector.broadcast %375 : f32 to vector<2x128xf32>
    %377 = arith.mulf %376, %134 : vector<2x128xf32>
    %378 = arith.addf %370, %377 : vector<2x128xf32>
    %c53 = arith.constant 53 : index
    %379 = memref.load %arg2[%c53] : memref<146xf32, #tpu.memory_space<smem>>
    %380 = vector.broadcast %379 : f32 to vector<2x128xf32>
    %381 = arith.mulf %380, %134 : vector<2x128xf32>
    %382 = arith.addf %374, %381 : vector<2x128xf32>
    %c1_122 = arith.constant 1 : index
    %c0_123 = arith.constant 0 : index
    %c18_124 = arith.constant 18 : index
    %383 = vector.load %arg4[%c1_122, %c0_123, %c18_124] : memref<2x2x162xf32, #tpu.memory_space<vmem>>, vector<1x2x128xf32>
    %384 = vector.shape_cast %383 : vector<1x2x128xf32> to vector<2x128xf32>
    %cst_125 = arith.constant 0.000000e+00 : f32
    %385 = vector.broadcast %cst_125 : f32 to vector<2x128xf32>
    %386 = arith.select %33, %384, %385 : vector<2x128xi1>, vector<2x128xf32>
    %c36 = arith.constant 36 : index
    %387 = memref.load %arg2[%c36] : memref<146xf32, #tpu.memory_space<smem>>
    %388 = vector.broadcast %387 : f32 to vector<2x128xf32>
    %389 = arith.mulf %388, %386 : vector<2x128xf32>
    %390 = arith.addf %378, %389 : vector<2x128xf32>
    %c54 = arith.constant 54 : index
    %391 = memref.load %arg2[%c54] : memref<146xf32, #tpu.memory_space<smem>>
    %392 = vector.broadcast %391 : f32 to vector<2x128xf32>
    %393 = arith.mulf %392, %386 : vector<2x128xf32>
    %394 = arith.addf %382, %393 : vector<2x128xf32>
    %c1_126 = arith.constant 1 : index
    %c0_127 = arith.constant 0 : index
    %c32_128 = arith.constant 32 : index
    %395 = vector.load %arg4[%c1_126, %c0_127, %c32_128] : memref<2x2x162xf32, #tpu.memory_space<vmem>>, vector<1x2x128xf32>
    %396 = vector.shape_cast %395 : vector<1x2x128xf32> to vector<2x128xf32>
    %cst_129 = arith.constant 0.000000e+00 : f32
    %397 = vector.broadcast %cst_129 : f32 to vector<2x128xf32>
    %398 = arith.select %31, %396, %397 : vector<2x128xi1>, vector<2x128xf32>
    %c37 = arith.constant 37 : index
    %399 = memref.load %arg2[%c37] : memref<146xf32, #tpu.memory_space<smem>>
    %400 = vector.broadcast %399 : f32 to vector<2x128xf32>
    %401 = arith.mulf %400, %398 : vector<2x128xf32>
    %402 = arith.addf %390, %401 : vector<2x128xf32>
    %c55 = arith.constant 55 : index
    %403 = memref.load %arg2[%c55] : memref<146xf32, #tpu.memory_space<smem>>
    %404 = vector.broadcast %403 : f32 to vector<2x128xf32>
    %405 = arith.mulf %404, %398 : vector<2x128xf32>
    %406 = arith.addf %394, %405 : vector<2x128xf32>
    %c1_130 = arith.constant 1 : index
    %c0_131 = arith.constant 0 : index
    %c33_132 = arith.constant 33 : index
    %407 = vector.load %arg4[%c1_130, %c0_131, %c33_132] : memref<2x2x162xf32, #tpu.memory_space<vmem>>, vector<1x2x128xf32>
    %408 = vector.shape_cast %407 : vector<1x2x128xf32> to vector<2x128xf32>
    %c38 = arith.constant 38 : index
    %409 = memref.load %arg2[%c38] : memref<146xf32, #tpu.memory_space<smem>>
    %410 = vector.broadcast %409 : f32 to vector<2x128xf32>
    %411 = arith.mulf %410, %408 : vector<2x128xf32>
    %412 = arith.addf %402, %411 : vector<2x128xf32>
    %c56 = arith.constant 56 : index
    %413 = memref.load %arg2[%c56] : memref<146xf32, #tpu.memory_space<smem>>
    %414 = vector.broadcast %413 : f32 to vector<2x128xf32>
    %415 = arith.mulf %414, %408 : vector<2x128xf32>
    %416 = arith.addf %406, %415 : vector<2x128xf32>
    %c1_133 = arith.constant 1 : index
    %c0_134 = arith.constant 0 : index
    %c34_135 = arith.constant 34 : index
    %417 = vector.load %arg4[%c1_133, %c0_134, %c34_135] : memref<2x2x162xf32, #tpu.memory_space<vmem>>, vector<1x2x128xf32>
    %418 = vector.shape_cast %417 : vector<1x2x128xf32> to vector<2x128xf32>
    %cst_136 = arith.constant 0.000000e+00 : f32
    %419 = vector.broadcast %cst_136 : f32 to vector<2x128xf32>
    %420 = arith.select %33, %418, %419 : vector<2x128xi1>, vector<2x128xf32>
    %c39 = arith.constant 39 : index
    %421 = memref.load %arg2[%c39] : memref<146xf32, #tpu.memory_space<smem>>
    %422 = vector.broadcast %421 : f32 to vector<2x128xf32>
    %423 = arith.mulf %422, %420 : vector<2x128xf32>
    %424 = arith.addf %412, %423 : vector<2x128xf32>
    %c57 = arith.constant 57 : index
    %425 = memref.load %arg2[%c57] : memref<146xf32, #tpu.memory_space<smem>>
    %426 = vector.broadcast %425 : f32 to vector<2x128xf32>
    %427 = arith.mulf %426, %420 : vector<2x128xf32>
    %428 = arith.addf %416, %427 : vector<2x128xf32>
    %429 = arith.mulf %424, %196 : vector<2x128xf32>
    %430 = arith.mulf %428, %204 : vector<2x128xf32>
    %c0_137 = arith.constant 0 : index
    %c0_138 = arith.constant 0 : index
    %c17_139 = arith.constant 17 : index
    %431 = vector.load %arg4[%c0_137, %c0_138, %c17_139] : memref<2x2x162xf32, #tpu.memory_space<vmem>>, vector<1x2x128xf32>
    %432 = vector.shape_cast %431 : vector<1x2x128xf32> to vector<2x128xf32>
    %433 = vector.shape_cast %429 : vector<2x128xf32> to vector<1x2x128xf32>
    tpu.vector_store %arg4[%c0_137, %c0_138, %c17_139], %433 {strides = array<i32>} : memref<2x2x162xf32, #tpu.memory_space<vmem>>, vector<1x2x128xf32>,
    %c0_140 = arith.constant 0 : index
    %c0_141 = arith.constant 0 : index
    %c128_142 = arith.constant 128 : index
    %434 = vector.load %arg4[%c0_140, %c0_141, %c128_142] : memref<2x2x162xf32, #tpu.memory_space<vmem>>, vector<1x1x17xf32>
    %435 = vector.shape_cast %434 : vector<1x1x17xf32> to vector<1x17xf32>
    %c0_143 = arith.constant 0 : index
    %c1_144 = arith.constant 1 : index
    %c0_145 = arith.constant 0 : index
    %436 = vector.load %arg4[%c0_143, %c1_144, %c0_145] : memref<2x2x162xf32, #tpu.memory_space<vmem>>, vector<1x1x17xf32>
    %437 = vector.shape_cast %436 : vector<1x1x17xf32> to vector<1x17xf32>
    %438 = vector.shape_cast %435 : vector<1x17xf32> to vector<1x1x17xf32>
    tpu.vector_store %arg4[%c0_143, %c1_144, %c0_145], %438 {strides = array<i32>} : memref<2x2x162xf32, #tpu.memory_space<vmem>>, vector<1x1x17xf32>,
    %c0_146 = arith.constant 0 : index
    %c1_147 = arith.constant 1 : index
    %c17_148 = arith.constant 17 : index
    %439 = vector.load %arg4[%c0_146, %c1_147, %c17_148] : memref<2x2x162xf32, #tpu.memory_space<vmem>>, vector<1x1x17xf32>
    %440 = vector.shape_cast %439 : vector<1x1x17xf32> to vector<1x17xf32>
    %c0_149 = arith.constant 0 : index
    %c0_150 = arith.constant 0 : index
    %c145_151 = arith.constant 145 : index
    %441 = vector.load %arg4[%c0_149, %c0_150, %c145_151] : memref<2x2x162xf32, #tpu.memory_space<vmem>>, vector<1x1x17xf32>
    %442 = vector.shape_cast %441 : vector<1x1x17xf32> to vector<1x17xf32>
    %443 = vector.shape_cast %440 : vector<1x17xf32> to vector<1x1x17xf32>
    tpu.vector_store %arg4[%c0_149, %c0_150, %c145_151], %443 {strides = array<i32>} : memref<2x2x162xf32, #tpu.memory_space<vmem>>, vector<1x1x17xf32>,
    %c1_152 = arith.constant 1 : index
    %c0_153 = arith.constant 0 : index
    %c17_154 = arith.constant 17 : index
    %444 = vector.load %arg4[%c1_152, %c0_153, %c17_154] : memref<2x2x162xf32, #tpu.memory_space<vmem>>, vector<1x2x128xf32>
    %445 = vector.shape_cast %444 : vector<1x2x128xf32> to vector<2x128xf32>
    %446 = vector.shape_cast %430 : vector<2x128xf32> to vector<1x2x128xf32>
    tpu.vector_store %arg4[%c1_152, %c0_153, %c17_154], %446 {strides = array<i32>} : memref<2x2x162xf32, #tpu.memory_space<vmem>>, vector<1x2x128xf32>,
    %c1_155 = arith.constant 1 : index
    %c0_156 = arith.constant 0 : index
    %c128_157 = arith.constant 128 : index
    %447 = vector.load %arg4[%c1_155, %c0_156, %c128_157] : memref<2x2x162xf32, #tpu.memory_space<vmem>>, vector<1x1x17xf32>
    %448 = vector.shape_cast %447 : vector<1x1x17xf32> to vector<1x17xf32>
    %c1_158 = arith.constant 1 : index
    %c1_159 = arith.constant 1 : index
    %c0_160 = arith.constant 0 : index
    %449 = vector.load %arg4[%c1_158, %c1_159, %c0_160] : memref<2x2x162xf32, #tpu.memory_space<vmem>>, vector<1x1x17xf32>
    %450 = vector.shape_cast %449 : vector<1x1x17xf32> to vector<1x17xf32>
    %451 = vector.shape_cast %448 : vector<1x17xf32> to vector<1x1x17xf32>
    tpu.vector_store %arg4[%c1_158, %c1_159, %c0_160], %451 {strides = array<i32>} : memref<2x2x162xf32, #tpu.memory_space<vmem>>, vector<1x1x17xf32>,
    %c1_161 = arith.constant 1 : index
    %c1_162 = arith.constant 1 : index
    %c17_163 = arith.constant 17 : index
    %452 = vector.load %arg4[%c1_161, %c1_162, %c17_163] : memref<2x2x162xf32, #tpu.memory_space<vmem>>, vector<1x1x17xf32>
    %453 = vector.shape_cast %452 : vector<1x1x17xf32> to vector<1x17xf32>
    %c1_164 = arith.constant 1 : index
    %c0_165 = arith.constant 0 : index
    %c145_166 = arith.constant 145 : index
    %454 = vector.load %arg4[%c1_164, %c0_165, %c145_166] : memref<2x2x162xf32, #tpu.memory_space<vmem>>, vector<1x1x17xf32>
    %455 = vector.shape_cast %454 : vector<1x1x17xf32> to vector<1x17xf32>
    %456 = vector.shape_cast %453 : vector<1x17xf32> to vector<1x1x17xf32>
    tpu.vector_store %arg4[%c1_164, %c0_165, %c145_166], %456 {strides = array<i32>} : memref<2x2x162xf32, #tpu.memory_space<vmem>>, vector<1x1x17xf32>,
    %c0_167 = arith.constant 0 : index
    %c0_168 = arith.constant 0 : index
    %c0_169 = arith.constant 0 : index
    %457 = vector.load %arg4[%c0_167, %c0_168, %c0_169] : memref<2x2x162xf32, #tpu.memory_space<vmem>>, vector<1x2x128xf32>
    %458 = vector.shape_cast %457 : vector<1x2x128xf32> to vector<2x128xf32>
    %cst_170 = arith.constant 0.000000e+00 : f32
    %459 = vector.broadcast %cst_170 : f32 to vector<2x128xf32>
    %460 = arith.select %31, %458, %459 : vector<2x128xi1>, vector<2x128xf32>
    %c58 = arith.constant 58 : index
    %461 = memref.load %arg2[%c58] : memref<146xf32, #tpu.memory_space<smem>>
    %462 = vector.broadcast %461 : f32 to vector<2x128xf32>
    %463 = arith.mulf %462, %460 : vector<2x128xf32>
    %c76 = arith.constant 76 : index
    %464 = memref.load %arg2[%c76] : memref<146xf32, #tpu.memory_space<smem>>
    %465 = vector.broadcast %464 : f32 to vector<2x128xf32>
    %466 = arith.mulf %465, %460 : vector<2x128xf32>
    %c0_171 = arith.constant 0 : index
    %c0_172 = arith.constant 0 : index
    %c1_173 = arith.constant 1 : index
    %467 = vector.load %arg4[%c0_171, %c0_172, %c1_173] : memref<2x2x162xf32, #tpu.memory_space<vmem>>, vector<1x2x128xf32>
    %468 = vector.shape_cast %467 : vector<1x2x128xf32> to vector<2x128xf32>
    %c59 = arith.constant 59 : index
    %469 = memref.load %arg2[%c59] : memref<146xf32, #tpu.memory_space<smem>>
    %470 = vector.broadcast %469 : f32 to vector<2x128xf32>
    %471 = arith.mulf %470, %468 : vector<2x128xf32>
    %472 = arith.addf %463, %471 : vector<2x128xf32>
    %c77 = arith.constant 77 : index
    %473 = memref.load %arg2[%c77] : memref<146xf32, #tpu.memory_space<smem>>
    %474 = vector.broadcast %473 : f32 to vector<2x128xf32>
    %475 = arith.mulf %474, %468 : vector<2x128xf32>
    %476 = arith.addf %466, %475 : vector<2x128xf32>
    %c0_174 = arith.constant 0 : index
    %c0_175 = arith.constant 0 : index
    %c2_176 = arith.constant 2 : index
    %477 = vector.load %arg4[%c0_174, %c0_175, %c2_176] : memref<2x2x162xf32, #tpu.memory_space<vmem>>, vector<1x2x128xf32>
    %478 = vector.shape_cast %477 : vector<1x2x128xf32> to vector<2x128xf32>
    %cst_177 = arith.constant 0.000000e+00 : f32
    %479 = vector.broadcast %cst_177 : f32 to vector<2x128xf32>
    %480 = arith.select %33, %478, %479 : vector<2x128xi1>, vector<2x128xf32>
    %c60 = arith.constant 60 : index
    %481 = memref.load %arg2[%c60] : memref<146xf32, #tpu.memory_space<smem>>
    %482 = vector.broadcast %481 : f32 to vector<2x128xf32>
    %483 = arith.mulf %482, %480 : vector<2x128xf32>
    %484 = arith.addf %472, %483 : vector<2x128xf32>
    %c78 = arith.constant 78 : index
    %485 = memref.load %arg2[%c78] : memref<146xf32, #tpu.memory_space<smem>>
    %486 = vector.broadcast %485 : f32 to vector<2x128xf32>
    %487 = arith.mulf %486, %480 : vector<2x128xf32>
    %488 = arith.addf %476, %487 : vector<2x128xf32>
    %c0_178 = arith.constant 0 : index
    %c0_179 = arith.constant 0 : index
    %c16_180 = arith.constant 16 : index
    %489 = vector.load %arg4[%c0_178, %c0_179, %c16_180] : memref<2x2x162xf32, #tpu.memory_space<vmem>>, vector<1x2x128xf32>
    %490 = vector.shape_cast %489 : vector<1x2x128xf32> to vector<2x128xf32>
    %cst_181 = arith.constant 0.000000e+00 : f32
    %491 = vector.broadcast %cst_181 : f32 to vector<2x128xf32>
    %492 = arith.select %31, %490, %491 : vector<2x128xi1>, vector<2x128xf32>
    %c61 = arith.constant 61 : index
    %493 = memref.load %arg2[%c61] : memref<146xf32, #tpu.memory_space<smem>>
    %494 = vector.broadcast %493 : f32 to vector<2x128xf32>
    %495 = arith.mulf %494, %492 : vector<2x128xf32>
    %496 = arith.addf %484, %495 : vector<2x128xf32>
    %c79 = arith.constant 79 : index
    %497 = memref.load %arg2[%c79] : memref<146xf32, #tpu.memory_space<smem>>
    %498 = vector.broadcast %497 : f32 to vector<2x128xf32>
    %499 = arith.mulf %498, %492 : vector<2x128xf32>
    %500 = arith.addf %488, %499 : vector<2x128xf32>
    %c62 = arith.constant 62 : index
    %501 = memref.load %arg2[%c62] : memref<146xf32, #tpu.memory_space<smem>>
    %502 = vector.broadcast %501 : f32 to vector<2x128xf32>
    %503 = arith.mulf %502, %429 : vector<2x128xf32>
    %504 = arith.addf %496, %503 : vector<2x128xf32>
    %c80 = arith.constant 80 : index
    %505 = memref.load %arg2[%c80] : memref<146xf32, #tpu.memory_space<smem>>
    %506 = vector.broadcast %505 : f32 to vector<2x128xf32>
    %507 = arith.mulf %506, %429 : vector<2x128xf32>
    %508 = arith.addf %500, %507 : vector<2x128xf32>
    %c0_182 = arith.constant 0 : index
    %c0_183 = arith.constant 0 : index
    %c18_184 = arith.constant 18 : index
    %509 = vector.load %arg4[%c0_182, %c0_183, %c18_184] : memref<2x2x162xf32, #tpu.memory_space<vmem>>, vector<1x2x128xf32>
    %510 = vector.shape_cast %509 : vector<1x2x128xf32> to vector<2x128xf32>
    %cst_185 = arith.constant 0.000000e+00 : f32
    %511 = vector.broadcast %cst_185 : f32 to vector<2x128xf32>
    %512 = arith.select %33, %510, %511 : vector<2x128xi1>, vector<2x128xf32>
    %c63 = arith.constant 63 : index
    %513 = memref.load %arg2[%c63] : memref<146xf32, #tpu.memory_space<smem>>
    %514 = vector.broadcast %513 : f32 to vector<2x128xf32>
    %515 = arith.mulf %514, %512 : vector<2x128xf32>
    %516 = arith.addf %504, %515 : vector<2x128xf32>
    %c81 = arith.constant 81 : index
    %517 = memref.load %arg2[%c81] : memref<146xf32, #tpu.memory_space<smem>>
    %518 = vector.broadcast %517 : f32 to vector<2x128xf32>
    %519 = arith.mulf %518, %512 : vector<2x128xf32>
    %520 = arith.addf %508, %519 : vector<2x128xf32>
    %c0_186 = arith.constant 0 : index
    %c0_187 = arith.constant 0 : index
    %c32_188 = arith.constant 32 : index
    %521 = vector.load %arg4[%c0_186, %c0_187, %c32_188] : memref<2x2x162xf32, #tpu.memory_space<vmem>>, vector<1x2x128xf32>
    %522 = vector.shape_cast %521 : vector<1x2x128xf32> to vector<2x128xf32>
    %cst_189 = arith.constant 0.000000e+00 : f32
    %523 = vector.broadcast %cst_189 : f32 to vector<2x128xf32>
    %524 = arith.select %31, %522, %523 : vector<2x128xi1>, vector<2x128xf32>
    %c64 = arith.constant 64 : index
    %525 = memref.load %arg2[%c64] : memref<146xf32, #tpu.memory_space<smem>>
    %526 = vector.broadcast %525 : f32 to vector<2x128xf32>
    %527 = arith.mulf %526, %524 : vector<2x128xf32>
    %528 = arith.addf %516, %527 : vector<2x128xf32>
    %c82 = arith.constant 82 : index
    %529 = memref.load %arg2[%c82] : memref<146xf32, #tpu.memory_space<smem>>
    %530 = vector.broadcast %529 : f32 to vector<2x128xf32>
    %531 = arith.mulf %530, %524 : vector<2x128xf32>
    %532 = arith.addf %520, %531 : vector<2x128xf32>
    %c0_190 = arith.constant 0 : index
    %c0_191 = arith.constant 0 : index
    %c33_192 = arith.constant 33 : index
    %533 = vector.load %arg4[%c0_190, %c0_191, %c33_192] : memref<2x2x162xf32, #tpu.memory_space<vmem>>, vector<1x2x128xf32>
    %534 = vector.shape_cast %533 : vector<1x2x128xf32> to vector<2x128xf32>
    %c65 = arith.constant 65 : index
    %535 = memref.load %arg2[%c65] : memref<146xf32, #tpu.memory_space<smem>>
    %536 = vector.broadcast %535 : f32 to vector<2x128xf32>
    %537 = arith.mulf %536, %534 : vector<2x128xf32>
    %538 = arith.addf %528, %537 : vector<2x128xf32>
    %c83 = arith.constant 83 : index
    %539 = memref.load %arg2[%c83] : memref<146xf32, #tpu.memory_space<smem>>
    %540 = vector.broadcast %539 : f32 to vector<2x128xf32>
    %541 = arith.mulf %540, %534 : vector<2x128xf32>
    %542 = arith.addf %532, %541 : vector<2x128xf32>
    %c0_193 = arith.constant 0 : index
    %c0_194 = arith.constant 0 : index
    %c34_195 = arith.constant 34 : index
    %543 = vector.load %arg4[%c0_193, %c0_194, %c34_195] : memref<2x2x162xf32, #tpu.memory_space<vmem>>, vector<1x2x128xf32>
    %544 = vector.shape_cast %543 : vector<1x2x128xf32> to vector<2x128xf32>
    %cst_196 = arith.constant 0.000000e+00 : f32
    %545 = vector.broadcast %cst_196 : f32 to vector<2x128xf32>
    %546 = arith.select %33, %544, %545 : vector<2x128xi1>, vector<2x128xf32>
    %c66 = arith.constant 66 : index
    %547 = memref.load %arg2[%c66] : memref<146xf32, #tpu.memory_space<smem>>
    %548 = vector.broadcast %547 : f32 to vector<2x128xf32>
    %549 = arith.mulf %548, %546 : vector<2x128xf32>
    %550 = arith.addf %538, %549 : vector<2x128xf32>
    %c84 = arith.constant 84 : index
    %551 = memref.load %arg2[%c84] : memref<146xf32, #tpu.memory_space<smem>>
    %552 = vector.broadcast %551 : f32 to vector<2x128xf32>
    %553 = arith.mulf %552, %546 : vector<2x128xf32>
    %554 = arith.addf %542, %553 : vector<2x128xf32>
    %c1_197 = arith.constant 1 : index
    %c0_198 = arith.constant 0 : index
    %c0_199 = arith.constant 0 : index
    %555 = vector.load %arg4[%c1_197, %c0_198, %c0_199] : memref<2x2x162xf32, #tpu.memory_space<vmem>>, vector<1x2x128xf32>
    %556 = vector.shape_cast %555 : vector<1x2x128xf32> to vector<2x128xf32>
    %cst_200 = arith.constant 0.000000e+00 : f32
    %557 = vector.broadcast %cst_200 : f32 to vector<2x128xf32>
    %558 = arith.select %31, %556, %557 : vector<2x128xi1>, vector<2x128xf32>
    %c67 = arith.constant 67 : index
    %559 = memref.load %arg2[%c67] : memref<146xf32, #tpu.memory_space<smem>>
    %560 = vector.broadcast %559 : f32 to vector<2x128xf32>
    %561 = arith.mulf %560, %558 : vector<2x128xf32>
    %562 = arith.addf %550, %561 : vector<2x128xf32>
    %c85 = arith.constant 85 : index
    %563 = memref.load %arg2[%c85] : memref<146xf32, #tpu.memory_space<smem>>
    %564 = vector.broadcast %563 : f32 to vector<2x128xf32>
    %565 = arith.mulf %564, %558 : vector<2x128xf32>
    %566 = arith.addf %554, %565 : vector<2x128xf32>
    %c1_201 = arith.constant 1 : index
    %c0_202 = arith.constant 0 : index
    %c1_203 = arith.constant 1 : index
    %567 = vector.load %arg4[%c1_201, %c0_202, %c1_203] : memref<2x2x162xf32, #tpu.memory_space<vmem>>, vector<1x2x128xf32>
    %568 = vector.shape_cast %567 : vector<1x2x128xf32> to vector<2x128xf32>
    %c68 = arith.constant 68 : index
    %569 = memref.load %arg2[%c68] : memref<146xf32, #tpu.memory_space<smem>>
    %570 = vector.broadcast %569 : f32 to vector<2x128xf32>
    %571 = arith.mulf %570, %568 : vector<2x128xf32>
    %572 = arith.addf %562, %571 : vector<2x128xf32>
    %c86 = arith.constant 86 : index
    %573 = memref.load %arg2[%c86] : memref<146xf32, #tpu.memory_space<smem>>
    %574 = vector.broadcast %573 : f32 to vector<2x128xf32>
    %575 = arith.mulf %574, %568 : vector<2x128xf32>
    %576 = arith.addf %566, %575 : vector<2x128xf32>
    %c1_204 = arith.constant 1 : index
    %c0_205 = arith.constant 0 : index
    %c2_206 = arith.constant 2 : index
    %577 = vector.load %arg4[%c1_204, %c0_205, %c2_206] : memref<2x2x162xf32, #tpu.memory_space<vmem>>, vector<1x2x128xf32>
    %578 = vector.shape_cast %577 : vector<1x2x128xf32> to vector<2x128xf32>
    %cst_207 = arith.constant 0.000000e+00 : f32
    %579 = vector.broadcast %cst_207 : f32 to vector<2x128xf32>
    %580 = arith.select %33, %578, %579 : vector<2x128xi1>, vector<2x128xf32>
    %c69 = arith.constant 69 : index
    %581 = memref.load %arg2[%c69] : memref<146xf32, #tpu.memory_space<smem>>
    %582 = vector.broadcast %581 : f32 to vector<2x128xf32>
    %583 = arith.mulf %582, %580 : vector<2x128xf32>
    %584 = arith.addf %572, %583 : vector<2x128xf32>
    %c87 = arith.constant 87 : index
    %585 = memref.load %arg2[%c87] : memref<146xf32, #tpu.memory_space<smem>>
    %586 = vector.broadcast %585 : f32 to vector<2x128xf32>
    %587 = arith.mulf %586, %580 : vector<2x128xf32>
    %588 = arith.addf %576, %587 : vector<2x128xf32>
    %c1_208 = arith.constant 1 : index
    %c0_209 = arith.constant 0 : index
    %c16_210 = arith.constant 16 : index
    %589 = vector.load %arg4[%c1_208, %c0_209, %c16_210] : memref<2x2x162xf32, #tpu.memory_space<vmem>>, vector<1x2x128xf32>
    %590 = vector.shape_cast %589 : vector<1x2x128xf32> to vector<2x128xf32>
    %cst_211 = arith.constant 0.000000e+00 : f32
    %591 = vector.broadcast %cst_211 : f32 to vector<2x128xf32>
    %592 = arith.select %31, %590, %591 : vector<2x128xi1>, vector<2x128xf32>
    %c70 = arith.constant 70 : index
    %593 = memref.load %arg2[%c70] : memref<146xf32, #tpu.memory_space<smem>>
    %594 = vector.broadcast %593 : f32 to vector<2x128xf32>
    %595 = arith.mulf %594, %592 : vector<2x128xf32>
    %596 = arith.addf %584, %595 : vector<2x128xf32>
    %c88 = arith.constant 88 : index
    %597 = memref.load %arg2[%c88] : memref<146xf32, #tpu.memory_space<smem>>
    %598 = vector.broadcast %597 : f32 to vector<2x128xf32>
    %599 = arith.mulf %598, %592 : vector<2x128xf32>
    %600 = arith.addf %588, %599 : vector<2x128xf32>
    %c71 = arith.constant 71 : index
    %601 = memref.load %arg2[%c71] : memref<146xf32, #tpu.memory_space<smem>>
    %602 = vector.broadcast %601 : f32 to vector<2x128xf32>
    %603 = arith.mulf %602, %430 : vector<2x128xf32>
    %604 = arith.addf %596, %603 : vector<2x128xf32>
    %c89 = arith.constant 89 : index
    %605 = memref.load %arg2[%c89] : memref<146xf32, #tpu.memory_space<smem>>
    %606 = vector.broadcast %605 : f32 to vector<2x128xf32>
    %607 = arith.mulf %606, %430 : vector<2x128xf32>
    %608 = arith.addf %600, %607 : vector<2x128xf32>
    %c1_212 = arith.constant 1 : index
    %c0_213 = arith.constant 0 : index
    %c18_214 = arith.constant 18 : index
    %609 = vector.load %arg4[%c1_212, %c0_213, %c18_214] : memref<2x2x162xf32, #tpu.memory_space<vmem>>, vector<1x2x128xf32>
    %610 = vector.shape_cast %609 : vector<1x2x128xf32> to vector<2x128xf32>
    %cst_215 = arith.constant 0.000000e+00 : f32
    %611 = vector.broadcast %cst_215 : f32 to vector<2x128xf32>
    %612 = arith.select %33, %610, %611 : vector<2x128xi1>, vector<2x128xf32>
    %c72 = arith.constant 72 : index
    %613 = memref.load %arg2[%c72] : memref<146xf32, #tpu.memory_space<smem>>
    %614 = vector.broadcast %613 : f32 to vector<2x128xf32>
    %615 = arith.mulf %614, %612 : vector<2x128xf32>
    %616 = arith.addf %604, %615 : vector<2x128xf32>
    %c90 = arith.constant 90 : index
    %617 = memref.load %arg2[%c90] : memref<146xf32, #tpu.memory_space<smem>>
    %618 = vector.broadcast %617 : f32 to vector<2x128xf32>
    %619 = arith.mulf %618, %612 : vector<2x128xf32>
    %620 = arith.addf %608, %619 : vector<2x128xf32>
    %c1_216 = arith.constant 1 : index
    %c0_217 = arith.constant 0 : index
    %c32_218 = arith.constant 32 : index
    %621 = vector.load %arg4[%c1_216, %c0_217, %c32_218] : memref<2x2x162xf32, #tpu.memory_space<vmem>>, vector<1x2x128xf32>
    %622 = vector.shape_cast %621 : vector<1x2x128xf32> to vector<2x128xf32>
    %cst_219 = arith.constant 0.000000e+00 : f32
    %623 = vector.broadcast %cst_219 : f32 to vector<2x128xf32>
    %624 = arith.select %31, %622, %623 : vector<2x128xi1>, vector<2x128xf32>
    %c73 = arith.constant 73 : index
    %625 = memref.load %arg2[%c73] : memref<146xf32, #tpu.memory_space<smem>>
    %626 = vector.broadcast %625 : f32 to vector<2x128xf32>
    %627 = arith.mulf %626, %624 : vector<2x128xf32>
    %628 = arith.addf %616, %627 : vector<2x128xf32>
    %c91 = arith.constant 91 : index
    %629 = memref.load %arg2[%c91] : memref<146xf32, #tpu.memory_space<smem>>
    %630 = vector.broadcast %629 : f32 to vector<2x128xf32>
    %631 = arith.mulf %630, %624 : vector<2x128xf32>
    %632 = arith.addf %620, %631 : vector<2x128xf32>
    %c1_220 = arith.constant 1 : index
    %c0_221 = arith.constant 0 : index
    %c33_222 = arith.constant 33 : index
    %633 = vector.load %arg4[%c1_220, %c0_221, %c33_222] : memref<2x2x162xf32, #tpu.memory_space<vmem>>, vector<1x2x128xf32>
    %634 = vector.shape_cast %633 : vector<1x2x128xf32> to vector<2x128xf32>
    %c74 = arith.constant 74 : index
    %635 = memref.load %arg2[%c74] : memref<146xf32, #tpu.memory_space<smem>>
    %636 = vector.broadcast %635 : f32 to vector<2x128xf32>
    %637 = arith.mulf %636, %634 : vector<2x128xf32>
    %638 = arith.addf %628, %637 : vector<2x128xf32>
    %c92 = arith.constant 92 : index
    %639 = memref.load %arg2[%c92] : memref<146xf32, #tpu.memory_space<smem>>
    %640 = vector.broadcast %639 : f32 to vector<2x128xf32>
    %641 = arith.mulf %640, %634 : vector<2x128xf32>
    %642 = arith.addf %632, %641 : vector<2x128xf32>
    %c1_223 = arith.constant 1 : index
    %c0_224 = arith.constant 0 : index
    %c34_225 = arith.constant 34 : index
    %643 = vector.load %arg4[%c1_223, %c0_224, %c34_225] : memref<2x2x162xf32, #tpu.memory_space<vmem>>, vector<1x2x128xf32>
    %644 = vector.shape_cast %643 : vector<1x2x128xf32> to vector<2x128xf32>
    %cst_226 = arith.constant 0.000000e+00 : f32
    %645 = vector.broadcast %cst_226 : f32 to vector<2x128xf32>
    %646 = arith.select %33, %644, %645 : vector<2x128xi1>, vector<2x128xf32>
    %c75 = arith.constant 75 : index
    %647 = memref.load %arg2[%c75] : memref<146xf32, #tpu.memory_space<smem>>
    %648 = vector.broadcast %647 : f32 to vector<2x128xf32>
    %649 = arith.mulf %648, %646 : vector<2x128xf32>
    %650 = arith.addf %638, %649 : vector<2x128xf32>
    %c93 = arith.constant 93 : index
    %651 = memref.load %arg2[%c93] : memref<146xf32, #tpu.memory_space<smem>>
    %652 = vector.broadcast %651 : f32 to vector<2x128xf32>
    %653 = arith.mulf %652, %646 : vector<2x128xf32>
    %654 = arith.addf %642, %653 : vector<2x128xf32>
    %cst_227 = arith.constant 0.000000e+00 : f32
    %655 = vector.broadcast %cst_227 : f32 to vector<2x128xf32>
    %656 = arith.cmpf oge, %650, %655 : vector<2x128xf32>
    %cst_228 = arith.constant 2.000000e-01 : f32
    %657 = vector.broadcast %cst_228 : f32 to vector<2x128xf32>
    %658 = arith.mulf %657, %650 : vector<2x128xf32>
    %659 = arith.select %656, %650, %658 : vector<2x128xi1>, vector<2x128xf32>
    %cst_229 = arith.constant 0.000000e+00 : f32
    %660 = vector.broadcast %cst_229 : f32 to vector<2x128xf32>
    %661 = arith.cmpf oge, %654, %660 : vector<2x128xf32>
    %cst_230 = arith.constant 2.000000e-01 : f32
    %662 = vector.broadcast %cst_230 : f32 to vector<2x128xf32>
    %663 = arith.mulf %662, %654 : vector<2x128xf32>
    %664 = arith.select %661, %654, %663 : vector<2x128xi1>, vector<2x128xf32>
    %c0_231 = arith.constant 0 : index
    %c0_232 = arith.constant 0 : index
    %c17_233 = arith.constant 17 : index
    %665 = vector.load %arg4[%c0_231, %c0_232, %c17_233] : memref<2x2x162xf32, #tpu.memory_space<vmem>>, vector<1x2x128xf32>
    %666 = vector.shape_cast %665 : vector<1x2x128xf32> to vector<2x128xf32>
    %667 = vector.shape_cast %169 : vector<2x128xf32> to vector<1x2x128xf32>
    tpu.vector_store %arg4[%c0_231, %c0_232, %c17_233], %667 {strides = array<i32>} : memref<2x2x162xf32, #tpu.memory_space<vmem>>, vector<1x2x128xf32>,
    %c0_234 = arith.constant 0 : index
    %c0_235 = arith.constant 0 : index
    %c128_236 = arith.constant 128 : index
    %668 = vector.load %arg4[%c0_234, %c0_235, %c128_236] : memref<2x2x162xf32, #tpu.memory_space<vmem>>, vector<1x1x17xf32>
    %669 = vector.shape_cast %668 : vector<1x1x17xf32> to vector<1x17xf32>
    %c0_237 = arith.constant 0 : index
    %c1_238 = arith.constant 1 : index
    %c0_239 = arith.constant 0 : index
    %670 = vector.load %arg4[%c0_237, %c1_238, %c0_239] : memref<2x2x162xf32, #tpu.memory_space<vmem>>, vector<1x1x17xf32>
    %671 = vector.shape_cast %670 : vector<1x1x17xf32> to vector<1x17xf32>
    %672 = vector.shape_cast %669 : vector<1x17xf32> to vector<1x1x17xf32>
    tpu.vector_store %arg4[%c0_237, %c1_238, %c0_239], %672 {strides = array<i32>} : memref<2x2x162xf32, #tpu.memory_space<vmem>>, vector<1x1x17xf32>,
    %c0_240 = arith.constant 0 : index
    %c1_241 = arith.constant 1 : index
    %c17_242 = arith.constant 17 : index
    %673 = vector.load %arg4[%c0_240, %c1_241, %c17_242] : memref<2x2x162xf32, #tpu.memory_space<vmem>>, vector<1x1x17xf32>
    %674 = vector.shape_cast %673 : vector<1x1x17xf32> to vector<1x17xf32>
    %c0_243 = arith.constant 0 : index
    %c0_244 = arith.constant 0 : index
    %c145_245 = arith.constant 145 : index
    %675 = vector.load %arg4[%c0_243, %c0_244, %c145_245] : memref<2x2x162xf32, #tpu.memory_space<vmem>>, vector<1x1x17xf32>
    %676 = vector.shape_cast %675 : vector<1x1x17xf32> to vector<1x17xf32>
    %677 = vector.shape_cast %674 : vector<1x17xf32> to vector<1x1x17xf32>
    tpu.vector_store %arg4[%c0_243, %c0_244, %c145_245], %677 {strides = array<i32>} : memref<2x2x162xf32, #tpu.memory_space<vmem>>, vector<1x1x17xf32>,
    %c1_246 = arith.constant 1 : index
    %c0_247 = arith.constant 0 : index
    %c17_248 = arith.constant 17 : index
    %678 = vector.load %arg4[%c1_246, %c0_247, %c17_248] : memref<2x2x162xf32, #tpu.memory_space<vmem>>, vector<1x2x128xf32>
    %679 = vector.shape_cast %678 : vector<1x2x128xf32> to vector<2x128xf32>
    %680 = vector.shape_cast %174 : vector<2x128xf32> to vector<1x2x128xf32>
    tpu.vector_store %arg4[%c1_246, %c0_247, %c17_248], %680 {strides = array<i32>} : memref<2x2x162xf32, #tpu.memory_space<vmem>>, vector<1x2x128xf32>,
    %c1_249 = arith.constant 1 : index
    %c0_250 = arith.constant 0 : index
    %c128_251 = arith.constant 128 : index
    %681 = vector.load %arg4[%c1_249, %c0_250, %c128_251] : memref<2x2x162xf32, #tpu.memory_space<vmem>>, vector<1x1x17xf32>
    %682 = vector.shape_cast %681 : vector<1x1x17xf32> to vector<1x17xf32>
    %c1_252 = arith.constant 1 : index
    %c1_253 = arith.constant 1 : index
    %c0_254 = arith.constant 0 : index
    %683 = vector.load %arg4[%c1_252, %c1_253, %c0_254] : memref<2x2x162xf32, #tpu.memory_space<vmem>>, vector<1x1x17xf32>
    %684 = vector.shape_cast %683 : vector<1x1x17xf32> to vector<1x17xf32>
    %685 = vector.shape_cast %682 : vector<1x17xf32> to vector<1x1x17xf32>
    tpu.vector_store %arg4[%c1_252, %c1_253, %c0_254], %685 {strides = array<i32>} : memref<2x2x162xf32, #tpu.memory_space<vmem>>, vector<1x1x17xf32>,
    %c1_255 = arith.constant 1 : index
    %c1_256 = arith.constant 1 : index
    %c17_257 = arith.constant 17 : index
    %686 = vector.load %arg4[%c1_255, %c1_256, %c17_257] : memref<2x2x162xf32, #tpu.memory_space<vmem>>, vector<1x1x17xf32>
    %687 = vector.shape_cast %686 : vector<1x1x17xf32> to vector<1x17xf32>
    %c1_258 = arith.constant 1 : index
    %c0_259 = arith.constant 0 : index
    %c145_260 = arith.constant 145 : index
    %688 = vector.load %arg4[%c1_258, %c0_259, %c145_260] : memref<2x2x162xf32, #tpu.memory_space<vmem>>, vector<1x1x17xf32>
    %689 = vector.shape_cast %688 : vector<1x1x17xf32> to vector<1x17xf32>
    %690 = vector.shape_cast %687 : vector<1x17xf32> to vector<1x1x17xf32>
    tpu.vector_store %arg4[%c1_258, %c0_259, %c145_260], %690 {strides = array<i32>} : memref<2x2x162xf32, #tpu.memory_space<vmem>>, vector<1x1x17xf32>,
    %c0_261 = arith.constant 0 : index
    %c0_262 = arith.constant 0 : index
    %c0_263 = arith.constant 0 : index
    %691 = vector.load %arg4[%c0_261, %c0_262, %c0_263] : memref<2x2x162xf32, #tpu.memory_space<vmem>>, vector<1x2x128xf32>
    %692 = vector.shape_cast %691 : vector<1x2x128xf32> to vector<2x128xf32>
    %cst_264 = arith.constant 0.000000e+00 : f32
    %693 = vector.broadcast %cst_264 : f32 to vector<2x128xf32>
    %694 = arith.select %31, %692, %693 : vector<2x128xi1>, vector<2x128xf32>
    %c94 = arith.constant 94 : index
    %695 = memref.load %arg2[%c94] : memref<146xf32, #tpu.memory_space<smem>>
    %696 = vector.broadcast %695 : f32 to vector<2x128xf32>
    %697 = arith.mulf %696, %694 : vector<2x128xf32>
    %c112 = arith.constant 112 : index
    %698 = memref.load %arg2[%c112] : memref<146xf32, #tpu.memory_space<smem>>
    %699 = vector.broadcast %698 : f32 to vector<2x128xf32>
    %700 = arith.mulf %699, %694 : vector<2x128xf32>
    %c0_265 = arith.constant 0 : index
    %c0_266 = arith.constant 0 : index
    %c1_267 = arith.constant 1 : index
    %701 = vector.load %arg4[%c0_265, %c0_266, %c1_267] : memref<2x2x162xf32, #tpu.memory_space<vmem>>, vector<1x2x128xf32>
    %702 = vector.shape_cast %701 : vector<1x2x128xf32> to vector<2x128xf32>
    %c95 = arith.constant 95 : index
    %703 = memref.load %arg2[%c95] : memref<146xf32, #tpu.memory_space<smem>>
    %704 = vector.broadcast %703 : f32 to vector<2x128xf32>
    %705 = arith.mulf %704, %702 : vector<2x128xf32>
    %706 = arith.addf %697, %705 : vector<2x128xf32>
    %c113 = arith.constant 113 : index
    %707 = memref.load %arg2[%c113] : memref<146xf32, #tpu.memory_space<smem>>
    %708 = vector.broadcast %707 : f32 to vector<2x128xf32>
    %709 = arith.mulf %708, %702 : vector<2x128xf32>
    %710 = arith.addf %700, %709 : vector<2x128xf32>
    %c0_268 = arith.constant 0 : index
    %c0_269 = arith.constant 0 : index
    %c2_270 = arith.constant 2 : index
    %711 = vector.load %arg4[%c0_268, %c0_269, %c2_270] : memref<2x2x162xf32, #tpu.memory_space<vmem>>, vector<1x2x128xf32>
    %712 = vector.shape_cast %711 : vector<1x2x128xf32> to vector<2x128xf32>
    %cst_271 = arith.constant 0.000000e+00 : f32
    %713 = vector.broadcast %cst_271 : f32 to vector<2x128xf32>
    %714 = arith.select %33, %712, %713 : vector<2x128xi1>, vector<2x128xf32>
    %c96 = arith.constant 96 : index
    %715 = memref.load %arg2[%c96] : memref<146xf32, #tpu.memory_space<smem>>
    %716 = vector.broadcast %715 : f32 to vector<2x128xf32>
    %717 = arith.mulf %716, %714 : vector<2x128xf32>
    %718 = arith.addf %706, %717 : vector<2x128xf32>
    %c114 = arith.constant 114 : index
    %719 = memref.load %arg2[%c114] : memref<146xf32, #tpu.memory_space<smem>>
    %720 = vector.broadcast %719 : f32 to vector<2x128xf32>
    %721 = arith.mulf %720, %714 : vector<2x128xf32>
    %722 = arith.addf %710, %721 : vector<2x128xf32>
    %c0_272 = arith.constant 0 : index
    %c0_273 = arith.constant 0 : index
    %c16_274 = arith.constant 16 : index
    %723 = vector.load %arg4[%c0_272, %c0_273, %c16_274] : memref<2x2x162xf32, #tpu.memory_space<vmem>>, vector<1x2x128xf32>
    %724 = vector.shape_cast %723 : vector<1x2x128xf32> to vector<2x128xf32>
    %cst_275 = arith.constant 0.000000e+00 : f32
    %725 = vector.broadcast %cst_275 : f32 to vector<2x128xf32>
    %726 = arith.select %31, %724, %725 : vector<2x128xi1>, vector<2x128xf32>
    %c97 = arith.constant 97 : index
    %727 = memref.load %arg2[%c97] : memref<146xf32, #tpu.memory_space<smem>>
    %728 = vector.broadcast %727 : f32 to vector<2x128xf32>
    %729 = arith.mulf %728, %726 : vector<2x128xf32>
    %730 = arith.addf %718, %729 : vector<2x128xf32>
    %c115 = arith.constant 115 : index
    %731 = memref.load %arg2[%c115] : memref<146xf32, #tpu.memory_space<smem>>
    %732 = vector.broadcast %731 : f32 to vector<2x128xf32>
    %733 = arith.mulf %732, %726 : vector<2x128xf32>
    %734 = arith.addf %722, %733 : vector<2x128xf32>
    %c98 = arith.constant 98 : index
    %735 = memref.load %arg2[%c98] : memref<146xf32, #tpu.memory_space<smem>>
    %736 = vector.broadcast %735 : f32 to vector<2x128xf32>
    %737 = arith.mulf %736, %169 : vector<2x128xf32>
    %738 = arith.addf %730, %737 : vector<2x128xf32>
    %c116 = arith.constant 116 : index
    %739 = memref.load %arg2[%c116] : memref<146xf32, #tpu.memory_space<smem>>
    %740 = vector.broadcast %739 : f32 to vector<2x128xf32>
    %741 = arith.mulf %740, %169 : vector<2x128xf32>
    %742 = arith.addf %734, %741 : vector<2x128xf32>
    %c0_276 = arith.constant 0 : index
    %c0_277 = arith.constant 0 : index
    %c18_278 = arith.constant 18 : index
    %743 = vector.load %arg4[%c0_276, %c0_277, %c18_278] : memref<2x2x162xf32, #tpu.memory_space<vmem>>, vector<1x2x128xf32>
    %744 = vector.shape_cast %743 : vector<1x2x128xf32> to vector<2x128xf32>
    %cst_279 = arith.constant 0.000000e+00 : f32
    %745 = vector.broadcast %cst_279 : f32 to vector<2x128xf32>
    %746 = arith.select %33, %744, %745 : vector<2x128xi1>, vector<2x128xf32>
    %c99 = arith.constant 99 : index
    %747 = memref.load %arg2[%c99] : memref<146xf32, #tpu.memory_space<smem>>
    %748 = vector.broadcast %747 : f32 to vector<2x128xf32>
    %749 = arith.mulf %748, %746 : vector<2x128xf32>
    %750 = arith.addf %738, %749 : vector<2x128xf32>
    %c117 = arith.constant 117 : index
    %751 = memref.load %arg2[%c117] : memref<146xf32, #tpu.memory_space<smem>>
    %752 = vector.broadcast %751 : f32 to vector<2x128xf32>
    %753 = arith.mulf %752, %746 : vector<2x128xf32>
    %754 = arith.addf %742, %753 : vector<2x128xf32>
    %c0_280 = arith.constant 0 : index
    %c0_281 = arith.constant 0 : index
    %c32_282 = arith.constant 32 : index
    %755 = vector.load %arg4[%c0_280, %c0_281, %c32_282] : memref<2x2x162xf32, #tpu.memory_space<vmem>>, vector<1x2x128xf32>
    %756 = vector.shape_cast %755 : vector<1x2x128xf32> to vector<2x128xf32>
    %cst_283 = arith.constant 0.000000e+00 : f32
    %757 = vector.broadcast %cst_283 : f32 to vector<2x128xf32>
    %758 = arith.select %31, %756, %757 : vector<2x128xi1>, vector<2x128xf32>
    %c100 = arith.constant 100 : index
    %759 = memref.load %arg2[%c100] : memref<146xf32, #tpu.memory_space<smem>>
    %760 = vector.broadcast %759 : f32 to vector<2x128xf32>
    %761 = arith.mulf %760, %758 : vector<2x128xf32>
    %762 = arith.addf %750, %761 : vector<2x128xf32>
    %c118 = arith.constant 118 : index
    %763 = memref.load %arg2[%c118] : memref<146xf32, #tpu.memory_space<smem>>
    %764 = vector.broadcast %763 : f32 to vector<2x128xf32>
    %765 = arith.mulf %764, %758 : vector<2x128xf32>
    %766 = arith.addf %754, %765 : vector<2x128xf32>
    %c0_284 = arith.constant 0 : index
    %c0_285 = arith.constant 0 : index
    %c33_286 = arith.constant 33 : index
    %767 = vector.load %arg4[%c0_284, %c0_285, %c33_286] : memref<2x2x162xf32, #tpu.memory_space<vmem>>, vector<1x2x128xf32>
    %768 = vector.shape_cast %767 : vector<1x2x128xf32> to vector<2x128xf32>
    %c101 = arith.constant 101 : index
    %769 = memref.load %arg2[%c101] : memref<146xf32, #tpu.memory_space<smem>>
    %770 = vector.broadcast %769 : f32 to vector<2x128xf32>
    %771 = arith.mulf %770, %768 : vector<2x128xf32>
    %772 = arith.addf %762, %771 : vector<2x128xf32>
    %c119 = arith.constant 119 : index
    %773 = memref.load %arg2[%c119] : memref<146xf32, #tpu.memory_space<smem>>
    %774 = vector.broadcast %773 : f32 to vector<2x128xf32>
    %775 = arith.mulf %774, %768 : vector<2x128xf32>
    %776 = arith.addf %766, %775 : vector<2x128xf32>
    %c0_287 = arith.constant 0 : index
    %c0_288 = arith.constant 0 : index
    %c34_289 = arith.constant 34 : index
    %777 = vector.load %arg4[%c0_287, %c0_288, %c34_289] : memref<2x2x162xf32, #tpu.memory_space<vmem>>, vector<1x2x128xf32>
    %778 = vector.shape_cast %777 : vector<1x2x128xf32> to vector<2x128xf32>
    %cst_290 = arith.constant 0.000000e+00 : f32
    %779 = vector.broadcast %cst_290 : f32 to vector<2x128xf32>
    %780 = arith.select %33, %778, %779 : vector<2x128xi1>, vector<2x128xf32>
    %c102 = arith.constant 102 : index
    %781 = memref.load %arg2[%c102] : memref<146xf32, #tpu.memory_space<smem>>
    %782 = vector.broadcast %781 : f32 to vector<2x128xf32>
    %783 = arith.mulf %782, %780 : vector<2x128xf32>
    %784 = arith.addf %772, %783 : vector<2x128xf32>
    %c120 = arith.constant 120 : index
    %785 = memref.load %arg2[%c120] : memref<146xf32, #tpu.memory_space<smem>>
    %786 = vector.broadcast %785 : f32 to vector<2x128xf32>
    %787 = arith.mulf %786, %780 : vector<2x128xf32>
    %788 = arith.addf %776, %787 : vector<2x128xf32>
    %c1_291 = arith.constant 1 : index
    %c0_292 = arith.constant 0 : index
    %c0_293 = arith.constant 0 : index
    %789 = vector.load %arg4[%c1_291, %c0_292, %c0_293] : memref<2x2x162xf32, #tpu.memory_space<vmem>>, vector<1x2x128xf32>
    %790 = vector.shape_cast %789 : vector<1x2x128xf32> to vector<2x128xf32>
    %cst_294 = arith.constant 0.000000e+00 : f32
    %791 = vector.broadcast %cst_294 : f32 to vector<2x128xf32>
    %792 = arith.select %31, %790, %791 : vector<2x128xi1>, vector<2x128xf32>
    %c103 = arith.constant 103 : index
    %793 = memref.load %arg2[%c103] : memref<146xf32, #tpu.memory_space<smem>>
    %794 = vector.broadcast %793 : f32 to vector<2x128xf32>
    %795 = arith.mulf %794, %792 : vector<2x128xf32>
    %796 = arith.addf %784, %795 : vector<2x128xf32>
    %c121 = arith.constant 121 : index
    %797 = memref.load %arg2[%c121] : memref<146xf32, #tpu.memory_space<smem>>
    %798 = vector.broadcast %797 : f32 to vector<2x128xf32>
    %799 = arith.mulf %798, %792 : vector<2x128xf32>
    %800 = arith.addf %788, %799 : vector<2x128xf32>
    %c1_295 = arith.constant 1 : index
    %c0_296 = arith.constant 0 : index
    %c1_297 = arith.constant 1 : index
    %801 = vector.load %arg4[%c1_295, %c0_296, %c1_297] : memref<2x2x162xf32, #tpu.memory_space<vmem>>, vector<1x2x128xf32>
    %802 = vector.shape_cast %801 : vector<1x2x128xf32> to vector<2x128xf32>
    %c104 = arith.constant 104 : index
    %803 = memref.load %arg2[%c104] : memref<146xf32, #tpu.memory_space<smem>>
    %804 = vector.broadcast %803 : f32 to vector<2x128xf32>
    %805 = arith.mulf %804, %802 : vector<2x128xf32>
    %806 = arith.addf %796, %805 : vector<2x128xf32>
    %c122 = arith.constant 122 : index
    %807 = memref.load %arg2[%c122] : memref<146xf32, #tpu.memory_space<smem>>
    %808 = vector.broadcast %807 : f32 to vector<2x128xf32>
    %809 = arith.mulf %808, %802 : vector<2x128xf32>
    %810 = arith.addf %800, %809 : vector<2x128xf32>
    %c1_298 = arith.constant 1 : index
    %c0_299 = arith.constant 0 : index
    %c2_300 = arith.constant 2 : index
    %811 = vector.load %arg4[%c1_298, %c0_299, %c2_300] : memref<2x2x162xf32, #tpu.memory_space<vmem>>, vector<1x2x128xf32>
    %812 = vector.shape_cast %811 : vector<1x2x128xf32> to vector<2x128xf32>
    %cst_301 = arith.constant 0.000000e+00 : f32
    %813 = vector.broadcast %cst_301 : f32 to vector<2x128xf32>
    %814 = arith.select %33, %812, %813 : vector<2x128xi1>, vector<2x128xf32>
    %c105 = arith.constant 105 : index
    %815 = memref.load %arg2[%c105] : memref<146xf32, #tpu.memory_space<smem>>
    %816 = vector.broadcast %815 : f32 to vector<2x128xf32>
    %817 = arith.mulf %816, %814 : vector<2x128xf32>
    %818 = arith.addf %806, %817 : vector<2x128xf32>
    %c123 = arith.constant 123 : index
    %819 = memref.load %arg2[%c123] : memref<146xf32, #tpu.memory_space<smem>>
    %820 = vector.broadcast %819 : f32 to vector<2x128xf32>
    %821 = arith.mulf %820, %814 : vector<2x128xf32>
    %822 = arith.addf %810, %821 : vector<2x128xf32>
    %c1_302 = arith.constant 1 : index
    %c0_303 = arith.constant 0 : index
    %c16_304 = arith.constant 16 : index
    %823 = vector.load %arg4[%c1_302, %c0_303, %c16_304] : memref<2x2x162xf32, #tpu.memory_space<vmem>>, vector<1x2x128xf32>
    %824 = vector.shape_cast %823 : vector<1x2x128xf32> to vector<2x128xf32>
    %cst_305 = arith.constant 0.000000e+00 : f32
    %825 = vector.broadcast %cst_305 : f32 to vector<2x128xf32>
    %826 = arith.select %31, %824, %825 : vector<2x128xi1>, vector<2x128xf32>
    %c106 = arith.constant 106 : index
    %827 = memref.load %arg2[%c106] : memref<146xf32, #tpu.memory_space<smem>>
    %828 = vector.broadcast %827 : f32 to vector<2x128xf32>
    %829 = arith.mulf %828, %826 : vector<2x128xf32>
    %830 = arith.addf %818, %829 : vector<2x128xf32>
    %c124 = arith.constant 124 : index
    %831 = memref.load %arg2[%c124] : memref<146xf32, #tpu.memory_space<smem>>
    %832 = vector.broadcast %831 : f32 to vector<2x128xf32>
    %833 = arith.mulf %832, %826 : vector<2x128xf32>
    %834 = arith.addf %822, %833 : vector<2x128xf32>
    %c107 = arith.constant 107 : index
    %835 = memref.load %arg2[%c107] : memref<146xf32, #tpu.memory_space<smem>>
    %836 = vector.broadcast %835 : f32 to vector<2x128xf32>
    %837 = arith.mulf %836, %174 : vector<2x128xf32>
    %838 = arith.addf %830, %837 : vector<2x128xf32>
    %c125 = arith.constant 125 : index
    %839 = memref.load %arg2[%c125] : memref<146xf32, #tpu.memory_space<smem>>
    %840 = vector.broadcast %839 : f32 to vector<2x128xf32>
    %841 = arith.mulf %840, %174 : vector<2x128xf32>
    %842 = arith.addf %834, %841 : vector<2x128xf32>
    %c1_306 = arith.constant 1 : index
    %c0_307 = arith.constant 0 : index
    %c18_308 = arith.constant 18 : index
    %843 = vector.load %arg4[%c1_306, %c0_307, %c18_308] : memref<2x2x162xf32, #tpu.memory_space<vmem>>, vector<1x2x128xf32>
    %844 = vector.shape_cast %843 : vector<1x2x128xf32> to vector<2x128xf32>
    %cst_309 = arith.constant 0.000000e+00 : f32
    %845 = vector.broadcast %cst_309 : f32 to vector<2x128xf32>
    %846 = arith.select %33, %844, %845 : vector<2x128xi1>, vector<2x128xf32>
    %c108 = arith.constant 108 : index
    %847 = memref.load %arg2[%c108] : memref<146xf32, #tpu.memory_space<smem>>
    %848 = vector.broadcast %847 : f32 to vector<2x128xf32>
    %849 = arith.mulf %848, %846 : vector<2x128xf32>
    %850 = arith.addf %838, %849 : vector<2x128xf32>
    %c126 = arith.constant 126 : index
    %851 = memref.load %arg2[%c126] : memref<146xf32, #tpu.memory_space<smem>>
    %852 = vector.broadcast %851 : f32 to vector<2x128xf32>
    %853 = arith.mulf %852, %846 : vector<2x128xf32>
    %854 = arith.addf %842, %853 : vector<2x128xf32>
    %c1_310 = arith.constant 1 : index
    %c0_311 = arith.constant 0 : index
    %c32_312 = arith.constant 32 : index
    %855 = vector.load %arg4[%c1_310, %c0_311, %c32_312] : memref<2x2x162xf32, #tpu.memory_space<vmem>>, vector<1x2x128xf32>
    %856 = vector.shape_cast %855 : vector<1x2x128xf32> to vector<2x128xf32>
    %cst_313 = arith.constant 0.000000e+00 : f32
    %857 = vector.broadcast %cst_313 : f32 to vector<2x128xf32>
    %858 = arith.select %31, %856, %857 : vector<2x128xi1>, vector<2x128xf32>
    %c109 = arith.constant 109 : index
    %859 = memref.load %arg2[%c109] : memref<146xf32, #tpu.memory_space<smem>>
    %860 = vector.broadcast %859 : f32 to vector<2x128xf32>
    %861 = arith.mulf %860, %858 : vector<2x128xf32>
    %862 = arith.addf %850, %861 : vector<2x128xf32>
    %c127 = arith.constant 127 : index
    %863 = memref.load %arg2[%c127] : memref<146xf32, #tpu.memory_space<smem>>
    %864 = vector.broadcast %863 : f32 to vector<2x128xf32>
    %865 = arith.mulf %864, %858 : vector<2x128xf32>
    %866 = arith.addf %854, %865 : vector<2x128xf32>
    %c1_314 = arith.constant 1 : index
    %c0_315 = arith.constant 0 : index
    %c33_316 = arith.constant 33 : index
    %867 = vector.load %arg4[%c1_314, %c0_315, %c33_316] : memref<2x2x162xf32, #tpu.memory_space<vmem>>, vector<1x2x128xf32>
    %868 = vector.shape_cast %867 : vector<1x2x128xf32> to vector<2x128xf32>
    %c110 = arith.constant 110 : index
    %869 = memref.load %arg2[%c110] : memref<146xf32, #tpu.memory_space<smem>>
    %870 = vector.broadcast %869 : f32 to vector<2x128xf32>
    %871 = arith.mulf %870, %868 : vector<2x128xf32>
    %872 = arith.addf %862, %871 : vector<2x128xf32>
    %c128_317 = arith.constant 128 : index
    %873 = memref.load %arg2[%c128_317] : memref<146xf32, #tpu.memory_space<smem>>
    %874 = vector.broadcast %873 : f32 to vector<2x128xf32>
    %875 = arith.mulf %874, %868 : vector<2x128xf32>
    %876 = arith.addf %866, %875 : vector<2x128xf32>
    %c1_318 = arith.constant 1 : index
    %c0_319 = arith.constant 0 : index
    %c34_320 = arith.constant 34 : index
    %877 = vector.load %arg4[%c1_318, %c0_319, %c34_320] : memref<2x2x162xf32, #tpu.memory_space<vmem>>, vector<1x2x128xf32>
    %878 = vector.shape_cast %877 : vector<1x2x128xf32> to vector<2x128xf32>
    %cst_321 = arith.constant 0.000000e+00 : f32
    %879 = vector.broadcast %cst_321 : f32 to vector<2x128xf32>
    %880 = arith.select %33, %878, %879 : vector<2x128xi1>, vector<2x128xf32>
    %c111 = arith.constant 111 : index
    %881 = memref.load %arg2[%c111] : memref<146xf32, #tpu.memory_space<smem>>
    %882 = vector.broadcast %881 : f32 to vector<2x128xf32>
    %883 = arith.mulf %882, %880 : vector<2x128xf32>
    %884 = arith.addf %872, %883 : vector<2x128xf32>
    %c129 = arith.constant 129 : index
    %885 = memref.load %arg2[%c129] : memref<146xf32, #tpu.memory_space<smem>>
    %886 = vector.broadcast %885 : f32 to vector<2x128xf32>
    %887 = arith.mulf %886, %880 : vector<2x128xf32>
    %888 = arith.addf %876, %887 : vector<2x128xf32>
    %cst_322 = arith.constant 0.000000e+00 : f32
    %889 = vector.broadcast %cst_322 : f32 to vector<2x128xf32>
    %890 = arith.cmpf oge, %884, %889 : vector<2x128xf32>
    %cst_323 = arith.constant 2.000000e-01 : f32
    %891 = vector.broadcast %cst_323 : f32 to vector<2x128xf32>
    %892 = arith.mulf %891, %884 : vector<2x128xf32>
    %893 = arith.select %890, %884, %892 : vector<2x128xi1>, vector<2x128xf32>
    %cst_324 = arith.constant 0.000000e+00 : f32
    %894 = vector.broadcast %cst_324 : f32 to vector<2x128xf32>
    %895 = arith.cmpf oge, %888, %894 : vector<2x128xf32>
    %cst_325 = arith.constant 2.000000e-01 : f32
    %896 = vector.broadcast %cst_325 : f32 to vector<2x128xf32>
    %897 = arith.mulf %896, %888 : vector<2x128xf32>
    %898 = arith.select %895, %888, %897 : vector<2x128xi1>, vector<2x128xf32>
    %c130 = arith.constant 130 : index
    %899 = memref.load %arg2[%c130] : memref<146xf32, #tpu.memory_space<smem>>
    %900 = vector.broadcast %899 : f32 to vector<2x128xf32>
    %901 = arith.mulf %900, %893 : vector<2x128xf32>
    %c131 = arith.constant 131 : index
    %902 = memref.load %arg2[%c131] : memref<146xf32, #tpu.memory_space<smem>>
    %903 = vector.broadcast %902 : f32 to vector<2x128xf32>
    %904 = arith.mulf %903, %898 : vector<2x128xf32>
    %905 = arith.addf %901, %904 : vector<2x128xf32>
    %c132 = arith.constant 132 : index
    %906 = memref.load %arg2[%c132] : memref<146xf32, #tpu.memory_space<smem>>
    %907 = vector.broadcast %906 : f32 to vector<2x128xf32>
    %908 = arith.mulf %907, %659 : vector<2x128xf32>
    %909 = arith.addf %905, %908 : vector<2x128xf32>
    %c133 = arith.constant 133 : index
    %910 = memref.load %arg2[%c133] : memref<146xf32, #tpu.memory_space<smem>>
    %911 = vector.broadcast %910 : f32 to vector<2x128xf32>
    %912 = arith.mulf %911, %664 : vector<2x128xf32>
    %913 = arith.addf %909, %912 : vector<2x128xf32>
    %c134 = arith.constant 134 : index
    %914 = memref.load %arg2[%c134] : memref<146xf32, #tpu.memory_space<smem>>
    %915 = vector.broadcast %914 : f32 to vector<2x128xf32>
    %916 = arith.mulf %915, %893 : vector<2x128xf32>
    %c135 = arith.constant 135 : index
    %917 = memref.load %arg2[%c135] : memref<146xf32, #tpu.memory_space<smem>>
    %918 = vector.broadcast %917 : f32 to vector<2x128xf32>
    %919 = arith.mulf %918, %898 : vector<2x128xf32>
    %920 = arith.addf %916, %919 : vector<2x128xf32>
    %c136 = arith.constant 136 : index
    %921 = memref.load %arg2[%c136] : memref<146xf32, #tpu.memory_space<smem>>
    %922 = vector.broadcast %921 : f32 to vector<2x128xf32>
    %923 = arith.mulf %922, %659 : vector<2x128xf32>
    %924 = arith.addf %920, %923 : vector<2x128xf32>
    %c137 = arith.constant 137 : index
    %925 = memref.load %arg2[%c137] : memref<146xf32, #tpu.memory_space<smem>>
    %926 = vector.broadcast %925 : f32 to vector<2x128xf32>
    %927 = arith.mulf %926, %664 : vector<2x128xf32>
    %928 = arith.addf %924, %927 : vector<2x128xf32>
    %c138 = arith.constant 138 : index
    %929 = memref.load %arg2[%c138] : memref<146xf32, #tpu.memory_space<smem>>
    %930 = vector.broadcast %929 : f32 to vector<2x128xf32>
    %931 = arith.mulf %930, %893 : vector<2x128xf32>
    %c139 = arith.constant 139 : index
    %932 = memref.load %arg2[%c139] : memref<146xf32, #tpu.memory_space<smem>>
    %933 = vector.broadcast %932 : f32 to vector<2x128xf32>
    %934 = arith.mulf %933, %898 : vector<2x128xf32>
    %935 = arith.addf %931, %934 : vector<2x128xf32>
    %c140 = arith.constant 140 : index
    %936 = memref.load %arg2[%c140] : memref<146xf32, #tpu.memory_space<smem>>
    %937 = vector.broadcast %936 : f32 to vector<2x128xf32>
    %938 = arith.mulf %937, %659 : vector<2x128xf32>
    %939 = arith.addf %935, %938 : vector<2x128xf32>
    %c141 = arith.constant 141 : index
    %940 = memref.load %arg2[%c141] : memref<146xf32, #tpu.memory_space<smem>>
    %941 = vector.broadcast %940 : f32 to vector<2x128xf32>
    %942 = arith.mulf %941, %664 : vector<2x128xf32>
    %943 = arith.addf %939, %942 : vector<2x128xf32>
    %c142 = arith.constant 142 : index
    %944 = memref.load %arg2[%c142] : memref<146xf32, #tpu.memory_space<smem>>
    %945 = vector.broadcast %944 : f32 to vector<2x128xf32>
    %946 = arith.mulf %945, %893 : vector<2x128xf32>
    %c143 = arith.constant 143 : index
    %947 = memref.load %arg2[%c143] : memref<146xf32, #tpu.memory_space<smem>>
    %948 = vector.broadcast %947 : f32 to vector<2x128xf32>
    %949 = arith.mulf %948, %898 : vector<2x128xf32>
    %950 = arith.addf %946, %949 : vector<2x128xf32>
    %c144 = arith.constant 144 : index
    %951 = memref.load %arg2[%c144] : memref<146xf32, #tpu.memory_space<smem>>
    %952 = vector.broadcast %951 : f32 to vector<2x128xf32>
    %953 = arith.mulf %952, %659 : vector<2x128xf32>
    %954 = arith.addf %950, %953 : vector<2x128xf32>
    %c145_326 = arith.constant 145 : index
    %955 = memref.load %arg2[%c145_326] : memref<146xf32, #tpu.memory_space<smem>>
    %956 = vector.broadcast %955 : f32 to vector<2x128xf32>
    %957 = arith.mulf %956, %664 : vector<2x128xf32>
    %958 = arith.addf %954, %957 : vector<2x128xf32>
    %959 = arith.addf %913, %91 : vector<2x128xf32>
    %c0_327 = arith.constant 0 : index
    %c0_328 = arith.constant 0 : index
    %c0_329 = arith.constant 0 : index
    %c0_330 = arith.constant 0 : index
    %960 = vector.load %arg3[%c0_327, %c0_328, %c0_329, %c0_330] : memref<1x4x2x128xf32, #tpu.memory_space<vmem>>, vector<1x1x2x128xf32>
    %961 = vector.shape_cast %960 : vector<1x1x2x128xf32> to vector<2x128xf32>
    %962 = vector.shape_cast %959 : vector<2x128xf32> to vector<1x1x2x128xf32>
    tpu.vector_store %arg3[%c0_327, %c0_328, %c0_329, %c0_330], %962 {strides = array<i32>} : memref<1x4x2x128xf32, #tpu.memory_space<vmem>>, vector<1x1x2x128xf32>,
    %963 = arith.addf %928, %92 : vector<2x128xf32>
    %c0_331 = arith.constant 0 : index
    %c1_332 = arith.constant 1 : index
    %c0_333 = arith.constant 0 : index
    %c0_334 = arith.constant 0 : index
    %964 = vector.load %arg3[%c0_331, %c1_332, %c0_333, %c0_334] : memref<1x4x2x128xf32, #tpu.memory_space<vmem>>, vector<1x1x2x128xf32>
    %965 = vector.shape_cast %964 : vector<1x1x2x128xf32> to vector<2x128xf32>
    %966 = vector.shape_cast %963 : vector<2x128xf32> to vector<1x1x2x128xf32>
    tpu.vector_store %arg3[%c0_331, %c1_332, %c0_333, %c0_334], %966 {strides = array<i32>} : memref<1x4x2x128xf32, #tpu.memory_space<vmem>>, vector<1x1x2x128xf32>,
    %967 = arith.addf %943, %93 : vector<2x128xf32>
    %c0_335 = arith.constant 0 : index
    %c2_336 = arith.constant 2 : index
    %c0_337 = arith.constant 0 : index
    %c0_338 = arith.constant 0 : index
    %968 = vector.load %arg3[%c0_335, %c2_336, %c0_337, %c0_338] : memref<1x4x2x128xf32, #tpu.memory_space<vmem>>, vector<1x1x2x128xf32>
    %969 = vector.shape_cast %968 : vector<1x1x2x128xf32> to vector<2x128xf32>
    %970 = vector.shape_cast %967 : vector<2x128xf32> to vector<1x1x2x128xf32>
    tpu.vector_store %arg3[%c0_335, %c2_336, %c0_337, %c0_338], %970 {strides = array<i32>} : memref<1x4x2x128xf32, #tpu.memory_space<vmem>>, vector<1x1x2x128xf32>,
    %971 = arith.addf %958, %94 : vector<2x128xf32>
    %c0_339 = arith.constant 0 : index
    %c3_340 = arith.constant 3 : index
    %c0_341 = arith.constant 0 : index
    %c0_342 = arith.constant 0 : index
    %972 = vector.load %arg3[%c0_339, %c3_340, %c0_341, %c0_342] : memref<1x4x2x128xf32, #tpu.memory_space<vmem>>, vector<1x1x2x128xf32>
    %973 = vector.shape_cast %972 : vector<1x1x2x128xf32> to vector<2x128xf32>
    %974 = vector.shape_cast %971 : vector<2x128xf32> to vector<1x1x2x128xf32>
    tpu.vector_store %arg3[%c0_339, %c3_340, %c0_341, %c0_342], %974 {strides = array<i32>} : memref<1x4x2x128xf32, #tpu.memory_space<vmem>>, vector<1x1x2x128xf32>,
    return
  }
  func.func @transform_0(%arg0: i32) -> (i32, i32, i32, i32) {
    %c0_i32 = arith.constant 0 : i32
    %c0_i32_0 = arith.constant 0 : i32
    %c0_i32_1 = arith.constant 0 : i32
    %c0_i32_2 = arith.constant 0 : i32
    return %arg0, %c0_i32, %c0_i32_0, %c0_i32_1 : i32, i32, i32, i32
  }
  func.func @transform_1(%arg0: i32) -> i32 {
    %c0_i32 = arith.constant 0 : i32
    %c0_i32_0 = arith.constant 0 : i32
    return %c0_i32 : i32
  }
  func.func @transform_2(%arg0: i32) -> (i32, i32, i32, i32) {
    %c0_i32 = arith.constant 0 : i32
    %c0_i32_0 = arith.constant 0 : i32
    %c0_i32_1 = arith.constant 0 : i32
    %c0_i32_2 = arith.constant 0 : i32
    return %arg0, %c0_i32, %c0_i32_0, %c0_i32_1 : i32, i32, i32, i32
  }
}

</mosaic_0001>

<bundles_post_ra>
// kernel: scblock_forward.1
= control target key start
LH: loop header
LB: loop body
LE: loop exit
PB: predicated region body
PF: predicated region fallthrough
CT: control target
= control target key end

     0   :  { %7 = vsyncpa [#allocation4], 0  ;;  %s3524_s0 = inlined_call_operand.hbm [shape: f32[2,4,2,128], index: 0, kind: input, shape index: {}]   ;;  %s3525_s1 = inlined_call_operand.hbm [shape: f32[146], index: 1, kind: input, shape index: {}]   ;;  %s3526_s2 = inlined_call_operand.hbm [shape: f32[2,4,2,128], index: 2, kind: output, shape index: {}]  }
   0x1   :  { %9 = vsyncpa [#allocation4 + $0x1], 0 }
   0x2   :  { %10 = vsyncpa [#allocation6], 0 }
   0x3   :  { %11 = vsyncpa [#allocation5], 0 }
   0x4   :  { %13 = vsyncpa [#allocation5 + $0x1], 0  ;;  %s2411_s9 = smov 0   ;;  %s2413_s10 = smov 0  }
   0x5   :  { %s2415_s11 = smov 0   ;;  %s2417_s12 = smov 0  }
   0x6 LB: > { %s2432_s13 = sadd.s32 4294967295, %s2377_s12   ;;  %s1978_s14 = sadd.s32 4294967294, %s2377_s12   ;;  %s2377_s12 = sphi %s2417_s12, %s3554_s12   ;;  %s2373_s11 = sphi %s2415_s11, %s3553_s11   ;;  %s2369_s10 = sphi %s2413_s10, %s3552_s10   ;;  %s2365_s9 = sphi %s2411_s9, %s3551_s9  }
   0x7   : > { %s2436_s15 = sadd.s32 1, %s2377_s12   ;;  %s26_s16 = sadd.s32 1, %s2373_s11 }
   0x8   : > { %s23_s17 = ssub.s32 %s2377_s12, %s2436_s15  ;;  %p33_p0 = scmp.ne.s32.totalorder %s2373_s11, %s2369_s10 }
   0x9   : > { %p24_p1 = scmp.eq.s32.totalorder %s23_s17, 0  ;;  %p34_p2 = scmp.eq.s32.totalorder %s2377_s12, 0 }
   0xa   : > { %p39_p3 = scmp.ne.s32.totalorder %s2369_s10, %s2365_s9  ;;  %p3527_p4 = scmp.eq.s32.totalorder %s2432_s13, 0 }
   0xb   : > { %s2448_s18 = scalar_select %p24_p1, %s2373_s11, %s26_s16  }
   0xc   : > { %p2450_p5 = por %p34_p2, %p33_p0  ;;  %p2456_p6 = por %p3527_p4, %p39_p3 }
   0xd   : > { %p84_p7 = scmp.eq.s32.totalorder %s2432_s13, 1  ;;  %p90_p8 = scmp.eq.s32.totalorder %s1978_s14, 1 }
   0xe   : > { %s3532_s20 = scalar_select %p2456_p6, 1, 0 }
   0xf   : > { %p1979_p9 = scmp.ge.s32.totalorder %s2377_s12, 1  ;;  %p97_p10 = scmp.lt.s32.totalorder %s2377_s12, 3 }
  0x10   : > { %p2463_p11 = por %p84_p7, %p33_p0  ;;  %p2467_p12 = por %p90_p8, %p39_p3 }
  0x11   : > { %p2471_p13 = pnand %p1979_p9, %p97_p10  ;;  %p2200_p4 = scmp.lt.s32.totalorder %s2377_s12, 2 }
  0x12   : > { %s3533_s21 = scalar_select %p2463_p11, 1, 0 }
  0x13   : > { %s3534_s22 = scalar_select %p2467_p12, 1, 0 }
  0x14   : > { %p2187_p2 = pneg %p2471_p13  ;;  %s119_s24 = sand.u32 1, %s2373_s11  }
  0x15   : > { %s2177_s25 = sshll.u32 %s2377_s12, 7  ;;  %p3536_p6 = scmp.eq.s32.totalorder %s2432_s13, 0 }
  0x16   : > { %p2485_p7 = pnand %p2200_p4, %p2450_p5  ;;  %s1982_s27 = sshll.u32 %s119_s24, 3 }
  0x17   : > { %p2188_p0 = pnand %p2187_p2, %p3536_p6  ;;  %s2264_s30 = scalar_lea.hbm %s3525_s1, 32 }
  0x18   : > { %p2265_p3 = scmp.ne.s32.totalorder %s3525_s1, %s2264_s30  ;;  %p2271_p6 = scmp.lt.u32.totalorder %s2264_s30, %s3525_s1 }
  0x19   : > { %p2266_p8 = pneg %p2188_p0 }
  0x1b   : > { %p2267_p9 = pnand %p2266_p8, %p2265_p3 }
  0x1d   : > { %p2268_p10 = pneg %p2267_p9 }
  0x1f   : > { %p2273_p4 = pnand %p2271_p6, %p2268_p10 }
  0x21   : > { %2276 = shalt.err (!%p2273_p4)
}
  0x22   : > { %s2379_s7 = smov [#allocation7]   ;;  %s2504_s19 = scalar_lea.hbm %s3524_s0, %s2177_s25 }
  0x23   : > { %2190 = dma.hbm_to_smem (!%p2188_p0), %s3525_s1, 32, %s2379_s7, [#allocation6]  }
  0x24   : > { %s123_s28 = scalar_lea.vmem [#allocation3], %s1982_s27  ;;  %s2508_s30 = scalar_lea.sflag [#allocation4], %s119_s24 }
  0x25   : > { %s130_s29 = sshll.u32 %s123_s28, 4  ;;  %s2277_s3 = scalar_lea.hbm %s2504_s19, 128  ;;  %s2506_s29 = int_to_ptr.vmem [resolvable:$true] %s130_s29 }
  0x26   : > { %p2278_p5 = scmp.ne.s32.totalorder %s2504_s19, %s2277_s3  ;;  %p2279_p2 = pneg %p2485_p7 }
  0x27   : > { %s2282_s5 = scalar_lea.hbm %s3524_s0, 256  ;;  %p2283_p8 = scmp.lt.u32.totalorder %s2504_s19, %s3524_s0 }
  0x28   : > { %p2280_p0 = pnand %p2279_p2, %p2278_p5  ;;  %p2284_p9 = scmp.lt.u32.totalorder %s2282_s5, %s2277_s3 }
  0x29   : > { %p2286_p6 = scmp.lt.u32.totalorder %s2277_s3, %s2504_s19 }
  0x2a   : > { %p2281_p3 = pneg %p2280_p0  ;;  %p2285_p10 = por %p2284_p9, %p2283_p8 }
  0x2c   : > { %p2287_p4 = por %p2286_p6, %p2285_p10 }
  0x2e   : > { %p2288_p1 = pnand %p2287_p4, %p2281_p3 }
  0x30   : > { %2291 = shalt.err (!%p2288_p1)
}
  0x31   : > { %s2292_s24 = scalar_lea.vmem %s2506_s29, 128  ;;  %s2380_s27 = smov [#allocation3]  }
  0x32   : > { %p2293_p5 = scmp.ne.s32.totalorder %s2506_s29, %s2292_s24  ;;  %s2297_s8 = sshll.u32 %s2380_s27, 4  ;;  %s2298_s8 = int_to_ptr.vmem [resolvable:$false] %s2297_s8 }
  0x33   : > { %s2299_s14 = scalar_lea.vmem %s2298_s8, 256  ;;  %p2300_p11 = scmp.lt.s32.totalorder %s2506_s29, %s2298_s8 }
  0x34   : > { %p2295_p0 = pnand %p2293_p5, %p2279_p2  ;;  %p2301_p8 = scmp.lt.s32.totalorder %s2299_s14, %s2292_s24 }
  0x36   : > { %p2296_p12 = pneg %p2295_p0  ;;  %p2302_p9 = por %p2301_p8, %p2300_p11 }
  0x38   : > { %p2303_p10 = pnand %p2302_p9, %p2296_p12 }
  0x3a   : > { %2306 = shalt.err (!%p2303_p10)
}
  0x3b   : > { %s2381_s16 = smov 32   ;;  %s2382_s17 = smov 2  }
  0x3c   : > { %2194 = dma.hbm_to_vmem [thread:$0]  (!%p2485_p7), %s2504_s19, 128, %s2506_s29, %s2508_s30, %s2381_s16, %s2381_s16, %s2382_s17  }
  0x3d   : > { %142 = sbr.rel (%p2471_p13) target bundleno = 1202 (0x4b2), region = 28  ;;  %s2539_s28 = sand.u32 (!%p2471_p13), 1, %s2369_s10  }
  0x3e   : > { %s3530_s3 = sshll.u32 (!%p2471_p13), %s2539_s28, 3  ;;  %s145_s25 = scalar_lea.sflag (!%p2471_p13), [#allocation4], %s2539_s28 }
  0x3f   : > { %s2545_s4 = scalar_lea.vmem (!%p2471_p13), [#allocation3], %s3530_s3  ;;  %p3538_p11 = scmp.ne.s32.totalorder (!%p2471_p13), %s3532_s20, 0 }
  0x44   : > { %2352 = dma.done.wait (%p3538_p11), %s145_s25, 128  }
  0x45   : > { %2354 = vsyncadd (%p3538_p11), %s145_s25, 4294967168  ;;  %p3539_p12 = scmp.eq.s32.totalorder %s2432_s13, 0 }
  0x47   : > { %2356 = dma.done.wait (%p3539_p12), [#allocation6], 32   ;;  %p3540_p13 = pmov %p3539_p12 }
  0x49   : > { %2358 = vsyncadd (%p3540_p13), [#allocation6], 4294967264 }
  0x4a   : > { %157 = sfence }
  0x4b   : > { %v197_v0 = vld [vmem:[%s2545_s4] sm:$0x3]  ;;  %v1989_v1 = vld [vmem:[%s2545_s4 + $0x2] sm:$0x3]  ;;  %v1990_v2 = vld [vmem:[%s2545_s4 + $0x4] sm:$0x3]  ;;  %v181_v39 = vlaneseq }
  0x4c   : > { %v204_v3 = vadd.f32 %v1989_v1, %v197_v0  ;;  %v1991_v4 = vld [vmem:[%s2545_s4 + $0x6] sm:$0x3]  ;;  %vm207_vm0 = vcmask 1041408   ;;  %s2563_s20 = sld [smem:[#allocation7]]  ;;  %s2565_s23 = sld [smem:[#allocation7 + $0x1]]  ;;  %vm174_vm1 = vcmask 131072  }
  0x4d   : > { %s2567_s26 = sld [smem:[#allocation7 + $0x2]]  ;;  %s2569_s19 = sld [smem:[#allocation7 + $0x3]]  ;;  %v2383_v40 = vmov 1983009808   ;;  %v360_v54 = vshrl.u32 %v181_v39, 7  ;;  %vm176_vm2 = vcmask 270472  }
  0x4e   : > { %v205_v5 = vadd.f32 %v1990_v2, %v204_v3  ;;  %s2571_s29 = sld [smem:[#allocation7 + $0x4]]  ;;  %s2573_s30 = sld [smem:[#allocation7 + $0x5]]  ;;  %v357_v41 = vunpack.c.l.s4 %v2383_v40  ;;  %vm369_vm5 = vcmask 1041544   ;;  %vm370_vm6 = vcmask 134146  }
  0x4f   : > { %s2575_s5 = sld [smem:[#allocation7 + $0x6]]  ;;  %s2577_s6 = sld [smem:[#allocation7 + $0x7]]  ;;  %vm366_vm7 = vcmask 138240   ;;  %vm2676_vm8 = vmor %vm370_vm6, %vm369_vm5  ;;  %vm457_vm11 = vcmask 1031168   ;;  %vm483_vm12 = vcmask 916480   ;;  %vm420_vm14 = vcmask 1039360  }
  0x50   : > { %v206_v6 = vadd.f32 %v1991_v4, %v205_v5  ;;  %s2579_s7 = sld [smem:[#allocation7 + $0xc]]  ;;  %s2581_s24 = sld [smem:[#allocation7 + $0xd]]  ;;  %v358_v53 = vunpack.c.0.s8 %v357_v41  ;;  %vm517_vm15 = vcmask 900096  }
  0x51   : > { %s2583_s27 = sld [smem:[#allocation7 + $0xe]]  ;;  %s2585_s8 = sld [smem:[#allocation7 + $0xf]] }
  0x52   : > { %v208_v7 = vsel %vm207_vm0, %v206_v6, 0.0  ;;  %s2587_s14 = sld [smem:[#allocation7 + $0x8]]  ;;  %s2589_s16 = sld [smem:[#allocation7 + $0x9]]  ;;  %v252_v42 = vstv %s2563_s20  ;;  %v255_v43 = vstv %s2565_s23  ;;  %v2631_v3 = vsub.s32 %v358_v53, %v360_v54 }
  0x53   : > { %209 = vadd.xlane.f32.xlu0 %v208_v7  ;;  %s2591_s17 = sld [smem:[#allocation7 + $0xa]]  ;;  %s2593_s25 = sld [smem:[#allocation7 + $0xb]]  ;;  %v259_v44 = vstv %s2567_s26  ;;  %v263_v45 = vstv %s2569_s19 }
  0x54   : > { %v267_v46 = vstv %s2571_s29  ;;  %v270_v47 = vstv %s2573_s30  ;;  %s2614_s20 = sld [smem:[#allocation7 + $0x10]]  ;;  %s2617_s23 = sld [smem:[#allocation7 + $0x12]] }
  0x55   : > { %v274_v48 = vstv %s2575_s5  ;;  %v278_v49 = vstv %s2577_s6  ;;  %s2624_s26 = sld [smem:[#allocation7 + $0x11]]  ;;  %s2635_s19 = sld [smem:[#allocation7 + $0x13]] }
  0x56   : > { %v303_v50 = vstv %s2579_s7  ;;  %v306_v51 = vstv %s2581_s24  ;;  %s2385_s29 = smov 17   ;;  %s2386_s30 = smov 112  }
  0x57   : > { %v310_v55 = vstv %s2583_s27  ;;  %v314_v56 = vstv %s2585_s8  ;;  %s2387_s5 = smov 126   ;;  %s2388_s6 = smov 110  }
  0x58   : > { %v288_v60 = vstv %s2587_s14  ;;  %v291_v61 = vstv %s2589_s16  ;;  %s2389_s7 = smov 96   ;;  %s2017_s24 = sld [smem:[#allocation7 + $0x17]] }
  0x59   : > { %v299_v6 = vstv %s2593_s25  ;;  %s2033_s27 = sld [smem:[#allocation7 + $0x1d]]  ;;  %s2390_s8 = smov 94  }
  0x5a   : > { %s2018_s14 = sld [smem:[#allocation7 + $0x29]]  ;;  %s2040_s16 = sld [smem:[#allocation7 + $0x20]] }
  0x5b   : > { %s2391_s25 = smov 127   ;;  %s2862_s3 = sld [smem:[#allocation7 + $0x24]] }
  0x5c   : > { %p3548_p7 = scmp.ne.s32.totalorder %s3533_s21, 0 }
  0xe0   : > { %v210_v8 = vpop.xlane.xlu0 %209 }
  0xe1   : > { %v211_v9 = vsel %vm207_vm0, %v210_v8, 0.0 }
  0xe2   : > { %v212_v10 = vrot.slane %v211_v9, 4 }
  0xe4   : > { %v213_v11 = vadd.f32 %v212_v10, %v211_v9 }
  0xe6   : > { %v214_v12 = vrot.slane %v213_v11, 2 }
  0xe8   : > { %v215_v13 = vadd.f32 %v214_v12, %v213_v11 }
  0xea   : > { %v216_v14 = vrot.slane %v215_v13, 1 }
  0xec   : > { %v217_v15 = vadd.f32 %v216_v14, %v215_v13 }
  0xee   : > { %v218_v16 = vmul.f32 0.0009765625, %v217_v15 }
  0xf0   : > { %v219_v17 = vsub.f32 %v197_v0, %v218_v16  ;;  %v221_v18 = vsub.f32 %v1989_v1, %v218_v16  ;;  %v224_v19 = vsub.f32 %v1990_v2, %v218_v16  ;;  %v227_v22 = vsub.f32 %v1991_v4, %v218_v16 }
  0xf1   : > { %v2384_v1 = vmov 0.0   ;;  %v295_v2 = vstv %s2591_s17  ;;  %s2034_s17 = sld [smem:[#allocation7 + $0x2f]] }
  0xf2   : > { %v220_v20 = vmul.f32 %v219_v17, %v219_v17  ;;  %v222_v21 = vmul.f32 %v221_v18, %v221_v18  ;;  %v225_v24 = vmul.f32 %v224_v19, %v224_v19  ;;  %v228_v26 = vmul.f32 %v227_v22, %v227_v22  ;;  %175 = vst.msk [vmem:[#allocation2] sm:$0x1] %vm174_vm1, %v2384_v1 }
  0xf3   : > { %177 = vst.msk [vmem:[#allocation2 + $0x3] sm:$0x1] %vm176_vm2, %v2384_v1  ;;  %180 = vst.msk [vmem:[#allocation2 + $0x7] sm:$0x1] %vm176_vm2, %v2384_v1 }
  0xf4   : > { %v223_v23 = vadd.f32 %v222_v21, %v220_v20  ;;  %179 = vst.msk [vmem:[#allocation2 + $0x4] sm:$0x1] %vm174_vm1, %v2384_v1 }
  0xf6   : > { %v226_v25 = vadd.f32 %v225_v24, %v223_v23  ;;  %v324_v24 = vstv %s2614_s20  ;;  %s2056_s20 = sld [smem:[#allocation7 + $0x26]] }
  0xf8   : > { %v229_v27 = vadd.f32 %v228_v26, %v226_v25 }
  0xfa   : > { %v230_v28 = vsel %vm207_vm0, %v229_v27, 0.0  ;;  %v331_v27 = vstv %s2617_s23  ;;  %s2392_s23 = smov 95  }
  0xfb   : > { %231 = vadd.xlane.f32.xlu0 %v230_v28 }
 0x188   : > { %v232_v29 = vpop.xlane.xlu0 %231 }
 0x189   : > { %v233_v30 = vsel %vm207_vm0, %v232_v29, 0.0  ;;  %vm543_vm0 = vcmask 785408  }
 0x18a   : > { %v234_v31 = vrot.slane %v233_v30, 4 }
 0x18c   : > { %v235_v32 = vadd.f32 %v234_v31, %v233_v30 }
 0x18e   : > { %v236_v33 = vrot.slane %v235_v32, 2 }
 0x190   : > { %v237_v34 = vadd.f32 %v236_v33, %v235_v32  ;;  %v327_v32 = vstv %s2624_s26  ;;  %s2041_s26 = sld [smem:[#allocation7 + $0x32]] }
 0x192   : > { %v238_v35 = vrot.slane %v237_v34, 1 }
 0x194   : > { %v239_v36 = vadd.f32 %v238_v35, %v237_v34  ;;  %v334_v35 = vstv %s2635_s19  ;;  %s2057_s19 = sld [smem:[#allocation7 + $0x38]] }
 0x196   : > { %v240_v37 = vmul.f32 0.0009765625, %v239_v36 }
 0x198   : > { %v241_v38 = vadd.f32 1e-05, %v240_v37 }
 0x19a   : > { %2250 = vrsqrt.f32 %v241_v38 }
 0x1a4   : > { %v2251_v52 = vpop.eup %2250 }
 0x1a5   : > { %v2608_v57 = vmul.f32 %v2251_v52, %v219_v17  ;;  %v2610_v58 = vmul.f32 %v2251_v52, %v221_v18  ;;  %v2612_v59 = vmul.f32 %v2251_v52, %v224_v19  ;;  %v2620_v62 = vmul.f32 %v2251_v52, %v227_v22 }
 0x1a7   : > { %v253_v63 = vmul.f32 %v252_v42, %v2608_v57  ;;  %v256_v0 = vmul.f32 %v255_v43, %v2610_v58  ;;  %v268_v4 = vmul.f32 %v267_v46, %v2608_v57  ;;  %v271_v5 = vmul.f32 %v270_v47, %v2610_v58 }
 0x1a8   : > { %v260_v8 = vmul.f32 %v259_v44, %v2612_v59  ;;  %v304_v9 = vmul.f32 %v303_v50, %v2608_v57  ;;  %v307_v10 = vmul.f32 %v306_v51, %v2610_v58  ;;  %v275_v12 = vmul.f32 %v274_v48, %v2612_v59 }
 0x1a9   : > { %v257_v7 = vadd.f32 %v256_v0, %v253_v63  ;;  %v272_v11 = vadd.f32 %v271_v5, %v268_v4  ;;  %v289_v13 = vmul.f32 %v288_v60, %v2608_v57  ;;  %v292_v14 = vmul.f32 %v291_v61, %v2610_v58 }
 0x1aa   : > { %v264_v16 = vmul.f32 %v263_v45, %v2620_v62  ;;  %v308_v17 = vadd.f32 %v307_v10, %v304_v9  ;;  %v311_v18 = vmul.f32 %v310_v55, %v2612_v59  ;;  %v279_v20 = vmul.f32 %v278_v49, %v2620_v62 }
 0x1ab   : > { %v261_v15 = vadd.f32 %v260_v8, %v257_v7  ;;  %v276_v19 = vadd.f32 %v275_v12, %v272_v11  ;;  %v293_v21 = vadd.f32 %v292_v14, %v289_v13  ;;  %v296_v22 = vmul.f32 %v295_v2, %v2612_v59 }
 0x1ac   : > { %v312_v25 = vadd.f32 %v311_v18, %v308_v17  ;;  %v315_v26 = vmul.f32 %v314_v56, %v2620_v62  ;;  %v300_v30 = vmul.f32 %v299_v6, %v2620_v62  ;;  %v405_v5 = vstv %s2017_s24  ;;  %s2011_s24 = sld [smem:[#allocation7 + $0x14]] }
 0x1ad   : > { %v265_v23 = vadd.f32 %v264_v16, %v261_v15  ;;  %v280_v28 = vadd.f32 %v279_v20, %v276_v19  ;;  %v297_v29 = vadd.f32 %v296_v22, %v293_v21  ;;  %v557_v7 = vstv %s2033_s27  ;;  %s2015_s27 = sld [smem:[#allocation7 + $0x16]] }
 0x1ae   : > { %v2653_v33 = vadd.f32 %v315_v26, %v312_v25  ;;  %v425_v10 = vstv %s2018_s14  ;;  %v633_v15 = vstv %s2040_s16  ;;  %v577_v22 = vstv %s2034_s17  ;;  %s2764_s14 = sld [smem:[#allocation7 + $0x18]]  ;;  %s2768_s16 = sld [smem:[#allocation7 + $0x19]] }
 0x1af   : > { %vm281_vm3 = vcmp.ge.f32.partialorder %v265_v23, 0.0  ;;  %v282_v31 = vmul.f32 0.2, %v265_v23  ;;  %vm284_vm4 = vcmp.ge.f32.partialorder %v280_v28, 0.0  ;;  %v285_v34 = vmul.f32 0.2, %v280_v28 }
 0x1b0   : > { %v2656_v36 = vadd.f32 %v300_v30, %v297_v29  ;;  %v780_v26 = vstv %s2056_s20  ;;  %v652_v29 = vstv %s2041_s26  ;;  %vm320_vm9 = vcmp.ge.f32.partialorder %v2653_v33, 0.0  ;;  %s2774_s17 = sld [smem:[#allocation7 + $0x1a]]  ;;  %s2776_s20 = sld [smem:[#allocation7 + $0x28]] }
 0x1b1   : > { %v2658_v37 = vsel %vm281_vm3, %v265_v23, %v282_v31  ;;  %v2664_v42 = vsel %vm284_vm4, %v280_v28, %v285_v34  ;;  %v799_v34 = vstv %s2057_s19  ;;  %s2781_s26 = sld [smem:[#allocation7 + $0x1b]]  ;;  %s2790_s19 = sld [smem:[#allocation7 + $0x1c]]  ;;  %vm609_vm3 = vcmask 769024  }
 0x1b2   : > { %v325_v38 = vmul.f32 %v324_v24, %v2658_v37  ;;  %v332_v40 = vmul.f32 %v331_v27, %v2658_v37  ;;  %v362_v41 = vrot.slane %v2658_v37, %v2631_v3  ;;  %v328_v43 = vmul.f32 %v327_v32, %v2664_v42 }
 0x1b3   : > { %v335_v44 = vmul.f32 %v334_v35, %v2664_v42  ;;  %v384_v47 = vrot.slane %v2664_v42, %v2631_v3  ;;  %vm572_vm4 = vcmask 777216   ;;  %vm317_vm5 = vcmp.ge.f32.partialorder %v2656_v36, 0.0 }
 0x1b4   : > { %363 = vrot.lane.b32.xlu1 %v362_v41, %s2385_s29  ;;  %v2669_v45 = vadd.f32 %v328_v43, %v325_v38 }
 0x1b5   : > { %v2671_v46 = vadd.f32 %v335_v44, %v332_v40  ;;  %v321_v44 = vmul.f32 0.2, %v2653_v33 }
 0x1b8   : > { %385 = vrot.lane.b32.xlu1 %v384_v47, %s2385_s29 }
 0x226   : > { %v364_v48 = vpop.permute.xlu1 %363 }
 0x227   : > { %v365_v50 = vrot.slane %v364_v48, 6 }
 0x229   : > { %v367_v51 = vsel %vm366_vm7, %v365_v50, %v364_v48  ;;  %v2739_v48 = vsel %vm320_vm9, %v2653_v33, %v321_v44 }
 0x22a   : > { %372 = vst.msk [vmem:[#allocation2] sm:$0xf] %vm2676_vm8, %v367_v51  ;;  %v386_v52 = vpop.permute.xlu1 %385  ;;  %v1351_v50 = vrot.slane %v2739_v48, %v2631_v3 }
 0x22b   : > { %v387_v53 = vrot.slane %v386_v52, 6 }
 0x22d   : > { %v388_v54 = vsel %vm366_vm7, %v387_v53, %v386_v52 }
 0x22e   : > { %390 = vst.msk [vmem:[#allocation2 + $0x4] sm:$0xf] %vm2676_vm8, %v388_v54 }
 0x231   : > { %v373_v55 = vld [vmem:[#allocation2 + $0x2] sm:$0x1] }
 0x232   : > { %374 = vst.msk [vmem:[#allocation2 + $0x1] sm:$0x1] %vm174_vm1, %v373_v55 }
 0x235   : > { %v391_v56 = vld [vmem:[#allocation2 + $0x6] sm:$0x1] }
 0x236   : > { %392 = vst.msk [vmem:[#allocation2 + $0x5] sm:$0x1] %vm174_vm1, %v391_v56 }
 0x239   : > { %v375_v60 = vld [vmem:[#allocation2 + $0x1] sm:$0x1] }
 0x23a   : > { %376 = vst.msk [vmem:[#allocation2 + $0x2] sm:$0x1] %vm176_vm2, %v375_v60 }
 0x23d   : > { %v393_v61 = vld [vmem:[#allocation2 + $0x5] sm:$0x1] }
 0x23e   : > { %394 = vst.msk [vmem:[#allocation2 + $0x6] sm:$0x1] %vm176_vm2, %v393_v61 }
 0x241   : > { %v2022_v63 = vld.sshfl [vmem:[#allocation2] sm:$0x33 pattern:$0x76325410] }
 0x242   : > { %479 = vrot.lane.b32.xlu1 %v2022_v63, %s2386_s30  ;;  %453 = vrot.lane.b32.xlu0 %v2022_v63, %s2387_s5  ;;  %v512_v0 = vcombine.high %v2022_v63, %v2022_v63  ;;  %v403_v4 = vld [vmem:[#allocation2] sm:$0xf] }
 0x243   : > { %v555_v6 = vld [vmem:[#allocation2] sm:$0xf]  ;;  %v406_v8 = vmul.f32 %v405_v5, %v403_v4  ;;  %v426_v13 = vmul.f32 %v425_v10, %v403_v4 }
 0x244   : > { %v558_v9 = vmul.f32 %v557_v7, %v555_v6  ;;  %v578_v24 = vmul.f32 %v577_v22, %v555_v6  ;;  %v395_v10 = vld [vmem:[#allocation2] sm:$0x3] }
 0x245   : > { %v2696_v1 = vld.sshfl [vmem:[#allocation2 + $0x4] sm:$0x33 pattern:$0x76325410]  ;;  %v414_v11 = vrot.slane %v406_v8, %v2631_v3  ;;  %v434_v17 = vrot.slane %v426_v13, %v2631_v3 }
 0x246   : > { %513 = vrot.lane.b32.xlu1 %v2022_v63, %s2388_s6  ;;  %515 = vrot.lane.b32.xlu0 %v512_v0, %s2388_s6  ;;  %v679_v2 = vcombine.high %v2696_v1, %v2696_v1  ;;  %v566_v12 = vrot.slane %v558_v9, %v2631_v3  ;;  %v631_v14 = vld [vmem:[#allocation2 + $0x4] sm:$0xf]  ;;  %v586_v27 = vrot.slane %v578_v24, %v2631_v3 }
 0x247   : > { %v634_v18 = vmul.f32 %v633_v15, %v631_v14  ;;  %v435_v19 = vcombine.high %v434_v17, %v434_v17  ;;  %v415_v20 = vcombine.high %v414_v11, %v414_v11  ;;  %v778_v25 = vld [vmem:[#allocation2 + $0x4] sm:$0xf]  ;;  %v653_v32 = vmul.f32 %v652_v29, %v631_v14 }
 0x248   : > { %v567_v16 = vcombine.high %v566_v12, %v566_v12  ;;  %v781_v28 = vmul.f32 %v780_v26, %v778_v25  ;;  %v587_v30 = vcombine.high %v586_v27, %v586_v27  ;;  %v800_v40 = vmul.f32 %v799_v34, %v778_v25 }
 0x249   : > { %v642_v21 = vrot.slane %v634_v18, %v2631_v3  ;;  %v661_v38 = vrot.slane %v653_v32, %v2631_v3  ;;  %v398_v14 = vstv %s2015_s27  ;;  %v462_v18 = vstv %s2764_s14  ;;  %s2803_s27 = sld [smem:[#allocation7 + $0x1e]]  ;;  %s2805_s14 = sld [smem:[#allocation7 + $0x2b]] }
 0x24a   : > { %539 = vrot.lane.b32.xlu1 %v2022_v63, %s2389_s7  ;;  %541 = vrot.lane.b32.xlu0 %v512_v0, %s2389_s7  ;;  %v789_v31 = vrot.slane %v781_v28, %v2631_v3  ;;  %v808_v43 = vrot.slane %v800_v40, %v2631_v3  ;;  %v496_v29 = vstv %s2774_s17  ;;  %v522_v40 = vstv %s2781_s26  ;;  %s2819_s17 = sld [smem:[#allocation7 + $0x15]]  ;;  %s2833_s26 = sld [smem:[#allocation7 + $0x21]] }
 0x24b   : > { %v643_v23 = vcombine.high %v642_v21, %v642_v21  ;;  %v662_v41 = vcombine.high %v661_v38, %v661_v38  ;;  %v497_v44 = vmul.f32 %v496_v29, %v2658_v37 }
 0x24c   : > { %v790_v35 = vcombine.high %v789_v31, %v789_v31  ;;  %v809_v47 = vcombine.high %v808_v43, %v808_v43 }
 0x24e   : > { %605 = vrot.lane.b32.xlu1 %v2022_v63, %s2390_s8  ;;  %607 = vrot.lane.b32.xlu0 %v512_v0, %s2390_s8 }
 0x252   : > { %680 = vrot.lane.b32.xlu1 %v2696_v1, %s2387_s5  ;;  %682 = vrot.lane.b32.xlu0 %v679_v2, %s2387_s5 }
 0x256   : > { %707 = vrot.lane.b32.xlu0 %v679_v2, %s2386_s30  ;;  %455 = vrot.lane.b32.xlu1 %v512_v0, %s2387_s5 }
 0x25a   : > { %740 = vrot.lane.b32.xlu0 %v679_v2, %s2388_s6  ;;  %481 = vrot.lane.b32.xlu1 %v512_v0, %s2386_s30 }
 0x25e   : > { %765 = vrot.lane.b32.xlu0 %v679_v2, %s2389_s7  ;;  %416 = vrot.lane.b32.xlu1 %v414_v11, %s2391_s25 }
 0x262   : > { %570 = vrot.lane.b32.xlu0 %v567_v16, %s2392_s23  ;;  %568 = vrot.lane.b32.xlu1 %v566_v12, %s2392_s23  ;;  %v338_v12 = vstv %s2011_s24  ;;  %s2793_s24 = sld [smem:[#allocation7 + $0x2a]] }
 0x266   : > { %438 = vrot.lane.b32.xlu0 %v435_v19, %s2391_s25  ;;  %418 = vrot.lane.b32.xlu1 %v415_v20, %s2391_s25  ;;  %v339_v20 = vadd.f32 %v338_v12, %v2669_v45  ;;  %v401_v45 = vstv %s2776_s20  ;;  %s2827_s20 = sld [smem:[#allocation7 + $0x2c]] }
 0x26a   : > { %646 = vrot.lane.b32.xlu0 %v643_v23, %s2391_s25  ;;  %436 = vrot.lane.b32.xlu1 %v434_v17, %s2391_s25  ;;  %v488_v23 = vstv %s2768_s16  ;;  %s2816_s16 = sld [smem:[#allocation7 + $0x1f]] }
 0x26e   : > { %829 = vrot.lane.b32.xlu0 %v679_v2, %s2390_s8  ;;  %644 = vrot.lane.b32.xlu1 %v642_v21, %s2391_s25  ;;  %v182_v2 = vand.u32 127, %v181_v39 }
 0x270   : > { %v187_v6 = vand.u32 15, %v182_v2 }
 0x272   : > { %590 = vrot.lane.b32.xlu0 %v587_v30, %s2392_s23  ;;  %705 = vrot.lane.b32.xlu1 %v2696_v1, %s2386_s30  ;;  %vm2770_vm10 = vcmp.gt.s32.totalorder %v187_v6, 0  ;;  %vm2785_vm13 = vcmp.lt.s32.totalorder %v187_v6, 15  ;;  %v2012_v30 = vmul.f32 -1.442695, %v339_v20  ;;  %v624_v20 = vstv %s2816_s16  ;;  %s2876_s16 = sld [smem:[#allocation7 + $0x30]] }
 0x273   : > { %v396_v13 = vsel %vm2770_vm10, %v395_v10, 0.0  ;;  %v621_v10 = vld [vmem:[#allocation2 + $0x4] sm:$0x3] }
 0x274   : > { %v399_v21 = vmul.f32 %v398_v14, %v396_v13  ;;  %2252 = vpow2.f32 %v2012_v30  ;;  %v688_v30 = vstv %s2833_s26  ;;  %s2900_s26 = sld [smem:[#allocation7 + $0x31]] }
 0x276   : > { %793 = vrot.lane.b32.xlu0 %v790_v35, %s2392_s23  ;;  %738 = vrot.lane.b32.xlu1 %v2696_v1, %s2388_s6 }
 0x27a   : > { %665 = vrot.lane.b32.xlu0 %v662_v41, %s2391_s25  ;;  %763 = vrot.lane.b32.xlu1 %v2696_v1, %s2389_s7 }
 0x27e   : > { %812 = vrot.lane.b32.xlu0 %v809_v47, %s2392_s23  ;;  %827 = vrot.lane.b32.xlu1 %v2696_v1, %s2390_s8 }
 0x282   : > { %1352 = vrot.lane.b32.xlu0 %v1351_v50, %s2385_s29  ;;  %588 = vrot.lane.b32.xlu1 %v586_v27, %s2392_s23  ;;  %v402_v50 = vmul.f32 %v401_v45, %v396_v13 }
 0x286   : > { %791 = vrot.lane.b32.xlu1 %v789_v31, %s2392_s23 }
 0x28a   : > { %663 = vrot.lane.b32.xlu1 %v661_v38, %s2391_s25 }
 0x28e   : > { %810 = vrot.lane.b32.xlu1 %v808_v43, %s2392_s23 }
 0x2b4   : > { %v480_v33 = vpop.permute.xlu1 %479  ;;  %v454_v51 = vpop.permute.xlu0 %453 }
 0x2b8   : > { %v514_v52 = vpop.permute.xlu1 %513  ;;  %v516_v53 = vpop.permute.xlu0 %515 }
 0x2b9   : > { %v518_v26 = vsel %vm517_vm15, %v514_v52, %v516_v53  ;;  %v466_v52 = vstv %s2793_s24  ;;  %s2844_s24 = sld [smem:[#allocation7 + $0x22]] }
 0x2ba   : > { %v2813_v41 = vsel %vm2785_vm13, %v518_v26, 0.0  ;;  %v347_v26 = vstv %s2819_s17  ;;  %s2884_s17 = sld [smem:[#allocation7 + $0x25]] }
 0x2bb   : > { %v523_v53 = vmul.f32 %v522_v40, %v2813_v41 }
 0x2bc   : > { %v540_v54 = vpop.permute.xlu1 %539  ;;  %v542_v55 = vpop.permute.xlu0 %541 }
 0x2bd   : > { %v544_v31 = vsel %vm543_vm0, %v540_v54, %v542_v55 }
 0x2c0   : > { %v2751_v56 = vpop.permute.xlu1 %605  ;;  %v2753_v60 = vpop.permute.xlu0 %607 }
 0x2c1   : > { %v610_v54 = vsel %vm609_vm3, %v2751_v56, %v2753_v60  ;;  %v492_v60 = vstv %s2805_s14  ;;  %s2860_s14 = sld [smem:[#allocation7 + $0x2e]] }
 0x2c2   : > { %v2841_v56 = vsel %vm2785_vm13, %v610_v54, 0.0 }
 0x2c4   : > { %v2755_v61 = vpop.permute.xlu1 %680  ;;  %v2757_v63 = vpop.permute.xlu0 %682 }
 0x2c8   : > { %v2759_v0 = vpop.permute.xlu0 %707  ;;  %v456_v1 = vpop.permute.xlu1 %455 }
 0x2c9   : > { %v458_v39 = vsel %vm457_vm11, %v454_v51, %v456_v1  ;;  %v2824_v51 = vsel %vm2770_vm10, %v544_v31, 0.0 }
 0x2ca   : > { %v460_v19 = vsel %vm2785_vm13, %v458_v39, 0.0  ;;  %v614_v39 = vstv %s2803_s27  ;;  %s2853_s27 = sld [smem:[#allocation7 + $0x23]] }
 0x2cb   : > { %v463_v27 = vmul.f32 %v462_v18, %v460_v19  ;;  %v467_v6 = vmul.f32 %v466_v52, %v460_v19  ;;  %v2850_v19 = vsel %vm2770_vm10, %v621_v10, 0.0 }
 0x2cc   : > { %v2762_v4 = vpop.permute.xlu0 %740  ;;  %v482_v5 = vpop.permute.xlu1 %481 }
 0x2cd   : > { %v484_v16 = vsel %vm483_vm12, %v480_v33, %v482_v5  ;;  %v548_v33 = vstv %s2790_s19  ;;  %s2836_s19 = sld [smem:[#allocation7 + $0x2d]] }
 0x2ce   : > { %v486_v24 = vsel %vm2770_vm10, %v484_v16, 0.0  ;;  %v549_v5 = vmul.f32 %v548_v33, %v2824_v51 }
 0x2cf   : > { %v489_v32 = vmul.f32 %v488_v23, %v486_v24  ;;  %v493_v23 = vmul.f32 %v492_v60, %v486_v24 }
 0x2d0   : > { %v2766_v7 = vpop.permute.xlu0 %765  ;;  %v417_v8 = vpop.permute.xlu1 %416 }
 0x2d4   : > { %v2779_v11 = vpop.permute.xlu1 %568  ;;  %v571_v17 = vpop.permute.xlu0 %570 }
 0x2d5   : > { %v573_v18 = vsel %vm572_vm4, %v2779_v11, %v571_v17  ;;  %v500_v11 = vstv %s2827_s20  ;;  %s2898_s20 = sld [smem:[#allocation7 + $0x27]] }
 0x2d8   : > { %v419_v22 = vpop.permute.xlu1 %418  ;;  %v439_v34 = vpop.permute.xlu0 %438 }
 0x2d9   : > { %v421_v25 = vsel %vm420_vm14, %v417_v8, %v419_v22  ;;  %v684_v22 = vsel %vm457_vm11, %v2755_v61, %v2757_v63  ;;  %v348_v63 = vadd.f32 %v347_v26, %v2671_v46 }
 0x2da   : > { %v423_v28 = vadd.f32 %v421_v25, %v399_v21  ;;  %v615_v21 = vmul.f32 %v614_v39, %v2841_v56  ;;  %v2871_v61 = vsel %vm2785_vm13, %v684_v22, 0.0 }
 0x2db   : > { %v689_v46 = vmul.f32 %v688_v30, %v2871_v61  ;;  %v2014_v33 = vmul.f32 -1.442695, %v348_v63 }
 0x2dc   : > { %v464_v35 = vadd.f32 %v463_v27, %v423_v28  ;;  %v437_v38 = vpop.permute.xlu1 %436  ;;  %v647_v12 = vpop.permute.xlu0 %646  ;;  %v625_v28 = vmul.f32 %v624_v20, %v2850_v19 }
 0x2dd   : > { %v440_v43 = vsel %vm420_vm14, %v437_v38, %v439_v34  ;;  %v2253_v34 = vpop.eup %2252  ;;  %v713_v38 = vstv %s2844_s24  ;;  %2254 = vpow2.f32 %v2014_v33  ;;  %s2922_s24 = sld [smem:[#allocation7 + $0x35]] }
 0x2de   : > { %v490_v47 = vadd.f32 %v489_v32, %v464_v35  ;;  %v442_v1 = vadd.f32 %v440_v43, %v402_v50  ;;  %v501_v32 = vmul.f32 %v500_v11, %v2658_v37  ;;  %v526_v35 = vstv %s2836_s19  ;;  %s2914_s19 = sld [smem:[#allocation7 + $0x34]] }
 0x2df   : > { %v721_v50 = vstv %s2853_s27  ;;  %v527_v52 = vmul.f32 %v526_v35, %v2813_v41  ;;  %s2924_s27 = sld [smem:[#allocation7 + $0x36]] }
 0x2e0   : > { %v498_v55 = vadd.f32 %v497_v44, %v490_v47  ;;  %v645_v2 = vpop.permute.xlu1 %644  ;;  %v468_v13 = vadd.f32 %v467_v6, %v442_v1  ;;  %v830_v24 = vpop.permute.xlu0 %829  ;;  %v746_v1 = vstv %s2862_s3  ;;  %v722_v41 = vmul.f32 %v721_v50, %v2664_v42  ;;  %s2908_s3 = sld [smem:[#allocation7 + $0x33]] }
 0x2e2   : > { %v524_v8 = vadd.f32 %v523_v53, %v498_v55  ;;  %v494_v17 = vadd.f32 %v493_v23, %v468_v13  ;;  %v552_v55 = vstv %s2860_s14  ;;  %s2055_s14 = sld [smem:[#allocation7 + $0x37]] }
 0x2e3   : > { %v553_v60 = vmul.f32 %v552_v55, %v2824_v51 }
 0x2e4   : > { %v550_v14 = vadd.f32 %v549_v5, %v524_v8  ;;  %v706_v16 = vpop.permute.xlu1 %705  ;;  %v502_v47 = vadd.f32 %v501_v32, %v494_v17  ;;  %v591_v5 = vpop.permute.xlu0 %590  ;;  %v835_v17 = vstv %s2898_s20  ;;  %s2079_s20 = sld [smem:[#allocation7 + $0x41]] }
 0x2e5   : > { %v709_v29 = vsel %vm483_vm12, %v706_v16, %v2759_v0  ;;  %v648_v0 = vsel %vm420_vm14, %v645_v2, %v647_v12  ;;  %v771_v16 = vstv %s2884_s17  ;;  %s2064_s17 = sld [smem:[#allocation7 + $0x4d]] }
 0x2e6   : > { %v575_v25 = vadd.f32 %v573_v18, %v550_v14  ;;  %v2882_v40 = vsel %vm2770_vm10, %v709_v29, 0.0  ;;  %v528_v39 = vadd.f32 %v527_v52, %v502_v47  ;;  %v618_v14 = vstv %s2876_s16  ;;  %s2060_s16 = sld [smem:[#allocation7 + $0x39]] }
 0x2e7   : > { %v714_v54 = vmul.f32 %v713_v38, %v2882_v40  ;;  %v619_v23 = vmul.f32 %v618_v14, %v2841_v56  ;;  %v692_v32 = vstv %s2908_s3  ;;  %v318_v47 = vmul.f32 0.2, %v2656_v36  ;;  %s2086_s3 = sld [smem:[#allocation7 + $0x44]] }
 0x2e8   : > { %v616_v27 = vadd.f32 %v615_v21, %v575_v25  ;;  %v739_v45 = vpop.permute.xlu1 %738  ;;  %v554_v21 = vadd.f32 %v553_v60, %v528_v39  ;;  %v794_v25 = vpop.permute.xlu0 %793  ;;  %v693_v50 = vmul.f32 %v692_v32, %v2871_v61 }
 0x2e9   : > { %v742_v37 = vsel %vm517_vm15, %v739_v45, %v2762_v4  ;;  %v343_v4 = vadd.f32 1.0, %v2253_v34  ;;  %v2255_v34 = vpop.eup %2254 }
 0x2ea   : > { %v626_v31 = vadd.f32 %v625_v28, %v616_v27  ;;  %v2896_v2 = vsel %vm2785_vm13, %v742_v37, 0.0  ;;  %v628_v28 = vstv %s2900_s26  ;;  %v717_v37 = vstv %s2914_s19  ;;  %s2080_s26 = sld [smem:[#allocation7 + $0x53]]  ;;  %s2087_s19 = sld [smem:[#allocation7 + $0x56]] }
 0x2eb   : > { %v747_v13 = vmul.f32 %v746_v1, %v2896_v2  ;;  %2256 = vrcp.f32 %v343_v4  ;;  %v352_v52 = vadd.f32 1.0, %v2255_v34  ;;  %v750_v4 = vstv %s2924_s27  ;;  %s2110_s27 = sld [smem:[#allocation7 + $0x71]] }
 0x2ec   : > { %v650_v43 = vadd.f32 %v648_v0, %v626_v31  ;;  %v764_v44 = vpop.permute.xlu1 %763  ;;  %v629_v31 = vmul.f32 %v628_v28, %v2850_v19  ;;  %v666_v35 = vpop.permute.xlu0 %665 }
 0x2ed   : > { %v767_v8 = vsel %vm543_vm0, %v764_v44, %v2766_v7  ;;  %2258 = vrcp.f32 %v352_v52 }
 0x2ee   : > { %v690_v53 = vadd.f32 %v689_v46, %v650_v43  ;;  %v769_v18 = vsel %vm2770_vm10, %v767_v8, 0.0  ;;  %v751_v8 = vmul.f32 %v750_v4, %v2896_v2 }
 0x2ef   : > { %v772_v26 = vmul.f32 %v771_v16, %v769_v18 }
 0x2f0   : > { %v715_v6 = vadd.f32 %v714_v54, %v690_v53  ;;  %v828_v10 = vpop.permute.xlu1 %827  ;;  %v725_v53 = vstv %s2922_s24  ;;  %v718_v54 = vmul.f32 %v717_v37, %v2882_v40  ;;  %s2109_s24 = sld [smem:[#allocation7 + $0x5f]] }
 0x2f1   : > { %v831_v7 = vsel %vm609_vm3, %v828_v10, %v830_v24  ;;  %v726_v61 = vmul.f32 %v725_v53, %v2664_v42 }
 0x2f2   : > { %v723_v12 = vadd.f32 %v722_v41, %v715_v6  ;;  %v833_v27 = vsel %vm2785_vm13, %v831_v7, 0.0  ;;  %v775_v41 = vstv %s2055_s14  ;;  %s2125_s14 = sld [smem:[#allocation7 + $0x65]] }
 0x2f3   : > { %v836_v56 = vmul.f32 %v835_v17, %v833_v27  ;;  %v776_v39 = vmul.f32 %v775_v41, %v769_v18 }
 0x2f4   : > { %v748_v20 = vadd.f32 %v747_v13, %v723_v12  ;;  %v589_v22 = vpop.permute.xlu1 %588  ;;  %v813_v13 = vpop.permute.xlu0 %812 }
 0x2f5   : > { %v592_v51 = vsel %vm572_vm4, %v589_v22, %v591_v5  ;;  %v2257_v43 = vpop.eup %2256  ;;  %v2942_v5 = vsel %vm317_vm5, %v2656_v36, %v318_v47  ;;  %v839_v36 = vstv %s2060_s16  ;;  %s2148_s16 = sld [smem:[#allocation7 + $0x6e]] }
 0x2f6   : > { %v594_v11 = vadd.f32 %v592_v51, %v554_v21  ;;  %v773_v45 = vadd.f32 %v772_v26, %v748_v20  ;;  %v1333_v40 = vrot.slane %v2942_v5, %v2631_v3  ;;  %v840_v16 = vmul.f32 %v839_v36, %v833_v27 }
 0x2f7   : > { %v2259_v21 = vpop.eup %2258 }
 0x2f8   : > { %v620_v29 = vadd.f32 %v619_v23, %v594_v11  ;;  %v792_v30 = vpop.permute.xlu1 %791  ;;  %v1353_v26 = vpop.permute.xlu0 %1352 }
 0x2f9   : > { %v795_v63 = vsel %vm572_vm4, %v792_v30, %v794_v25 }
 0x2fa   : > { %v797_v24 = vadd.f32 %v795_v63, %v773_v45  ;;  %v630_v38 = vadd.f32 %v629_v31, %v620_v29 }
 0x2fc   : > { %v837_v0 = vadd.f32 %v836_v56, %v797_v24  ;;  %v664_v46 = vpop.permute.xlu1 %663 }
 0x2fd   : > { %v667_v44 = vsel %vm420_vm14, %v664_v46, %v666_v35 }
 0x2fe   : > { %v2933_v33 = vmul.f32 %v2257_v43, %v837_v0  ;;  %v669_v19 = vadd.f32 %v667_v44, %v630_v38  ;;  %v1354_v38 = vrot.slane %v1353_v26, 6 }
 0x300   : > { %v694_v55 = vadd.f32 %v693_v50, %v669_v19  ;;  %v851_v1 = vrot.slane %v2933_v33, %v2631_v3  ;;  %v811_v12 = vpop.permute.xlu1 %810  ;;  %v1355_v37 = vsel %vm366_vm7, %v1354_v38, %v1353_v26 }
 0x301   : > { %v814_v42 = vsel %vm572_vm4, %v811_v12, %v813_v13  ;;  %v1111_v12 = vstv %s2086_s3  ;;  %s3119_s3 = sld [smem:[#allocation7 + $0x4e]] }
 0x302   : > { %v719_v6 = vadd.f32 %v718_v54, %v694_v55  ;;  %852 = vrot.lane.b32.xlu1 %v851_v1, %s2385_s29  ;;  %v909_v54 = vstv %s2064_s17  ;;  %s2066_s17 = sld [smem:[#allocation7 + $0x3c]] }
 0x304   : > { %v727_v10 = vadd.f32 %v726_v61, %v719_v6  ;;  %v1037_v6 = vstv %s2079_s20  ;;  %s3112_s20 = sld [smem:[#allocation7 + $0x3d]] }
 0x306   : > { %v752_v60 = vadd.f32 %v751_v8, %v727_v10  ;;  %1334 = vrot.lane.b32.xlu1 %v1333_v40, %s2385_s29  ;;  %v1056_v10 = vstv %s2080_s26  ;;  %s3117_s26 = sld [smem:[#allocation7 + $0x4c]] }
 0x308   : > { %v777_v14 = vadd.f32 %v776_v39, %v752_v60 }
 0x30a   : > { %v816_v20 = vadd.f32 %v814_v42, %v777_v14  ;;  %v1130_v42 = vstv %s2087_s19  ;;  %s3121_s19 = sld [smem:[#allocation7 + $0x3e]] }
 0x30c   : > { %v841_v7 = vadd.f32 %v840_v16, %v816_v20 }
 0x30e   : > { %v2951_v22 = vmul.f32 %v2259_v21, %v841_v7 }
 0x310   : > { %v869_v2 = vrot.slane %v2951_v22, %v2631_v3 }
 0x312   : > { %870 = vrot.lane.b32.xlu0 %v869_v2, %s2385_s29  ;;  %s2063_s29 = sld [smem:[#allocation7 + $0x3b]] }
 0x318   : > { %v890_v52 = vstv %s2063_s29  ;;  %s3066_s29 = sld [smem:[#allocation7 + $0x80]] }
 0x374   : > { %v853_v18 = vpop.permute.xlu1 %852 }
 0x375   : > { %v854_v51 = vrot.slane %v853_v18, 6 }
 0x377   : > { %v855_v23 = vsel %vm366_vm7, %v854_v51, %v853_v18 }
 0x378   : > { %857 = vst.msk [vmem:[#allocation2] sm:$0xf] %vm2676_vm8, %v855_v23  ;;  %v1335_v29 = vpop.permute.xlu1 %1334 }
 0x379   : > { %v1336_v45 = vrot.slane %v1335_v29, 6 }
 0x37b   : > { %v1337_v56 = vsel %vm366_vm7, %v1336_v45, %v1335_v29 }
 0x37f   : > { %v858_v25 = vld [vmem:[#allocation2 + $0x2] sm:$0x1] }
 0x380   : > { %859 = vst.msk [vmem:[#allocation2 + $0x1] sm:$0x1] %vm174_vm1, %v858_v25 }
 0x384   : > { %v871_v11 = vpop.permute.xlu0 %870 }
 0x385   : > { %v872_v17 = vrot.slane %v871_v11, 6 }
 0x387   : > { %v873_v27 = vsel %vm366_vm7, %v872_v17, %v871_v11  ;;  %v860_v28 = vld [vmem:[#allocation2 + $0x1] sm:$0x1]  ;;  %v1372_v17 = vstv %s2109_s24  ;;  %s3123_s24 = sld [smem:[#allocation7 + $0x4f]] }
 0x388   : > { %875 = vst.msk [vmem:[#allocation2 + $0x4] sm:$0xf] %vm2676_vm8, %v873_v27  ;;  %v2965_v24 = vld [vmem:[#allocation2] sm:$0x3] }
 0x389   : > { %861 = vst.msk [vmem:[#allocation2 + $0x2] sm:$0x1] %vm176_vm2, %v860_v28  ;;  %v1391_v28 = vstv %s2110_s27  ;;  %s3136_s27 = sld [smem:[#allocation7 + $0x40]] }
 0x38f   : > { %v876_v63 = vld [vmem:[#allocation2 + $0x6] sm:$0x1] }
 0x390   : > { %v2065_v30 = vld.sshfl [vmem:[#allocation2] sm:$0x33 pattern:$0x76325410]  ;;  %877 = vst.msk [vmem:[#allocation2 + $0x5] sm:$0x1] %vm174_vm1, %v876_v63 }
 0x391   : > { %937 = vrot.lane.b32.xlu1 %v2065_v30, %s2387_s5  ;;  %v936_v31 = vcombine.high %v2065_v30, %v2065_v30  ;;  %v888_v32 = vld [vmem:[#allocation2] sm:$0xf] }
 0x392   : > { %v1035_v34 = vld [vmem:[#allocation2] sm:$0xf]  ;;  %v891_v53 = vmul.f32 %v890_v52, %v888_v32  ;;  %v910_v1 = vmul.f32 %v909_v54, %v888_v32 }
 0x393   : > { %1339 = vst.msk [vmem:[#allocation2] sm:$0xf] %vm2676_vm8, %v1337_v56  ;;  %939 = vrot.lane.b32.xlu0 %v936_v31, %s2387_s5  ;;  %v1038_v8 = vmul.f32 %v1037_v6, %v1035_v34  ;;  %v1057_v60 = vmul.f32 %v1056_v10, %v1035_v34 }
 0x394   : > { %v899_v55 = vrot.slane %v891_v53, %v2631_v3  ;;  %v918_v41 = vrot.slane %v910_v1, %v2631_v3 }
 0x395   : > { %962 = vrot.lane.b32.xlu1 %v2065_v30, %s2386_s30  ;;  %v1046_v39 = vrot.slane %v1038_v8, %v2631_v3  ;;  %v1065_v13 = vrot.slane %v1057_v60, %v2631_v3  ;;  %v1740_v8 = vstv %s2148_s16  ;;  %s3167_s16 = sld [smem:[#allocation7 + $0x54]] }
 0x396   : > { %v900_v61 = vcombine.high %v899_v55, %v899_v55  ;;  %v919_v40 = vcombine.high %v918_v41, %v918_v41 }
 0x397   : > { %964 = vrot.lane.b32.xlu0 %v936_v31, %s2386_s30  ;;  %v878_v35 = vld [vmem:[#allocation2 + $0x5] sm:$0x1]  ;;  %v1047_v36 = vcombine.high %v1046_v39, %v1046_v39  ;;  %v1066_v16 = vcombine.high %v1065_v13, %v1065_v13 }
 0x398   : > { %879 = vst.msk [vmem:[#allocation2 + $0x6] sm:$0x1] %vm176_vm2, %v878_v35  ;;  %v2986_v44 = vld [vmem:[#allocation2 + $0x4] sm:$0x3] }
 0x399   : > { %995 = vrot.lane.b32.xlu1 %v2065_v30, %s2388_s6 }
 0x39a   : > { %v1340_v0 = vld [vmem:[#allocation2 + $0x2] sm:$0x1] }
 0x39b   : > { %1341 = vst.msk [vmem:[#allocation2 + $0x1] sm:$0x1] %vm174_vm1, %v1340_v0  ;;  %997 = vrot.lane.b32.xlu0 %v936_v31, %s2388_s6 }
 0x39d   : > { %1020 = vrot.lane.b32.xlu1 %v2065_v30, %s2389_s7 }
 0x39f   : > { %1022 = vrot.lane.b32.xlu0 %v936_v31, %s2389_s7  ;;  %v2980_v46 = vld.sshfl [vmem:[#allocation2 + $0x4] sm:$0x33 pattern:$0x76325410] }
 0x3a0   : > { %v2982_v43 = vld [vmem:[#allocation2 + $0x4] sm:$0xf]  ;;  %v2996_v19 = vcombine.high %v2980_v46, %v2980_v46 }
 0x3a1   : > { %1084 = vrot.lane.b32.xlu1 %v2065_v30, %s2390_s8  ;;  %v1109_v47 = vld [vmem:[#allocation2 + $0x4] sm:$0xf] }
 0x3a2   : > { %v1342_v50 = vld [vmem:[#allocation2 + $0x1] sm:$0x1]  ;;  %1357 = vst.msk [vmem:[#allocation2 + $0x4] sm:$0xf] %vm2676_vm8, %v1355_v37  ;;  %v1112_v14 = vmul.f32 %v1111_v12, %v1109_v47  ;;  %v1131_v7 = vmul.f32 %v1130_v42, %v1109_v47 }
 0x3a3   : > { %1343 = vst.msk [vmem:[#allocation2 + $0x2] sm:$0x1] %vm176_vm2, %v1342_v50  ;;  %1086 = vrot.lane.b32.xlu0 %v936_v31, %s2390_s8  ;;  %v1519_v31 = vstv %s2125_s14  ;;  %s3138_s14 = sld [smem:[#allocation7 + $0x50]] }
 0x3a4   : > { %v1120_v20 = vrot.slane %v1112_v14, %v2631_v3  ;;  %v1139_v2 = vrot.slane %v1131_v7, %v2631_v3  ;;  %v1759_v14 = vstv %s3066_s29  ;;  %s3171_s29 = sld [smem:[#allocation7 + $0x45]] }
 0x3a5   : > { %1158 = vrot.lane.b32.xlu1 %v2980_v46, %s2387_s5 }
 0x3a6   : > { %v1121_v21 = vcombine.high %v1120_v20, %v1120_v20  ;;  %v1140_v18 = vcombine.high %v1139_v2, %v1139_v2 }
 0x3a7   : > { %1160 = vrot.lane.b32.xlu0 %v2996_v19, %s2387_s5 }
 0x3a9   : > { %1183 = vrot.lane.b32.xlu1 %v2980_v46, %s2386_s30  ;;  %v1358_v49 = vld [vmem:[#allocation2 + $0x6] sm:$0x1] }
 0x3aa   : > { %1359 = vst.msk [vmem:[#allocation2 + $0x5] sm:$0x1] %vm174_vm1, %v1358_v49  ;;  %v2111_v51 = vld.sshfl [vmem:[#allocation2] sm:$0x33 pattern:$0x76325410] }
 0x3ab   : > { %1185 = vrot.lane.b32.xlu0 %v2996_v19, %s2386_s30  ;;  %v1418_v23 = vcombine.high %v2111_v51, %v2111_v51  ;;  %v1370_v11 = vld [vmem:[#allocation2] sm:$0xf] }
 0x3ac   : > { %v1373_v27 = vmul.f32 %v1372_v17, %v1370_v11  ;;  %v1392_v45 = vmul.f32 %v1391_v28, %v1370_v11  ;;  %v1517_v56 = vld [vmem:[#allocation2] sm:$0xf] }
 0x3ad   : > { %1216 = vrot.lane.b32.xlu1 %v2980_v46, %s2388_s6  ;;  %v1520_v34 = vmul.f32 %v1519_v31, %v1517_v56 }
 0x3ae   : > { %v1381_v29 = vrot.slane %v1373_v27, %v2631_v3  ;;  %v1400_v63 = vrot.slane %v1392_v45, %v2631_v3 }
 0x3af   : > { %1218 = vrot.lane.b32.xlu0 %v2996_v19, %s2388_s6  ;;  %v1528_v0 = vrot.slane %v1520_v34, %v2631_v3 }
 0x3b0   : > { %v1382_v30 = vcombine.high %v1381_v29, %v1381_v29  ;;  %v1401_v32 = vcombine.high %v1400_v63, %v1400_v63 }
 0x3b1   : > { %1241 = vrot.lane.b32.xlu1 %v2980_v46, %s2389_s7  ;;  %v1360_v4 = vld [vmem:[#allocation2 + $0x5] sm:$0x1]  ;;  %v1529_v50 = vcombine.high %v1528_v0, %v1528_v0 }
 0x3b2   : > { %1361 = vst.msk [vmem:[#allocation2 + $0x6] sm:$0x1] %vm176_vm2, %v1360_v4 }
 0x3b3   : > { %1243 = vrot.lane.b32.xlu0 %v2996_v19, %s2389_s7 }
 0x3b5   : > { %901 = vrot.lane.b32.xlu1 %v899_v55, %s2391_s25 }
 0x3b7   : > { %903 = vrot.lane.b32.xlu0 %v900_v61, %s2391_s25 }
 0x3b9   : > { %920 = vrot.lane.b32.xlu1 %v918_v41, %s2391_s25  ;;  %v2134_v25 = vld.sshfl [vmem:[#allocation2 + $0x4] sm:$0x33 pattern:$0x76325410] }
 0x3ba   : > { %v1639_v26 = vcombine.high %v2134_v25, %v2134_v25  ;;  %v1591_v37 = vld [vmem:[#allocation2 + $0x4] sm:$0xf] }
 0x3bb   : > { %922 = vrot.lane.b32.xlu0 %v919_v40, %s2391_s25  ;;  %v1738_v41 = vld [vmem:[#allocation2 + $0x4] sm:$0xf] }
 0x3bd   : > { %1048 = vrot.lane.b32.xlu1 %v1046_v39, %s2392_s23 }
 0x3bf   : > { %1050 = vrot.lane.b32.xlu0 %v1047_v36, %s2392_s23 }
 0x3c1   : > { %1067 = vrot.lane.b32.xlu1 %v1065_v13, %s2392_s23  ;;  %v1741_v13 = vmul.f32 %v1740_v8, %v1738_v41 }
 0x3c3   : > { %1069 = vrot.lane.b32.xlu0 %v1066_v16, %s2392_s23 }
 0x3c5   : > { %1122 = vrot.lane.b32.xlu1 %v1120_v20, %s2391_s25 }
 0x3c7   : > { %1124 = vrot.lane.b32.xlu0 %v1121_v21, %s2391_s25 }
 0x3c9   : > { %1141 = vrot.lane.b32.xlu1 %v1139_v2, %s2391_s25  ;;  %v1749_v2 = vrot.slane %v1741_v13, %v2631_v3 }
 0x3cb   : > { %1143 = vrot.lane.b32.xlu0 %v1140_v18, %s2391_s25  ;;  %v1760_v18 = vmul.f32 %v1759_v14, %v1738_v41  ;;  %v1750_v28 = vcombine.high %v1749_v2, %v1749_v2  ;;  %v886_v41 = vstv %s3117_s26  ;;  %v974_v14 = vstv %s3123_s24  ;;  %s3194_s26 = sld [smem:[#allocation7 + $0x58]]  ;;  %s3206_s24 = sld [smem:[#allocation7 + $0x59]] }
 0x3cd   : > { %1419 = vrot.lane.b32.xlu1 %v2111_v51, %s2387_s5  ;;  %v1768_v17 = vrot.slane %v1760_v18, %v2631_v3 }
 0x3cf   : > { %1421 = vrot.lane.b32.xlu0 %v1418_v23, %s2387_s5 }
 0x3d1   : > { %1444 = vrot.lane.b32.xlu1 %v2111_v51, %s2386_s30 }
 0x3d3   : > { %1446 = vrot.lane.b32.xlu0 %v1418_v23, %s2386_s30 }
 0x3d5   : > { %1477 = vrot.lane.b32.xlu1 %v2111_v51, %s2388_s6 }
 0x3d7   : > { %1479 = vrot.lane.b32.xlu0 %v1418_v23, %s2388_s6 }
 0x3d9   : > { %1502 = vrot.lane.b32.xlu1 %v2111_v51, %s2389_s7 }
 0x3db   : > { %1504 = vrot.lane.b32.xlu0 %v1418_v23, %s2389_s7 }
 0x3dd   : > { %1566 = vrot.lane.b32.xlu1 %v2111_v51, %s2390_s8 }
 0x3df   : > { %1568 = vrot.lane.b32.xlu0 %v1418_v23, %s2390_s8 }
 0x3e1   : > { %1640 = vrot.lane.b32.xlu1 %v2134_v25, %s2387_s5 }
 0x3e3   : > { %1642 = vrot.lane.b32.xlu0 %v1639_v26, %s2387_s5  ;;  %s2126_s5 = sld [smem:[#allocation7 + $0x77]] }
 0x3e5   : > { %1665 = vrot.lane.b32.xlu1 %v2134_v25, %s2386_s30 }
 0x3e7   : > { %1667 = vrot.lane.b32.xlu0 %v1639_v26, %s2386_s30  ;;  %s2132_s30 = sld [smem:[#allocation7 + $0x68]] }
 0x3e9   : > { %1698 = vrot.lane.b32.xlu1 %v2134_v25, %s2388_s6  ;;  %v1538_v35 = vstv %s2126_s5  ;;  %s3144_s5 = sld [smem:[#allocation7 + $0x51]] }
 0x3ea   : > { %v1539_v38 = vmul.f32 %v1538_v35, %v1517_v56  ;;  %v1769_v56 = vcombine.high %v1768_v17, %v1768_v17 }
 0x3eb   : > { %1700 = vrot.lane.b32.xlu0 %v1639_v26, %s2388_s6  ;;  %s2133_s6 = sld [smem:[#allocation7 + $0x7a]] }
 0x3ec   : > { %v1547_v49 = vrot.slane %v1539_v38, %v2631_v3 }
 0x3ed   : > { %1723 = vrot.lane.b32.xlu1 %v2134_v25, %s2389_s7  ;;  %v1593_v47 = vstv %s2132_s30  ;;  %s3149_s30 = sld [smem:[#allocation7 + $0x52]] }
 0x3ee   : > { %v1594_v52 = vmul.f32 %v1593_v47, %v1591_v37  ;;  %v1548_v55 = vcombine.high %v1547_v49, %v1547_v49 }
 0x3ef   : > { %1725 = vrot.lane.b32.xlu0 %v1639_v26, %s2389_s7  ;;  %s2102_s7 = sld [smem:[#allocation7 + $0x4a]] }
 0x3f0   : > { %v1602_v1 = vrot.slane %v1594_v52, %v2631_v3  ;;  %v881_v52 = vsel %vm2770_vm10, %v2965_v24, 0.0 }
 0x3f1   : > { %1787 = vrot.lane.b32.xlu1 %v2134_v25, %s2390_s8  ;;  %v1612_v53 = vstv %s2133_s6  ;;  %s3151_s6 = sld [smem:[#allocation7 + $0x42]] }
 0x3f2   : > { %v1603_v40 = vcombine.high %v1602_v1, %v1602_v1 }
 0x3f3   : > { %1789 = vrot.lane.b32.xlu0 %v1639_v26, %s2390_s8 }
 0x3f5   : > { %1383 = vrot.lane.b32.xlu1 %v1381_v29, %s2391_s25  ;;  %v1258_v6 = vstv %s2102_s7  ;;  %s3160_s7 = sld [smem:[#allocation7 + $0x43]] }
 0x3f6   : > { %v1259_v60 = vmul.f32 %v1258_v6, %v2982_v43  ;;  %v970_v6 = vstv %s3112_s20  ;;  %s3191_s20 = sld [smem:[#allocation7 + $0x47]] }
 0x3f7   : > { %1385 = vrot.lane.b32.xlu0 %v1382_v30, %s2391_s25 }
 0x3f8   : > { %v1267_v20 = vrot.slane %v1259_v60, %v2631_v3 }
 0x3f9   : > { %1402 = vrot.lane.b32.xlu1 %v1400_v63, %s2391_s25 }
 0x3fa   : > { %v1268_v23 = vcombine.high %v1267_v20, %v1267_v20 }
 0x3fb   : > { %1404 = vrot.lane.b32.xlu0 %v1401_v32, %s2391_s25 }
 0x3fd   : > { %1305 = vrot.lane.b32.xlu1 %v2980_v46, %s2390_s8 }
 0x3ff   : > { %1307 = vrot.lane.b32.xlu0 %v2996_v19, %s2390_s8  ;;  %v1613_v19 = vmul.f32 %v1612_v53, %v1591_v37  ;;  %s2103_s8 = sld [smem:[#allocation7 + $0x5c]] }
 0x401   : > { %1530 = vrot.lane.b32.xlu1 %v1528_v0, %s2392_s23  ;;  %v1621_v39 = vrot.slane %v1613_v19, %v2631_v3 }
 0x403   : > { %1532 = vrot.lane.b32.xlu0 %v1529_v50, %s2392_s23  ;;  %v938_v46 = vpop.permute.xlu1 %937  ;;  %v1622_v16 = vcombine.high %v1621_v39, %v1621_v39 }
 0x405   : > { %v940_v54 = vpop.permute.xlu0 %939  ;;  %1549 = vrot.lane.b32.xlu1 %v1547_v49, %s2392_s23  ;;  %v1277_v26 = vstv %s2103_s8  ;;  %s3174_s8 = sld [smem:[#allocation7 + $0x55]] }
 0x406   : > { %v3071_v4 = vsel %vm457_vm11, %v938_v46, %v940_v54  ;;  %v1278_v29 = vmul.f32 %v1277_v26, %v2982_v43  ;;  %v945_v54 = vstv %s2066_s17  ;;  %v1028_v26 = vstv %s3136_s27  ;;  %s3184_s17 = sld [smem:[#allocation7 + $0x57]]  ;;  %s3215_s27 = sld [smem:[#allocation7 + $0x5b]] }
 0x407   : > { %1551 = vrot.lane.b32.xlu0 %v1548_v55, %s2392_s23  ;;  %v963_v61 = vpop.permute.xlu1 %962  ;;  %v943_v55 = vsel %vm2785_vm13, %v3071_v4, 0.0 }
 0x408   : > { %v1286_v31 = vrot.slane %v1278_v29, %v2631_v3  ;;  %v946_v4 = vmul.f32 %v945_v54, %v943_v55 }
 0x409   : > { %v965_v10 = vpop.permute.xlu0 %964  ;;  %1604 = vrot.lane.b32.xlu1 %v1602_v1, %s2391_s25 }
 0x40a   : > { %v3078_v12 = vsel %vm483_vm12, %v963_v61, %v965_v10  ;;  %v1287_v43 = vcombine.high %v1286_v31, %v1286_v31 }
 0x40b   : > { %1606 = vrot.lane.b32.xlu0 %v1603_v40, %s2391_s25  ;;  %v996_v36 = vpop.permute.xlu1 %995  ;;  %v968_v24 = vsel %vm2770_vm10, %v3078_v12, 0.0  ;;  %v949_v40 = vstv %s3119_s3  ;;  %v887_v12 = vmul.f32 %v886_v41, %v881_v52  ;;  %s3196_s3 = sld [smem:[#allocation7 + $0x48]] }
 0x40c   : > { %v971_v60 = vmul.f32 %v970_v6, %v968_v24 }
 0x40d   : > { %v998_v42 = vpop.permute.xlu0 %997  ;;  %1623 = vrot.lane.b32.xlu1 %v1621_v39, %s2391_s25  ;;  %v978_v39 = vstv %s3121_s19  ;;  %s3202_s19 = sld [smem:[#allocation7 + $0x49]] }
 0x40e   : > { %v3085_v7 = vsel %vm517_vm15, %v996_v36, %v998_v42 }
 0x40f   : > { %1625 = vrot.lane.b32.xlu0 %v1622_v16, %s2391_s25  ;;  %v1021_v21 = vpop.permute.xlu1 %1020  ;;  %s2061_s25 = sld [smem:[#allocation7 + $0x3a]]  ;;  %v1001_v16 = vsel %vm2785_vm13, %v3085_v7, 0.0  ;;  %v982_v7 = vstv %s3138_s14  ;;  %s2107_s14 = sld [smem:[#allocation7 + $0x5e]] }
 0x411   : > { %v1023_v51 = vpop.permute.xlu0 %1022  ;;  %1751 = vrot.lane.b32.xlu1 %v1749_v2, %s2392_s23 }
 0x412   : > { %v3091_v25 = vsel %vm543_vm0, %v1021_v21, %v1023_v51  ;;  %v950_v21 = vmul.f32 %v949_v40, %v943_v55  ;;  %v1102_v55 = vstv %s3160_s7  ;;  %s3263_s7 = sld [smem:[#allocation7 + $0x62]] }
 0x413   : > { %1271 = vrot.lane.b32.xlu0 %v1268_v23, %s2392_s23  ;;  %v1085_v11 = vpop.permute.xlu1 %1084  ;;  %v979_v23 = vmul.f32 %v978_v39, %v2933_v33 }
 0x415   : > { %v1087_v27 = vpop.permute.xlu0 %1086  ;;  %1770 = vrot.lane.b32.xlu1 %v1768_v17, %s2392_s23  ;;  %v883_v53 = vstv %s2061_s25  ;;  %v975_v17 = vmul.f32 %v974_v14, %v968_v24  ;;  %s3182_s25 = sld [smem:[#allocation7 + $0x46]] }
 0x416   : > { %v3098_v45 = vsel %vm609_vm3, %v1085_v11, %v1087_v27  ;;  %v884_v1 = vmul.f32 %v883_v53, %v881_v52  ;;  %v1026_v11 = vsel %vm2770_vm10, %v3091_v25, 0.0 }
 0x417   : > { %1753 = vrot.lane.b32.xlu0 %v1750_v28, %s2392_s23  ;;  %v1159_v30 = vpop.permute.xlu1 %1158 }
 0x419   : > { %v1161_v63 = vpop.permute.xlu0 %1160  ;;  %1269 = vrot.lane.b32.xlu1 %v1267_v20, %s2392_s23 }
 0x41a   : > { %v3104_v32 = vsel %vm457_vm11, %v1159_v30, %v1161_v63  ;;  %v1007_v63 = vstv %s3144_s5  ;;  %s2112_s5 = sld [smem:[#allocation7 + $0x60]] }
 0x41b   : > { %1772 = vrot.lane.b32.xlu0 %v1769_v56, %s2392_s23  ;;  %v1184_v34 = vpop.permute.xlu1 %1183  ;;  %v1164_v40 = vsel %vm2785_vm13, %v3104_v32, 0.0 }
 0x41d   : > { %v1186_v35 = vpop.permute.xlu0 %1185  ;;  %1288 = vrot.lane.b32.xlu1 %v1286_v31, %s2392_s23  ;;  %v1029_v31 = vmul.f32 %v1028_v26, %v1026_v11  ;;  %v1199_v26 = vstv %s3191_s20  ;;  %s3287_s20 = sld [smem:[#allocation7 + $0x75]] }
 0x41e   : > { %v3109_v0 = vsel %vm483_vm12, %v1184_v34, %v1186_v35 }
 0x41f   : > { %1290 = vrot.lane.b32.xlu0 %v1287_v43, %s2392_s23  ;;  %v1217_v38 = vpop.permute.xlu1 %1216  ;;  %s3125_s23 = sld [smem:[#allocation7 + $0x3f]]  ;;  %v983_v43 = vmul.f32 %v982_v7, %v2933_v33  ;;  %v1100_v33 = vsel %vm2770_vm10, %v2986_v44, 0.0  ;;  %v1166_v44 = vstv %s3171_s29  ;;  %s3268_s29 = sld [smem:[#allocation7 + $0x73]] }
 0x420   : > { %v1167_v32 = vmul.f32 %v1166_v44, %v1164_v40 }
 0x421   : > { %v1219_v37 = vpop.permute.xlu0 %1218 }
 0x422   : > { %v3115_v3 = vsel %vm517_vm15, %v1217_v38, %v1219_v37  ;;  %v1032_v38 = vstv %s3149_s30  ;;  %v1092_v37 = vstv %s3151_s6  ;;  %s3257_s30 = sld [smem:[#allocation7 + $0x70]]  ;;  %s3259_s6 = sld [smem:[#allocation7 + $0x61]] }
 0x423   : > { %v1242_v47 = vpop.permute.xlu1 %1241 }
 0x425   : > { %v1244_v50 = vpop.permute.xlu0 %1243  ;;  %v1003_v42 = vstv %s3125_s23  ;;  %s3212_s23 = sld [smem:[#allocation7 + $0x5a]] }
 0x426   : > { %v3128_v49 = vsel %vm543_vm0, %v1242_v47, %v1244_v50  ;;  %v1004_v27 = vmul.f32 %v1003_v42, %v1001_v16  ;;  %v1090_v47 = vsel %vm2785_vm13, %v3098_v45, 0.0  ;;  %v1008_v50 = vmul.f32 %v1007_v63, %v1001_v16 }
 0x427   : > { %v902_v46 = vpop.permute.xlu1 %901  ;;  %v1033_v45 = vmul.f32 %v1032_v38, %v1026_v11  ;;  %v1191_v42 = vstv %s3182_s25  ;;  %v1189_v16 = vsel %vm2770_vm10, %v3109_v0, 0.0  ;;  %s3277_s25 = sld [smem:[#allocation7 + $0x74]] }
 0x428   : > { %v1192_v11 = vmul.f32 %v1191_v42, %v1189_v16 }
 0x429   : > { %v904_v19 = vpop.permute.xlu0 %903 }
 0x42a   : > { %v905_v61 = vsel %vm420_vm14, %v902_v46, %v904_v19 }
 0x42b   : > { %v907_v8 = vadd.f32 %v905_v61, %v884_v1  ;;  %v921_v10 = vpop.permute.xlu1 %920  ;;  %v1093_v1 = vmul.f32 %v1092_v37, %v1090_v47  ;;  %v1096_v61 = vstv %s3167_s16  ;;  %s3265_s16 = sld [smem:[#allocation7 + $0x72]] }
 0x42d   : > { %v947_v36 = vadd.f32 %v946_v4, %v907_v8  ;;  %v923_v13 = vpop.permute.xlu0 %922  ;;  %v1103_v8 = vmul.f32 %v1102_v55, %v1100_v33 }
 0x42e   : > { %v924_v20 = vsel %vm420_vm14, %v921_v10, %v923_v13 }
 0x42f   : > { %v972_v2 = vadd.f32 %v971_v60, %v947_v36  ;;  %v926_v18 = vadd.f32 %v924_v20, %v887_v12  ;;  %v1049_v51 = vpop.permute.xlu1 %1048  ;;  %v1106_v60 = vstv %s3174_s8  ;;  %v1097_v36 = vmul.f32 %v1096_v61, %v1090_v47  ;;  %s3272_s8 = sld [smem:[#allocation7 + $0x63]] }
 0x431   : > { %v951_v28 = vadd.f32 %v950_v21, %v926_v18  ;;  %v1051_v29 = vpop.permute.xlu0 %1050  ;;  %v980_v30 = vadd.f32 %v979_v23, %v972_v2  ;;  %v1107_v2 = vmul.f32 %v1106_v60, %v1100_v33 }
 0x432   : > { %v1052_v56 = vsel %vm572_vm4, %v1049_v51, %v1051_v29  ;;  %v1170_v51 = vstv %s3184_s17  ;;  %v1222_v29 = vsel %vm2785_vm13, %v3115_v3, 0.0  ;;  %s3281_s17 = sld [smem:[#allocation7 + $0x64]] }
 0x433   : > { %v976_v25 = vadd.f32 %v975_v17, %v951_v28  ;;  %v1005_v34 = vadd.f32 %v1004_v27, %v980_v30  ;;  %v1068_v35 = vpop.permute.xlu1 %1067  ;;  %v1195_v27 = vstv %s3194_s26  ;;  %v1224_v28 = vstv %s3196_s3  ;;  %s3293_s26 = sld [smem:[#allocation7 + $0x76]] }
 0x434   : > { %v1171_v30 = vmul.f32 %v1170_v51, %v1164_v40  ;;  %v1196_v38 = vmul.f32 %v1195_v27, %v1189_v16  ;;  %v1225_v37 = vmul.f32 %v1224_v28, %v1222_v29  ;;  %v1452_v27 = vstv %s3259_s6  ;;  %s3295_s3 = sld [smem:[#allocation7 + $0x66]]  ;;  %s3337_s6 = sld [smem:[#allocation7 + $0x7c]] }
 0x435   : > { %v1030_v52 = vadd.f32 %v1029_v31, %v1005_v34  ;;  %v1070_v53 = vpop.permute.xlu0 %1069  ;;  %v984_v46 = vadd.f32 %v983_v43, %v976_v25  ;;  %v1200_v25 = vmul.f32 %v1199_v26, %v2951_v22  ;;  %v1249_v34 = vstv %s3202_s19  ;;  %s3310_s19 = sld [smem:[#allocation7 + $0x78]] }
 0x436   : > { %v1071_v54 = vsel %vm572_vm4, %v1068_v35, %v1070_v53  ;;  %v1247_v35 = vsel %vm2770_vm10, %v3128_v49, 0.0  ;;  %v1203_v43 = vstv %s3206_s24  ;;  %v1228_v53 = vstv %s3212_s23  ;;  %s3312_s24 = sld [smem:[#allocation7 + $0x67]]  ;;  %s3325_s23 = sld [smem:[#allocation7 + $0x69]] }
 0x437   : > { %v1054_v19 = vadd.f32 %v1052_v56, %v1030_v52  ;;  %v1009_v6 = vadd.f32 %v1008_v50, %v984_v46  ;;  %v1123_v24 = vpop.permute.xlu1 %1122  ;;  %v1250_v3 = vmul.f32 %v1249_v34, %v1247_v35  ;;  %v1204_v55 = vmul.f32 %v1203_v43, %v2951_v22 }
 0x438   : > { %v1427_v26 = vstv %s2112_s5  ;;  %v1431_v34 = vstv %s3265_s16  ;;  %v1456_v43 = vstv %s3268_s29  ;;  %s3332_s5 = sld [smem:[#allocation7 + $0x6b]]  ;;  %s3347_s16 = sld [smem:[#allocation7 + $0x6c]] }
 0x439   : > { %v1094_v41 = vadd.f32 %v1093_v1, %v1054_v19  ;;  %v1034_v4 = vadd.f32 %v1033_v45, %v1009_v6  ;;  %v1125_v10 = vpop.permute.xlu0 %1124  ;;  %v1253_v45 = vstv %s3215_s27  ;;  %v1229_v1 = vmul.f32 %v1228_v53, %v1222_v29  ;;  %s3327_s27 = sld [smem:[#allocation7 + $0x79]]  ;;  %s3356_s29 = sld [smem:[#allocation7 + $0x6d]] }
 0x43a   : > { %v1126_v39 = vsel %vm420_vm14, %v1123_v24, %v1125_v10  ;;  %v1254_v49 = vmul.f32 %v1253_v45, %v1247_v35 }
 0x43b   : > { %v1073_v12 = vadd.f32 %v1071_v54, %v1034_v4  ;;  %v1104_v13 = vadd.f32 %v1103_v8, %v1094_v41  ;;  %v1142_v14 = vpop.permute.xlu1 %1141 }
 0x43d   : > { %v1098_v20 = vadd.f32 %v1097_v36, %v1073_v12  ;;  %v1128_v21 = vadd.f32 %v1126_v39, %v1104_v13  ;;  %v1144_v18 = vpop.permute.xlu0 %1143 }
 0x43e   : > { %v1145_v23 = vsel %vm420_vm14, %v1142_v14, %v1144_v18  ;;  %v1365_v18 = vstv %s2107_s14  ;;  %s3329_s14 = sld [smem:[#allocation7 + $0x6a]] }
 0x43f   : > { %v1168_v7 = vadd.f32 %v1167_v32, %v1128_v21  ;;  %v1108_v17 = vadd.f32 %v1107_v2, %v1098_v20  ;;  %v1420_v0 = vpop.permute.xlu1 %1419  ;;  %v1362_v32 = vld [vmem:[#allocation2] sm:$0x3] }
 0x440   : > { %v1363_v2 = vsel %vm2770_vm10, %v1362_v32, 0.0 }
 0x441   : > { %v1193_v63 = vadd.f32 %v1192_v11, %v1168_v7  ;;  %v1147_v56 = vadd.f32 %v1145_v23, %v1108_v17  ;;  %v1422_v31 = vpop.permute.xlu0 %1421  ;;  %v1366_v7 = vmul.f32 %v1365_v18, %v1363_v2 }
 0x442   : > { %v1423_v20 = vsel %vm457_vm11, %v1420_v0, %v1422_v31  ;;  %v1368_v0 = vstv %s3257_s30  ;;  %s3335_s30 = sld [smem:[#allocation7 + $0x7b]] }
 0x443   : > { %v1172_v47 = vadd.f32 %v1171_v30, %v1147_v56  ;;  %v1445_v50 = vpop.permute.xlu1 %1444  ;;  %v1201_v52 = vadd.f32 %v1200_v25, %v1193_v63  ;;  %v1425_v11 = vsel %vm2785_vm13, %v1423_v20, 0.0  ;;  %v1460_v25 = vstv %s3263_s7  ;;  %s3345_s7 = sld [smem:[#allocation7 + $0x7d]] }
 0x444   : > { %v1428_v30 = vmul.f32 %v1427_v26, %v1425_v11  ;;  %v1369_v35 = vmul.f32 %v1368_v0, %v1363_v2  ;;  %v1489_v20 = vstv %s3287_s20  ;;  %s3375_s20 = sld [smem:[#allocation7 + $0x81]] }
 0x445   : > { %v1197_v46 = vadd.f32 %v1196_v38, %v1172_v47  ;;  %v1447_v54 = vpop.permute.xlu0 %1446  ;;  %v1226_v33 = vadd.f32 %v1225_v37, %v1201_v52  ;;  %v1485_v52 = vstv %s3272_s8  ;;  %s3362_s8 = sld [smem:[#allocation7 + $0x7e]] }
 0x446   : > { %v1448_v51 = vsel %vm483_vm12, %v1445_v50, %v1447_v54  ;;  %v1432_v54 = vmul.f32 %v1431_v34, %v1425_v11  ;;  %v1514_v11 = vstv %s3293_s26  ;;  %s3380_s26 = sld [smem:[#allocation7 + $0x4b]] }
 0x447   : > { %v1478_v19 = vpop.permute.xlu1 %1477  ;;  %v3233_v6 = vadd.f32 %v1250_v3, %v1226_v33  ;;  %v1205_v24 = vadd.f32 %v1204_v55, %v1197_v46  ;;  %v1450_v28 = vsel %vm2770_vm10, %v1448_v51, 0.0  ;;  %v1461_v46 = vmul.f32 %v1460_v25, %v2942_v5 }
 0x448   : > { %v1453_v38 = vmul.f32 %v1452_v27, %v1450_v28  ;;  %v1578_v25 = vstv %s3310_s19  ;;  %s3389_s19 = sld [smem:[#allocation7 + $0x82]] }
 0x449   : > { %v1480_v61 = vpop.permute.xlu0 %1479  ;;  %v1230_v41 = vadd.f32 %v1229_v1, %v1205_v24  ;;  %v1464_v1 = vstv %s3277_s25  ;;  %v1510_v24 = vstv %s3281_s17  ;;  %s3368_s25 = sld [smem:[#allocation7 + $0x7f]] }
 0x44a   : > { %v1481_v63 = vsel %vm517_vm15, %v1478_v19, %v1480_v61  ;;  %v1457_v19 = vmul.f32 %v1456_v43, %v1450_v28  ;;  %v1465_v2 = vmul.f32 %v1464_v1, %v2942_v5  ;;  %v1581_v5 = vld [vmem:[#allocation2 + $0x4] sm:$0x3]  ;;  %s3373_s17 = sld [smem:[#allocation7 + $0x6f]] }
 0x44b   : > { %v1503_v4 = vpop.permute.xlu1 %1502  ;;  %v3235_v8 = vadd.f32 %v1254_v49, %v1230_v41  ;;  %v1483_v53 = vsel %vm2785_vm13, %v1481_v63, 0.0  ;;  %v1582_v34 = vsel %vm2770_vm10, %v1581_v5, 0.0 }
 0x44c   : > { %v1486_v61 = vmul.f32 %v1485_v52, %v1483_v53 }
 0x44d   : > { %v1505_v10 = vpop.permute.xlu0 %1504 }
 0x44e   : > { %v1506_v37 = vsel %vm543_vm0, %v1503_v4, %v1505_v10 }
 0x44f   : > { %v3237_v44 = vpop.permute.xlu1 %1566  ;;  %v1508_v49 = vsel %vm2770_vm10, %v1506_v37, 0.0 }
 0x450   : > { %v1511_v18 = vmul.f32 %v1510_v24, %v1508_v49  ;;  %v1673_v24 = vstv %s3329_s14  ;;  %s3406_s14 = sld [smem:[#allocation7 + $0x84]] }
 0x451   : > { %v3239_v40 = vpop.permute.xlu0 %1568 }
 0x452   : > { %v1570_v41 = vsel %vm609_vm3, %v3237_v44, %v3239_v40  ;;  %v1490_v44 = vmul.f32 %v1489_v20, %v1483_v53  ;;  %v1681_v20 = vstv %s3332_s5  ;;  %s3408_s5 = sld [smem:[#allocation7 + $0x88]] }
 0x453   : > { %v3241_v39 = vpop.permute.xlu1 %1640 }
 0x455   : > { %v3243_v22 = vpop.permute.xlu0 %1642 }
 0x456   : > { %v1644_v43 = vsel %vm457_vm11, %v3241_v39, %v3243_v22  ;;  %v1588_v22 = vstv %s3327_s27  ;;  %s3399_s27 = sld [smem:[#allocation7 + $0x8e]] }
 0x457   : > { %v3245_v60 = vpop.permute.xlu1 %1665  ;;  %v1646_v39 = vsel %vm2785_vm13, %v1644_v43, 0.0 }
 0x459   : > { %v3247_v36 = vpop.permute.xlu0 %1667 }
 0x45a   : > { %v1669_v53 = vsel %vm483_vm12, %v3245_v60, %v3247_v36 }
 0x45b   : > { %v3249_v12 = vpop.permute.xlu1 %1698  ;;  %v1671_v60 = vsel %vm2770_vm10, %v1669_v53, 0.0 }
 0x45d   : > { %v3251_v13 = vpop.permute.xlu0 %1700 }
 0x45f   : > { %v3253_v14 = vpop.permute.xlu1 %1723 }
 0x461   : > { %v3255_v42 = vpop.permute.xlu0 %1725 }
 0x463   : > { %v3261_v16 = vpop.permute.xlu1 %1787 }
 0x465   : > { %v3270_v21 = vpop.permute.xlu0 %1789 }
 0x467   : > { %v1384_v23 = vpop.permute.xlu1 %1383 }
 0x469   : > { %v1386_v17 = vpop.permute.xlu0 %1385 }
 0x46a   : > { %v1387_v29 = vsel %vm420_vm14, %v1384_v23, %v1386_v17  ;;  %v1572_v17 = vsel %vm2785_vm13, %v1570_v41, 0.0 }
 0x46b   : > { %v1389_v56 = vadd.f32 %v1387_v29, %v1366_v7  ;;  %v1403_v31 = vpop.permute.xlu1 %1402  ;;  %v1574_v7 = vstv %s3295_s3  ;;  %v1515_v29 = vmul.f32 %v1514_v11, %v1508_v49  ;;  %v1579_v52 = vmul.f32 %v1578_v25, %v1572_v17  ;;  %s3386_s3 = sld [smem:[#allocation7 + $0x5d]] }
 0x46c   : > { %v1685_v11 = vstv %s3345_s7  ;;  %s3422_s7 = sld [smem:[#allocation7 + $0x83]] }
 0x46d   : > { %v1429_v47 = vadd.f32 %v1428_v30, %v1389_v56  ;;  %v1405_v50 = vpop.permute.xlu0 %1404  ;;  %v1575_v30 = vmul.f32 %v1574_v7, %v1572_v17  ;;  %v1706_v7 = vstv %s3347_s16  ;;  %s3424_s16 = sld [smem:[#allocation7 + $0x87]] }
 0x46e   : > { %v1406_v3 = vsel %vm420_vm14, %v1403_v31, %v1405_v50 }
 0x46f   : > { %v1454_v33 = vadd.f32 %v1453_v38, %v1429_v47  ;;  %v1408_v55 = vadd.f32 %v1406_v3, %v1369_v35  ;;  %v3304_v45 = vpop.permute.xlu1 %1305  ;;  %v1584_v35 = vstv %s3312_s24  ;;  %s3392_s24 = sld [smem:[#allocation7 + $0x86]] }
 0x471   : > { %v1433_v4 = vadd.f32 %v1432_v54, %v1408_v55  ;;  %v3317_v10 = vpop.permute.xlu0 %1307  ;;  %v1462_v32 = vadd.f32 %v1461_v46, %v1454_v33  ;;  %v1585_v54 = vmul.f32 %v1584_v35, %v1582_v34  ;;  %v1648_v33 = vstv %s3325_s23  ;;  %s3397_s23 = sld [smem:[#allocation7 + $0x8a]] }
 0x472   : > { %v1649_v49 = vmul.f32 %v1648_v33, %v1646_v39  ;;  %v1710_v35 = vstv %s3362_s8  ;;  %v1309_v43 = vsel %vm609_vm3, %v3304_v45, %v3317_v10  ;;  %v1313_v10 = vstv %s3380_s26  ;;  %s3429_s8 = sld [smem:[#allocation7 + $0x8f]]  ;;  %s3454_s26 = sld [smem:[#allocation7 + $0x91]] }
 0x473   : > { %v1458_v51 = vadd.f32 %v1457_v19, %v1433_v4  ;;  %v1531_v23 = vpop.permute.xlu1 %1530  ;;  %v1487_v26 = vadd.f32 %v1486_v61, %v1462_v32  ;;  %v1702_v61 = vsel %vm517_vm15, %v3249_v12, %v3251_v13  ;;  %v1589_v32 = vmul.f32 %v1588_v22, %v1582_v34 }
 0x474   : > { %v1704_v17 = vsel %vm2785_vm13, %v1702_v61, 0.0  ;;  %v1686_v34 = vmul.f32 %v1685_v11, %v2739_v48  ;;  %v1809_v33 = vstv %s3389_s19  ;;  %s3547_s19 = sshll.u32 %s2539_s28, 3 }
 0x475   : > { %v1533_v40 = vpop.permute.xlu0 %1532  ;;  %v1512_v0 = vadd.f32 %v1511_v18, %v1487_v26  ;;  %v1466_v27 = vadd.f32 %v1465_v2, %v1458_v51  ;;  %v1652_v2 = vstv %s3335_s30  ;;  %v1677_v18 = vstv %s3337_s6  ;;  %s3413_s30 = sld [smem:[#allocation7 + $0x8c]]  ;;  %s3415_s6 = sld [smem:[#allocation7 + $0x90]] }
 0x476   : > { %v1534_v28 = vsel %vm572_vm4, %v1531_v23, %v1533_v40  ;;  %v1674_v51 = vmul.f32 %v1673_v24, %v1671_v60  ;;  %v1727_v23 = vsel %vm543_vm0, %v3253_v14, %v3255_v42  ;;  %v1682_v40 = vmul.f32 %v1681_v20, %v2739_v48 }
 0x477   : > { %v1536_v63 = vadd.f32 %v1534_v28, %v1512_v0  ;;  %v1550_v56 = vpop.permute.xlu1 %1549  ;;  %v1491_v31 = vadd.f32 %v1490_v44, %v1466_v27  ;;  %v1653_v14 = vmul.f32 %v1652_v2, %v1646_v39  ;;  %v1678_v5 = vmul.f32 %v1677_v18, %v1671_v60 }
 0x478   : > { %v1731_v28 = vstv %s3356_s29  ;;  %v1735_v48 = vstv %s3368_s25  ;;  %v1711_v45 = vmul.f32 %v1710_v35, %v1704_v17  ;;  %s3427_s29 = sld [smem:[#allocation7 + $0x8b]]  ;;  %s3436_s25 = sld [smem:[#allocation7 + $0x85]]  ;;  %v1824_v60 = vstv %s3392_s24 }
 0x479   : > { %v1576_v38 = vadd.f32 %v1575_v30, %v1536_v63  ;;  %v1552_v37 = vpop.permute.xlu0 %1551  ;;  %v1516_v47 = vadd.f32 %v1515_v29, %v1491_v31  ;;  %v1729_v29 = vsel %vm2770_vm10, %v1727_v23, 0.0  ;;  %v1707_v30 = vmul.f32 %v1706_v7, %v1704_v17  ;;  %s173_s24 = scalar_lea.vmem [#allocation8], %s3547_s19 }
 0x47a   : > { %v1553_v50 = vsel %vm572_vm4, %v1550_v56, %v1552_v37  ;;  %v1791_v63 = vsel %vm609_vm3, %v3261_v16, %v3270_v21  ;;  %v1732_v9 = vmul.f32 %v1731_v28, %v1729_v29  ;;  %v1795_v37 = vstv %s3373_s17  ;;  %s3438_s17 = sld [smem:[#allocation7 + $0x89]] }
 0x47b   : > { %v1555_v3 = vadd.f32 %v1553_v50, %v1516_v47  ;;  %v1605_v46 = vpop.permute.xlu1 %1604  ;;  %v1586_v19 = vadd.f32 %v1585_v54, %v1576_v38  ;;  %v1799_v47 = vstv %s3375_s20  ;;  %v1793_v50 = vsel %vm2785_vm13, %v1791_v63, 0.0  ;;  %s3452_s20 = sld [smem:[#allocation7 + $0x8d]] }
 0x47c   : > { %v1311_v54 = vsel %vm2785_vm13, %v1309_v43, 0.0  ;;  %v1736_v22 = vmul.f32 %v1735_v48, %v1729_v29  ;;  %v1800_v2 = vmul.f32 %v1799_v47, %v1793_v50  ;;  %v1816_v18 = vstv %s3406_s14 }
 0x47d   : > { %v1580_v55 = vadd.f32 %v1579_v52, %v1555_v3  ;;  %v1607_v1 = vpop.permute.xlu0 %1606  ;;  %v1314_v61 = vmul.f32 %v1313_v10, %v1311_v54  ;;  %v1846_v11 = vstv %s3413_s30  ;;  %v1861_v7 = vstv %s3415_s6  ;;  %s2393_s30 = smov [#allocation8]  }
 0x47e   : > { %v1608_v36 = vsel %vm420_vm14, %v1605_v46, %v1607_v1  ;;  %v1317_v46 = vstv %s3386_s3  ;;  %v1812_v17 = vstv %s3422_s7  ;;  %v1820_v28 = vstv %s3436_s25  ;;  %s2178_s3 = sshll.u32 %s2432_s13, 7  ;;  %s2311_s6 = sshll.u32 %s2393_s30, 4  ;;  %s2312_s6 = int_to_ptr.vmem [resolvable:$false] %s2311_s6 }
 0x47f   : > { %v1610_v41 = vadd.f32 %v1608_v36, %v1586_v19  ;;  %v1624_v4 = vpop.permute.xlu1 %1623  ;;  %v1590_v26 = vadd.f32 %v1589_v32, %v1580_v55  ;;  %v1796_v55 = vmul.f32 %v1795_v37, %v1793_v50  ;;  %v1839_v36 = vstv %s3397_s23  ;;  %s1893_s23 = sshll.u32 %s173_s24, 4  ;;  %s3478_s14 = scalar_lea.hbm %s3526_s2, %s2178_s3  ;;  %s3480_s23 = int_to_ptr.vmem [resolvable:$true] %s1893_s23 }
 0x480   : > { %v1835_v29 = vstv %s3438_s17  ;;  %s2313_s7 = scalar_lea.vmem %s2312_s6, 256  ;;  %p2314_p6 = scmp.lt.s32.totalorder %s3480_s23, %s2312_s6 }
 0x481   : > { %v1650_v12 = vadd.f32 %v1649_v49, %v1610_v41  ;;  %v1626_v13 = vpop.permute.xlu0 %1625  ;;  %v1854_v49 = vstv %s3399_s27 }
 0x482   : > { %v1627_v44 = vsel %vm420_vm14, %v1624_v4, %v1626_v13 }
 0x483   : > { %v1675_v42 = vadd.f32 %v1674_v51, %v1650_v12  ;;  %v1629_v0 = vadd.f32 %v1627_v44, %v1590_v26  ;;  %v1752_v27 = vpop.permute.xlu1 %1751  ;;  %v1831_v51 = vstv %s3408_s5  ;;  %v1827_v44 = vstv %s3424_s16  ;;  %s2307_s5 = scalar_lea.vmem %s3480_s23, 128 }
 0x484   : > { %p2308_p1 = scmp.ne.s32.totalorder %s3480_s23, %s2307_s5  ;;  %p2315_p4 = scmp.lt.s32.totalorder %s2313_s7, %s2307_s5 }
 0x485   : > { %v1654_v56 = vadd.f32 %v1653_v14, %v1629_v0  ;;  %v1272_v31 = vpop.permute.xlu0 %1271  ;;  %v1683_v25 = vadd.f32 %v1682_v40, %v1675_v42  ;;  %v1842_v0 = vstv %s3427_s29 }
 0x486   : > { %p2309_p2 = pnand %p2308_p1, %p3548_p7  ;;  %p2316_p5 = por %p2315_p4, %p2314_p6 }
 0x487   : > { %v1679_v38 = vadd.f32 %v1678_v5, %v1654_v56  ;;  %v1771_v16 = vpop.permute.xlu1 %1770  ;;  %v1708_v21 = vadd.f32 %v1707_v30, %v1683_v25 }
 0x488   : > { %p2310_p3 = pneg %p2309_p2 }
 0x489   : > { %v1754_v52 = vpop.permute.xlu0 %1753  ;;  %v1733_v53 = vadd.f32 %v1732_v9, %v1708_v21  ;;  %v1687_v3 = vadd.f32 %v1686_v34, %v1679_v38 }
 0x48a   : > { %v1755_v39 = vsel %vm572_vm4, %v1752_v27, %v1754_v52  ;;  %v1857_v27 = vstv %s3429_s8  ;;  %p2317_p0 = pnand %p2316_p5, %p2310_p3 }
 0x48b   : > { %v1757_v1 = vadd.f32 %v1755_v39, %v1733_v53  ;;  %v1270_v19 = vpop.permute.xlu1 %1269  ;;  %v1712_v24 = vadd.f32 %v1711_v45, %v1687_v3  ;;  %v1865_v39 = vstv %s3454_s26 }
 0x48c   : > { %v1273_v15 = vsel %vm572_vm4, %v1270_v19, %v1272_v31  ;;  %v1318_v31 = vmul.f32 %v1317_v46, %v1311_v54 }
 0x48d   : > { %v1797_v41 = vadd.f32 %v1796_v55, %v1757_v1  ;;  %v1275_v4 = vadd.f32 %v1273_v15, %v3233_v6  ;;  %v1773_v32 = vpop.permute.xlu0 %1772  ;;  %v1737_v20 = vadd.f32 %v1736_v22, %v1712_v24 }
 0x48e   : > { %v1774_v23 = vsel %vm572_vm4, %v1771_v16, %v1773_v32 }
 0x48f   : > { %vm1802_vm1 = vcmp.ge.f32.partialorder %v1797_v41, 0.0  ;;  %v1803_v12 = vmul.f32 0.2, %v1797_v41  ;;  %v1315_v13 = vadd.f32 %v1314_v61, %v1275_v4  ;;  %v1776_v26 = vadd.f32 %v1774_v23, %v1737_v20  ;;  %v1289_v5 = vpop.permute.xlu1 %1288  ;;  %v2260_v61 = vld [vmem:[%s2545_s4] sm:$0x3] }
 0x490   : > { %v2261_v4 = vld [vmem:[%s2545_s4 + $0x2] sm:$0x3]  ;;  %v2262_v20 = vld [vmem:[%s2545_s4 + $0x4] sm:$0x3] }
 0x491   : > { %v1804_v6 = vsel %vm1802_vm1, %v1797_v41, %v1803_v12  ;;  %vm1320_vm2 = vcmp.ge.f32.partialorder %v1315_v13, 0.0  ;;  %v1321_v40 = vmul.f32 0.2, %v1315_v13  ;;  %v1801_v14 = vadd.f32 %v1800_v2, %v1776_v26  ;;  %v1291_v42 = vpop.permute.xlu0 %1290 }
 0x492   : > { %v1292_v56 = vsel %vm572_vm4, %v1289_v5, %v1291_v42  ;;  %v1810_v25 = vmul.f32 %v1809_v33, %v1804_v6  ;;  %v1825_v34 = vmul.f32 %v1824_v60, %v1804_v6  ;;  %v1840_v35 = vmul.f32 %v1839_v36, %v1804_v6 }
 0x493   : > { %v1322_v30 = vsel %vm1320_vm2, %v1315_v13, %v1321_v40  ;;  %vm1805_vm6 = vcmp.ge.f32.partialorder %v1801_v14, 0.0  ;;  %v1806_v63 = vmul.f32 0.2, %v1801_v14  ;;  %v1855_v9 = vmul.f32 %v1854_v49, %v1804_v6 }
 0x494   : > { %v1817_v43 = vmul.f32 %v1816_v18, %v1322_v30  ;;  %v1294_v16 = vadd.f32 %v1292_v56, %v3235_v8  ;;  %v1832_v50 = vmul.f32 %v1831_v51, %v1322_v30  ;;  %v1847_v45 = vmul.f32 %v1846_v11, %v1322_v30  ;;  %v2263_v18 = vld [vmem:[%s2545_s4 + $0x6] sm:$0x3]  ;;  %s1880_s4 = scalar_lea.sflag [#allocation5], %s2539_s28 }
 0x495   : > { %v1807_v38 = vsel %vm1805_vm6, %v1801_v14, %v1806_v63  ;;  %v1862_v10 = vmul.f32 %v1861_v7, %v1322_v30  ;;  %v1850_v33 = vstv %s3452_s20  ;;  %v247_v41 = vadd.f32 %v2260_v61, %v2608_v57 }
 0x496   : > { %v1813_v21 = vmul.f32 %v1812_v17, %v1807_v38  ;;  %v1828_v48 = vmul.f32 %v1827_v44, %v1807_v38  ;;  %v1843_v37 = vmul.f32 %v1842_v0, %v1807_v38  ;;  %v1858_v47 = vmul.f32 %v1857_v27, %v1807_v38 }
 0x497   : > { %v1319_v52 = vadd.f32 %v1318_v31, %v1294_v16  ;;  %v248_v32 = vadd.f32 %v2261_v4, %v2610_v58  ;;  %v249_v2 = vadd.f32 %v2262_v20, %v2612_v59  ;;  %v250_v51 = vadd.f32 %v2263_v18, %v2620_v62 }
 0x498   : > { %v1814_v53 = vadd.f32 %v1813_v21, %v1810_v25  ;;  %v1829_v3 = vadd.f32 %v1828_v48, %v1825_v34  ;;  %v1844_v46 = vadd.f32 %v1843_v37, %v1840_v35  ;;  %v1859_v54 = vadd.f32 %v1858_v47, %v1855_v9 }
 0x499   : > { %vm1323_vm7 = vcmp.ge.f32.partialorder %v1319_v52, 0.0  ;;  %v1324_v8 = vmul.f32 0.2, %v1319_v52 }
 0x49a   : > { %v1818_v22 = vadd.f32 %v1817_v43, %v1814_v53  ;;  %v1833_v55 = vadd.f32 %v1832_v50, %v1829_v3  ;;  %v1848_v1 = vadd.f32 %v1847_v45, %v1844_v46  ;;  %v1863_v19 = vadd.f32 %v1862_v10, %v1859_v54 }
 0x49b   : > { %v1325_v24 = vsel %vm1323_vm7, %v1319_v52, %v1324_v8 }
 0x49c   : > { %v1821_v60 = vmul.f32 %v1820_v28, %v1325_v24  ;;  %v1836_v36 = vmul.f32 %v1835_v29, %v1325_v24  ;;  %v1851_v49 = vmul.f32 %v1850_v33, %v1325_v24  ;;  %v1866_v15 = vmul.f32 %v1865_v39, %v1325_v24 }
 0x49e   : > { %v1822_v23 = vadd.f32 %v1821_v60, %v1818_v22  ;;  %v1837_v12 = vadd.f32 %v1836_v36, %v1833_v55  ;;  %v1852_v13 = vadd.f32 %v1851_v49, %v1848_v1  ;;  %v1867_v26 = vadd.f32 %v1866_v15, %v1863_v19 }
 0x4a0   : > { %v1868_v57 = vadd.f32 %v1822_v23, %v247_v41  ;;  %v1870_v58 = vadd.f32 %v1837_v12, %v248_v32  ;;  %v1873_v59 = vadd.f32 %v1852_v13, %v249_v2  ;;  %v1876_v11 = vadd.f32 %v1867_v26, %v250_v51 }
 0x4a2   : > { %1869 = vst [vmem:[%s173_s24] sm:$0x3] %v1868_v57  ;;  %2169 = vst [vmem:[%s173_s24 + $0x2] sm:$0x3] %v1870_v58 }
 0x4a3   : > { %2170 = vst [vmem:[%s173_s24 + $0x4] sm:$0x3] %v1873_v59  ;;  %2171 = vst [vmem:[%s173_s24 + $0x6] sm:$0x3] %v1876_v11 }
 0x4a4   : > { %2320 = shalt.err (!%p2317_p0)
}
 0x4a5   : > { %s2321_s16 = scalar_lea.hbm %s3478_s14, 128  ;;  %s2325_s25 = scalar_lea.hbm %s3526_s2, 256 }
 0x4a6   : > { %p2322_p8 = scmp.ne.s32.totalorder %s3478_s14, %s2321_s16  ;;  %p2326_p11 = scmp.lt.u32.totalorder %s3478_s14, %s3526_s2 }
 0x4a7   : > { %p2327_p12 = scmp.lt.u32.totalorder %s2325_s25, %s2321_s16  ;;  %p2329_p1 = scmp.lt.u32.totalorder %s2321_s16, %s3478_s14 }
 0x4a8   : > { %p2323_p9 = pnand %p2322_p8, %p3548_p7 }
 0x4a9   : > { %p2328_p13 = por %p2327_p12, %p2326_p11 }
 0x4aa   : > { %p2324_p10 = pneg %p2323_p9 }
 0x4ab   : > { %p2330_p2 = por %p2329_p1, %p2328_p13 }
 0x4ad   : > { %p2331_p3 = pnand %p2330_p2, %p2324_p10 }
 0x4af   : > { %2334 = shalt.err (!%p2331_p3)
}
 0x4b0   : > { %s2394_s26 = smov 32   ;;  %s2395_s3 = smov 2  }
 0x4b1   : > { %2185 = dma.vmem_to_hbm [thread:$0]  (%p3548_p7), %s3480_s23, 128, %s3478_s14, %s1880_s4, %s2394_s26, %s2394_s26, %s2395_s3  }
 0x4b2 PF: > { %s1908_s19 = sand.u32 1, %s2365_s9   ;;  %p3549_p6 = scmp.ne.s32.totalorder %s3534_s22, 0 }
 0x4b3   : > { %p3550_p4 = scmp.ge.s32.totalorder %s2377_s12, 2  ;;  %s1909_s24 = scalar_lea.sflag [#allocation5], %s1908_s19 }
 0x4b5   : > { %p2196_p5 = pnand %p3550_p4, %p3549_p6 }
 0x4b7   : > { %2360 = dma.done.wait (!%p2196_p5), %s1909_s24, 128  }
 0x4b8   : > { %2362 = vsyncadd (!%p2196_p5), %s1909_s24, 4294967168  ;;  %p16_p0 = scmp.ge.s32.totalorder %s2436_s15, 4   ;;  %s3551_s9 = smov %s2369_s10 }
 0x4b9   : > { %s3552_s10 = smov %s2373_s11  ;;  %s3553_s11 = smov %s2448_s18 }
 0x4ba   : > { %s3554_s12 = smov %s2436_s15  ;;  %18 = sbr.rel (!%p16_p0) target bundleno = 6 (0x6), region = 85 }
 0x4c1   :  { %1914 = vsyncpa [#allocation4], 1 }
 0x4c2   :  { %1916 = vsyncpa [#allocation4 + $0x1], 1 }
 0x4c3   :  { %1917 = vsyncpa [#allocation5], 1 }
 0x4c4   :  { %1919 = vsyncpa [#allocation5 + $0x1], 1 }
 0x4c5   :  { %1920 = vsyncpa [#allocation6], 1 }
 0x4c6   :  { %1922 = vsyncpa [#allocation6 + $0x1], 1 }

</bundles_post_ra>
